<compile_context>
chip_gen: v7x
topology: tpu7x:2x2x1
jax: 0.10.0
libtpu: 0.0.40
codegen_flags: <defaults>
</compile_context>

<pallas_src>
import functools

import jax
import jax.numpy as jnp
from jax.experimental import pallas as pl
from jax.experimental.pallas import tpu as pltpu


def _round_up(x, m):
    return (x + m - 1) // m * m


# ----------------------------------------------------------------------------
# Fused Pallas kernel (one batch element per grid step)
# ----------------------------------------------------------------------------
def _ecb_fused_kernel(x_ref, wcat_ref, bcat_ref, wdense_ref, wedge_ref,
                      bsum_ref, alpha_ref, out_ref, *, H, W, mid, Cout, offsets):
    """Fused ECB forward for one batch element.

    x_ref     : (1, Cin, Fpad)   zero-padded input, spatial flattened with padded width Wp
    wcat_ref  : (Ctot, Cin)      the four branch 1x1 weights stacked (Ctot = mid + 3*Cout)
    bcat_ref  : (Ctot, 1)        matching 1x1 biases
    wdense_ref: (Cout, 9*Cm)     per-tap [conv3x3 | conv1x1-conv3x3 stage-2] weights (Cm = Cin+mid)
    wedge_ref : (3*Cout, 9)      per-channel (scale*mask) taps for sobelx / sobely / laplacian
    bsum_ref  : (Cout, 1)        sum of the five branch output biases
    alpha_ref : (Cout, 1)        PReLU slope
    out_ref   : (1, Cout, H, W)
    """
    Wp = W + 2
    L = H * Wp                       # flat output length; columns >= W of each row are discarded
    Cin = x_ref.shape[1]
    Cm = Cin + mid

    x = x_ref[0]                                                    # (Cin, Fpad)

    # --- all four branch 1x1 convs as ONE MXU matmul over the zero-padded domain.
    # Border pixels have x == 0, so z there equals the bias -> exactly the bias-valued
    # border padding used by SeqConv3x3.
    z = (jnp.dot(wcat_ref[...], x, preferred_element_type=jnp.float32)
         + bcat_ref[...])                                           # (Ctot, Fpad)

    # --- dense 3x3 stages (branch 1 on x, branch 2 on z[:mid]) as 9 shifted MXU dots.
    feat = jnp.concatenate([x, z[:mid, :]], axis=0)                 # (Cm, Fpad)
    acc = jnp.zeros((Cout, L), jnp.float32)
    for t, off in enumerate(offsets):
        w_t = wdense_ref[:, t * Cm:(t + 1) * Cm]                    # (Cout, Cm)
        acc = acc + jnp.dot(w_t, feat[:, off:off + L],
                            preferred_element_type=jnp.float32)     # (Cout, L)

    # --- depthwise edge branches: 9 per-channel VPU broadcast-FMAs (no dense expansion).
    ze = z[mid:, :]                                                 # (3*Cout, Fpad)
    eacc = jnp.zeros((3 * Cout, L), jnp.float32)
    for t, off in enumerate(offsets):
        eacc = eacc + wedge_ref[:, t:t + 1] * ze[:, off:off + L]

    # --- 5-way branch sum + all biases + per-channel PReLU.
    total = (acc + eacc[:Cout] + eacc[Cout:2 * Cout] + eacc[2 * Cout:]
             + bsum_ref[...])
    y = jnp.where(total >= 0.0, total, total * alpha_ref[...])      # (Cout, L)

    # Drop the padded-width garbage columns while storing (row-wise lane slices).
    for h in range(H):
        out_ref[0, :, h, :] = y[:, h * Wp: h * Wp + W]


# ----------------------------------------------------------------------------
# ECB forward (Pallas path): NCHW in -> NCHW out, one kernel launch.
# ----------------------------------------------------------------------------
def ecb_forward(x_nchw, p):
    N, Cin, H, W = x_nchw.shape
    Cout = p['w3'].shape[0]
    mid = p['s1_k1'].shape[1]
    Hp, Wp = H + 2, W + 2
    Fpad = _round_up(Hp * Wp + 2, 128)      # room for the largest tap offset (2*Wp + 2)
    Ctot = mid + 3 * Cout
    Cm = Cin + mid

    # ---- weight packing (tiny weight-space ops, fused by XLA under jit) ----
    wcat = jnp.concatenate(
        [p['s1_k0'].reshape(mid, Cin), p['sbx_k0'].reshape(Cout, Cin),
         p['sby_k0'].reshape(Cout, Cin), p['lpl_k0'].reshape(Cout, Cin)], axis=0)
    bcat = jnp.concatenate(
        [p['s1_b0'], p['sbx_b0'], p['sby_b0'], p['lpl_b0']]).reshape(Ctot, 1)

    wt = jnp.concatenate([p['w3'], p['s1_k1']], axis=1)             # (Cout, Cm, 3, 3)
    wdense = jnp.transpose(wt, (0, 2, 3, 1)).reshape(Cout, 9 * Cm)  # tap-major, [x | z1] per tap

    def edge_taps(scale, mask):
        return (scale * mask)[:, 0].reshape(Cout, 9)                # tap index = dy*3 + dx

    wedge = jnp.concatenate([edge_taps(p['sbx_scale'], p['sbx_mask']),
                             edge_taps(p['sby_scale'], p['sby_mask']),
                             edge_taps(p['lpl_scale'], p['lpl_mask'])], axis=0)

    bsum = (p['b3'] + p['s1_b1'] + p['sbx_bias'] + p['sby_bias']
            + p['lpl_bias']).reshape(Cout, 1)
    alpha = p['alpha'].reshape(Cout, 1)

    # ---- zero-pad + flatten the (small, Cin-channel) input once in XLA ----
    xp = jnp.pad(x_nchw, ((0, 0), (0, 0), (1, 1), (1, 1)))
    xflat = jnp.pad(xp.reshape(N, Cin, Hp * Wp),
                    ((0, 0), (0, 0), (0, Fpad - Hp * Wp)))

    offsets = tuple(dy * Wp + dx for dy in range(3) for dx in range(3))
    kernel = functools.partial(_ecb_fused_kernel, H=H, W=W, mid=mid, Cout=Cout,
                               offsets=offsets)

    return pl.pallas_call(
        kernel,
        grid=(N,),
        in_specs=[
            pl.BlockSpec((1, Cin, Fpad), lambda n: (n, 0, 0)),
            pl.BlockSpec((Ctot, Cin), lambda n: (0, 0)),
            pl.BlockSpec((Ctot, 1), lambda n: (0, 0)),
            pl.BlockSpec((Cout, 9 * Cm), lambda n: (0, 0)),
            pl.BlockSpec((3 * Cout, 9), lambda n: (0, 0)),
            pl.BlockSpec((Cout, 1), lambda n: (0, 0)),
            pl.BlockSpec((Cout, 1), lambda n: (0, 0)),
        ],
        out_specs=pl.BlockSpec((1, Cout, H, W), lambda n: (n, 0, 0, 0)),
        out_shape=jax.ShapeDtypeStruct((N, Cout, H, W), jnp.float32),
        compiler_params=pltpu.CompilerParams(dimension_semantics=("parallel",)),
    )(xflat, wcat, bcat, wdense, wedge, bsum, alpha)


# ----------------------------------------------------------------------------
# Pure-JAX reference (mirrors the PyTorch training-mode forward exactly, NCHW)
# ----------------------------------------------------------------------------
def ecb_reference(x, p):
    def conv(x, w, b, pad=0, groups=1):
        out = jax.lax.conv_general_dilated(
            x, w, (1, 1), [(pad, pad), (pad, pad)],
            dimension_numbers=('NCHW', 'OIHW', 'NCHW'),
            feature_group_count=groups, precision=jax.lax.Precision.HIGHEST)
        return out + b.reshape(1, -1, 1, 1)

    def bias_pad(y0, b0):
        N, C, H, W = y0.shape
        border = jnp.broadcast_to(b0.reshape(1, C, 1, 1), (N, C, H + 2, W + 2))
        return jax.lax.dynamic_update_slice(border, y0, (0, 0, 1, 1))

    y1 = conv(x, p['w3'], p['b3'], pad=1)
    y2 = conv(bias_pad(conv(x, p['s1_k0'], p['s1_b0']), p['s1_b0']),
              p['s1_k1'], p['s1_b1'])

    def edge(k0, b0, scale, bias, mask):
        z = bias_pad(conv(x, k0, b0), b0)
        return conv(z, scale * mask, bias, groups=mask.shape[0])

    y3 = edge(p['sbx_k0'], p['sbx_b0'], p['sbx_scale'], p['sbx_bias'], p['sbx_mask'])
    y4 = edge(p['sby_k0'], p['sby_b0'], p['sby_scale'], p['sby_bias'], p['sby_mask'])
    y5 = edge(p['lpl_k0'], p['lpl_b0'], p['lpl_scale'], p['lpl_bias'], p['lpl_mask'])

    s = y1 + y2 + y3 + y4 + y5
    a = p['alpha'].reshape(1, -1, 1, 1)
    return jnp.where(s >= 0, s, s * a)


# ----------------------------------------------------------------------------
# Deterministic parameter init (shapes from ECB.__init__)
# ----------------------------------------------------------------------------
def init_params(key, cin, cout, depth_multiplier):
    mid = int(cout * depth_multiplier)
    ks = jax.random.split(key, 18)

    def nrm(k, shape, s=0.1):
        return (jax.random.normal(k, shape) * s).astype(jnp.float32)

    p = {}
    p['w3'] = nrm(ks[0], (cout, cin, 3, 3)); p['b3'] = nrm(ks[1], (cout,))
    p['s1_k0'] = nrm(ks[2], (mid, cin, 1, 1)); p['s1_b0'] = nrm(ks[3], (mid,))
    p['s1_k1'] = nrm(ks[4], (cout, mid, 3, 3)); p['s1_b1'] = nrm(ks[5], (cout,))

    sobelx = jnp.array([[1., 0., -1.], [2., 0., -2.], [1., 0., -1.]], jnp.float32)
    sobely = jnp.array([[1., 2., 1.], [0., 0., 0.], [-1., -2., -1.]], jnp.float32)
    lapl = jnp.array([[0., 1., 0.], [1., -4., 1.], [0., 1., 0.]], jnp.float32)
    masks = {'sbx': sobelx, 'sby': sobely, 'lpl': lapl}

    for i, name in enumerate(['sbx', 'sby', 'lpl']):
        base = 6 + 4 * i
        p[f'{name}_k0'] = nrm(ks[base], (cout, cin, 1, 1))
        p[f'{name}_b0'] = nrm(ks[base + 1], (cout,))
        p[f'{name}_scale'] = nrm(ks[base + 2], (cout, 1, 1, 1), 0.001)
        p[f'{name}_bias'] = nrm(ks[base + 3], (cout,), 0.001)
        p[f'{name}_mask'] = jnp.tile(masks[name][None, None], (cout, 1, 1, 1))

    p['alpha'] = jnp.full((cout,), 0.25, jnp.float32)   # PReLU default init
    return p


# ----------------------------------------------------------------------------
if __name__ == "__main__":
    key = jax.random.PRNGKey(0)
    kx, kp = jax.random.split(key)

    N, Cin, H, W = 2, 4, 16, 16
    Cout, depth_multiplier = 8, 2.0

    x = jax.random.normal(kx, (N, Cin, H, W), jnp.float32)       # NCHW input
    params = init_params(kp, Cin, Cout, depth_multiplier)

    y = jax.jit(ecb_forward)(x, params)
    y = jax.block_until_ready(y)

    y_ref = ecb_reference(x, params)
    assert y.shape == (N, Cout, H, W), y.shape
    err = float(jnp.max(jnp.abs(y - y_ref)))
    assert err < 2e-2, f"max abs diff vs reference: {err}"

    print("KERNEL_OK")
</pallas_src>

<mosaic_0001>
module attributes {stable_mosaic.version = 11 : i64} {
  func.func @_ecb_fused_kernel(%arg0: i32, %arg1: memref<1x4x384xf32, #tpu.memory_space<vmem>>, %arg2: memref<40x4xf32, #tpu.memory_space<vmem>>, %arg3: memref<40x1xf32, #tpu.memory_space<vmem>>, %arg4: memref<8x180xf32, #tpu.memory_space<vmem>>, %arg5: memref<24x9xf32, #tpu.memory_space<vmem>>, %arg6: memref<8x1xf32, #tpu.memory_space<vmem>>, %arg7: memref<8x1xf32, #tpu.memory_space<vmem>>, %arg8: memref<1x8x16x16xf32, #tpu.memory_space<vmem>>) attributes {dimension_semantics = [#tpu.dimension_semantics<parallel>], iteration_bounds = array<i64: 2>, scalar_prefetch = 0 : i64, scratch_operands = 0 : i64, tpu.core_type = #tpu.core_type<tc>, window_params = [{transform_indices = @transform_0, window_bounds = array<i64: 1, 4, 384>}, {pipeline_mode = #tpu.pipeline_mode<synchronous>, transform_indices = @transform_1, window_bounds = array<i64: 40, 4>}, {pipeline_mode = #tpu.pipeline_mode<synchronous>, transform_indices = @transform_2, window_bounds = array<i64: 40, 1>}, {pipeline_mode = #tpu.pipeline_mode<synchronous>, transform_indices = @transform_3, window_bounds = array<i64: 8, 180>}, {pipeline_mode = #tpu.pipeline_mode<synchronous>, transform_indices = @transform_4, window_bounds = array<i64: 24, 9>}, {pipeline_mode = #tpu.pipeline_mode<synchronous>, transform_indices = @transform_5, window_bounds = array<i64: 8, 1>}, {pipeline_mode = #tpu.pipeline_mode<synchronous>, transform_indices = @transform_6, window_bounds = array<i64: 8, 1>}, {transform_indices = @transform_7, window_bounds = array<i64: 1, 8, 16, 16>}]} {
    %c0 = arith.constant 0 : index
    %c0_0 = arith.constant 0 : index
    %c0_1 = arith.constant 0 : index
    %0 = vector.load %arg1[%c0, %c0_0, %c0_1] : memref<1x4x384xf32, #tpu.memory_space<vmem>>, vector<1x4x384xf32>
    %1 = vector.shape_cast %0 : vector<1x4x384xf32> to vector<4x384xf32>
    %c0_2 = arith.constant 0 : index
    %c0_3 = arith.constant 0 : index
    %2 = vector.load %arg2[%c0_2, %c0_3] : memref<40x4xf32, #tpu.memory_space<vmem>>, vector<40x4xf32>
    %cst = arith.constant dense<0.000000e+00> : vector<40x384xf32>
    %3 = tpu.matmul %2, %1, %cst {dimension_numbers = #tpu.dot_dimension_numbers<[1], [0], [0], [1], [0, 0, 1, 1], [], []>} : vector<40x4xf32>, vector<4x384xf32>, vector<40x384xf32> -> vector<40x384xf32>
    %c0_4 = arith.constant 0 : index
    %c0_5 = arith.constant 0 : index
    %4 = vector.load %arg3[%c0_4, %c0_5] : memref<40x1xf32, #tpu.memory_space<vmem>>, vector<40x1xf32>
    %5 = vector.broadcast %4 : vector<40x1xf32> to vector<40x384xf32>
    %6 = arith.addf %3, %5 : vector<40x384xf32>
    %7 = vector.extract_strided_slice %6 {offsets = [0, 0], sizes = [16, 384], strides = [1, 1]} : vector<40x384xf32> to vector<16x384xf32>
    %8 = tpu.concatenate %1, %7 in 0 : vector<4x384xf32>, vector<16x384xf32> -> vector<20x384xf32>
    %cst_6 = arith.constant 0.000000e+00 : f32
    %9 = vector.broadcast %cst_6 : f32 to vector<8x288xf32>
    %c0_7 = arith.constant 0 : index
    %c0_8 = arith.constant 0 : index
    %10 = vector.load %arg4[%c0_7, %c0_8] : memref<8x180xf32, #tpu.memory_space<vmem>>, vector<8x20xf32>
    %11 = vector.extract_strided_slice %8 {offsets = [0, 0], sizes = [20, 288], strides = [1, 1]} : vector<20x384xf32> to vector<20x288xf32>
    %cst_9 = arith.constant dense<0.000000e+00> : vector<8x288xf32>
    %12 = tpu.matmul %10, %11, %cst_9 {dimension_numbers = #tpu.dot_dimension_numbers<[1], [0], [0], [1], [0, 0, 1, 1], [], []>} : vector<8x20xf32>, vector<20x288xf32>, vector<8x288xf32> -> vector<8x288xf32>
    %13 = arith.addf %9, %12 : vector<8x288xf32>
    %c0_10 = arith.constant 0 : index
    %c20 = arith.constant 20 : index
    %14 = vector.load %arg4[%c0_10, %c20] : memref<8x180xf32, #tpu.memory_space<vmem>>, vector<8x20xf32>
    %15 = vector.extract_strided_slice %8 {offsets = [0, 1], sizes = [20, 288], strides = [1, 1]} : vector<20x384xf32> to vector<20x288xf32>
    %cst_11 = arith.constant dense<0.000000e+00> : vector<8x288xf32>
    %16 = tpu.matmul %14, %15, %cst_11 {dimension_numbers = #tpu.dot_dimension_numbers<[1], [0], [0], [1], [0, 0, 1, 1], [], []>} : vector<8x20xf32>, vector<20x288xf32>, vector<8x288xf32> -> vector<8x288xf32>
    %17 = arith.addf %13, %16 : vector<8x288xf32>
    %c0_12 = arith.constant 0 : index
    %c40 = arith.constant 40 : index
    %18 = vector.load %arg4[%c0_12, %c40] : memref<8x180xf32, #tpu.memory_space<vmem>>, vector<8x20xf32>
    %19 = vector.extract_strided_slice %8 {offsets = [0, 2], sizes = [20, 288], strides = [1, 1]} : vector<20x384xf32> to vector<20x288xf32>
    %cst_13 = arith.constant dense<0.000000e+00> : vector<8x288xf32>
    %20 = tpu.matmul %18, %19, %cst_13 {dimension_numbers = #tpu.dot_dimension_numbers<[1], [0], [0], [1], [0, 0, 1, 1], [], []>} : vector<8x20xf32>, vector<20x288xf32>, vector<8x288xf32> -> vector<8x288xf32>
    %21 = arith.addf %17, %20 : vector<8x288xf32>
    %c0_14 = arith.constant 0 : index
    %c60 = arith.constant 60 : index
    %22 = vector.load %arg4[%c0_14, %c60] : memref<8x180xf32, #tpu.memory_space<vmem>>, vector<8x20xf32>
    %23 = vector.extract_strided_slice %8 {offsets = [0, 18], sizes = [20, 288], strides = [1, 1]} : vector<20x384xf32> to vector<20x288xf32>
    %cst_15 = arith.constant dense<0.000000e+00> : vector<8x288xf32>
    %24 = tpu.matmul %22, %23, %cst_15 {dimension_numbers = #tpu.dot_dimension_numbers<[1], [0], [0], [1], [0, 0, 1, 1], [], []>} : vector<8x20xf32>, vector<20x288xf32>, vector<8x288xf32> -> vector<8x288xf32>
    %25 = arith.addf %21, %24 : vector<8x288xf32>
    %c0_16 = arith.constant 0 : index
    %c80 = arith.constant 80 : index
    %26 = vector.load %arg4[%c0_16, %c80] : memref<8x180xf32, #tpu.memory_space<vmem>>, vector<8x20xf32>
    %27 = vector.extract_strided_slice %8 {offsets = [0, 19], sizes = [20, 288], strides = [1, 1]} : vector<20x384xf32> to vector<20x288xf32>
    %cst_17 = arith.constant dense<0.000000e+00> : vector<8x288xf32>
    %28 = tpu.matmul %26, %27, %cst_17 {dimension_numbers = #tpu.dot_dimension_numbers<[1], [0], [0], [1], [0, 0, 1, 1], [], []>} : vector<8x20xf32>, vector<20x288xf32>, vector<8x288xf32> -> vector<8x288xf32>
    %29 = arith.addf %25, %28 : vector<8x288xf32>
    %c0_18 = arith.constant 0 : index
    %c100 = arith.constant 100 : index
    %30 = vector.load %arg4[%c0_18, %c100] : memref<8x180xf32, #tpu.memory_space<vmem>>, vector<8x20xf32>
    %31 = vector.extract_strided_slice %8 {offsets = [0, 20], sizes = [20, 288], strides = [1, 1]} : vector<20x384xf32> to vector<20x288xf32>
    %cst_19 = arith.constant dense<0.000000e+00> : vector<8x288xf32>
    %32 = tpu.matmul %30, %31, %cst_19 {dimension_numbers = #tpu.dot_dimension_numbers<[1], [0], [0], [1], [0, 0, 1, 1], [], []>} : vector<8x20xf32>, vector<20x288xf32>, vector<8x288xf32> -> vector<8x288xf32>
    %33 = arith.addf %29, %32 : vector<8x288xf32>
    %c0_20 = arith.constant 0 : index
    %c120 = arith.constant 120 : index
    %34 = vector.load %arg4[%c0_20, %c120] : memref<8x180xf32, #tpu.memory_space<vmem>>, vector<8x20xf32>
    %35 = vector.extract_strided_slice %8 {offsets = [0, 36], sizes = [20, 288], strides = [1, 1]} : vector<20x384xf32> to vector<20x288xf32>
    %cst_21 = arith.constant dense<0.000000e+00> : vector<8x288xf32>
    %36 = tpu.matmul %34, %35, %cst_21 {dimension_numbers = #tpu.dot_dimension_numbers<[1], [0], [0], [1], [0, 0, 1, 1], [], []>} : vector<8x20xf32>, vector<20x288xf32>, vector<8x288xf32> -> vector<8x288xf32>
    %37 = arith.addf %33, %36 : vector<8x288xf32>
    %c0_22 = arith.constant 0 : index
    %c140 = arith.constant 140 : index
    %38 = vector.load %arg4[%c0_22, %c140] : memref<8x180xf32, #tpu.memory_space<vmem>>, vector<8x20xf32>
    %39 = vector.extract_strided_slice %8 {offsets = [0, 37], sizes = [20, 288], strides = [1, 1]} : vector<20x384xf32> to vector<20x288xf32>
    %cst_23 = arith.constant dense<0.000000e+00> : vector<8x288xf32>
    %40 = tpu.matmul %38, %39, %cst_23 {dimension_numbers = #tpu.dot_dimension_numbers<[1], [0], [0], [1], [0, 0, 1, 1], [], []>} : vector<8x20xf32>, vector<20x288xf32>, vector<8x288xf32> -> vector<8x288xf32>
    %41 = arith.addf %37, %40 : vector<8x288xf32>
    %c0_24 = arith.constant 0 : index
    %c160 = arith.constant 160 : index
    %42 = vector.load %arg4[%c0_24, %c160] : memref<8x180xf32, #tpu.memory_space<vmem>>, vector<8x20xf32>
    %43 = vector.extract_strided_slice %8 {offsets = [0, 38], sizes = [20, 288], strides = [1, 1]} : vector<20x384xf32> to vector<20x288xf32>
    %cst_25 = arith.constant dense<0.000000e+00> : vector<8x288xf32>
    %44 = tpu.matmul %42, %43, %cst_25 {dimension_numbers = #tpu.dot_dimension_numbers<[1], [0], [0], [1], [0, 0, 1, 1], [], []>} : vector<8x20xf32>, vector<20x288xf32>, vector<8x288xf32> -> vector<8x288xf32>
    %45 = arith.addf %41, %44 : vector<8x288xf32>
    %46 = vector.extract_strided_slice %6 {offsets = [16, 0], sizes = [24, 384], strides = [1, 1]} : vector<40x384xf32> to vector<24x384xf32>
    %cst_26 = arith.constant 0.000000e+00 : f32
    %47 = vector.broadcast %cst_26 : f32 to vector<24x288xf32>
    %c0_27 = arith.constant 0 : index
    %c0_28 = arith.constant 0 : index
    %48 = vector.load %arg5[%c0_27, %c0_28] : memref<24x9xf32, #tpu.memory_space<vmem>>, vector<24x1xf32>
    %49 = vector.extract_strided_slice %46 {offsets = [0, 0], sizes = [24, 288], strides = [1, 1]} : vector<24x384xf32> to vector<24x288xf32>
    %50 = vector.broadcast %48 : vector<24x1xf32> to vector<24x288xf32>
    %51 = arith.mulf %50, %49 : vector<24x288xf32>
    %52 = arith.addf %47, %51 : vector<24x288xf32>
    %c0_29 = arith.constant 0 : index
    %c1 = arith.constant 1 : index
    %53 = vector.load %arg5[%c0_29, %c1] : memref<24x9xf32, #tpu.memory_space<vmem>>, vector<24x1xf32>
    %54 = vector.extract_strided_slice %46 {offsets = [0, 1], sizes = [24, 288], strides = [1, 1]} : vector<24x384xf32> to vector<24x288xf32>
    %55 = vector.broadcast %53 : vector<24x1xf32> to vector<24x288xf32>
    %56 = arith.mulf %55, %54 : vector<24x288xf32>
    %57 = arith.addf %52, %56 : vector<24x288xf32>
    %c0_30 = arith.constant 0 : index
    %c2 = arith.constant 2 : index
    %58 = vector.load %arg5[%c0_30, %c2] : memref<24x9xf32, #tpu.memory_space<vmem>>, vector<24x1xf32>
    %59 = vector.extract_strided_slice %46 {offsets = [0, 2], sizes = [24, 288], strides = [1, 1]} : vector<24x384xf32> to vector<24x288xf32>
    %60 = vector.broadcast %58 : vector<24x1xf32> to vector<24x288xf32>
    %61 = arith.mulf %60, %59 : vector<24x288xf32>
    %62 = arith.addf %57, %61 : vector<24x288xf32>
    %c0_31 = arith.constant 0 : index
    %c3 = arith.constant 3 : index
    %63 = vector.load %arg5[%c0_31, %c3] : memref<24x9xf32, #tpu.memory_space<vmem>>, vector<24x1xf32>
    %64 = vector.extract_strided_slice %46 {offsets = [0, 18], sizes = [24, 288], strides = [1, 1]} : vector<24x384xf32> to vector<24x288xf32>
    %65 = vector.broadcast %63 : vector<24x1xf32> to vector<24x288xf32>
    %66 = arith.mulf %65, %64 : vector<24x288xf32>
    %67 = arith.addf %62, %66 : vector<24x288xf32>
    %c0_32 = arith.constant 0 : index
    %c4 = arith.constant 4 : index
    %68 = vector.load %arg5[%c0_32, %c4] : memref<24x9xf32, #tpu.memory_space<vmem>>, vector<24x1xf32>
    %69 = vector.extract_strided_slice %46 {offsets = [0, 19], sizes = [24, 288], strides = [1, 1]} : vector<24x384xf32> to vector<24x288xf32>
    %70 = vector.broadcast %68 : vector<24x1xf32> to vector<24x288xf32>
    %71 = arith.mulf %70, %69 : vector<24x288xf32>
    %72 = arith.addf %67, %71 : vector<24x288xf32>
    %c0_33 = arith.constant 0 : index
    %c5 = arith.constant 5 : index
    %73 = vector.load %arg5[%c0_33, %c5] : memref<24x9xf32, #tpu.memory_space<vmem>>, vector<24x1xf32>
    %74 = vector.extract_strided_slice %46 {offsets = [0, 20], sizes = [24, 288], strides = [1, 1]} : vector<24x384xf32> to vector<24x288xf32>
    %75 = vector.broadcast %73 : vector<24x1xf32> to vector<24x288xf32>
    %76 = arith.mulf %75, %74 : vector<24x288xf32>
    %77 = arith.addf %72, %76 : vector<24x288xf32>
    %c0_34 = arith.constant 0 : index
    %c6 = arith.constant 6 : index
    %78 = vector.load %arg5[%c0_34, %c6] : memref<24x9xf32, #tpu.memory_space<vmem>>, vector<24x1xf32>
    %79 = vector.extract_strided_slice %46 {offsets = [0, 36], sizes = [24, 288], strides = [1, 1]} : vector<24x384xf32> to vector<24x288xf32>
    %80 = vector.broadcast %78 : vector<24x1xf32> to vector<24x288xf32>
    %81 = arith.mulf %80, %79 : vector<24x288xf32>
    %82 = arith.addf %77, %81 : vector<24x288xf32>
    %c0_35 = arith.constant 0 : index
    %c7 = arith.constant 7 : index
    %83 = vector.load %arg5[%c0_35, %c7] : memref<24x9xf32, #tpu.memory_space<vmem>>, vector<24x1xf32>
    %84 = vector.extract_strided_slice %46 {offsets = [0, 37], sizes = [24, 288], strides = [1, 1]} : vector<24x384xf32> to vector<24x288xf32>
    %85 = vector.broadcast %83 : vector<24x1xf32> to vector<24x288xf32>
    %86 = arith.mulf %85, %84 : vector<24x288xf32>
    %87 = arith.addf %82, %86 : vector<24x288xf32>
    %c0_36 = arith.constant 0 : index
    %c8 = arith.constant 8 : index
    %88 = vector.load %arg5[%c0_36, %c8] : memref<24x9xf32, #tpu.memory_space<vmem>>, vector<24x1xf32>
    %89 = vector.extract_strided_slice %46 {offsets = [0, 38], sizes = [24, 288], strides = [1, 1]} : vector<24x384xf32> to vector<24x288xf32>
    %90 = vector.broadcast %88 : vector<24x1xf32> to vector<24x288xf32>
    %91 = arith.mulf %90, %89 : vector<24x288xf32>
    %92 = arith.addf %87, %91 : vector<24x288xf32>
    %93 = vector.extract_strided_slice %92 {offsets = [0, 0], sizes = [8, 288], strides = [1, 1]} : vector<24x288xf32> to vector<8x288xf32>
    %94 = arith.addf %45, %93 : vector<8x288xf32>
    %95 = vector.extract_strided_slice %92 {offsets = [8, 0], sizes = [8, 288], strides = [1, 1]} : vector<24x288xf32> to vector<8x288xf32>
    %96 = arith.addf %94, %95 : vector<8x288xf32>
    %97 = vector.extract_strided_slice %92 {offsets = [16, 0], sizes = [8, 288], strides = [1, 1]} : vector<24x288xf32> to vector<8x288xf32>
    %98 = arith.addf %96, %97 : vector<8x288xf32>
    %c0_37 = arith.constant 0 : index
    %c0_38 = arith.constant 0 : index
    %99 = vector.load %arg6[%c0_37, %c0_38] : memref<8x1xf32, #tpu.memory_space<vmem>>, vector<8x1xf32>
    %100 = vector.broadcast %99 : vector<8x1xf32> to vector<8x288xf32>
    %101 = arith.addf %98, %100 : vector<8x288xf32>
    %cst_39 = arith.constant 0.000000e+00 : f32
    %102 = vector.broadcast %cst_39 : f32 to vector<8x288xf32>
    %103 = arith.cmpf oge, %101, %102 : vector<8x288xf32>
    %c0_40 = arith.constant 0 : index
    %c0_41 = arith.constant 0 : index
    %104 = vector.load %arg7[%c0_40, %c0_41] : memref<8x1xf32, #tpu.memory_space<vmem>>, vector<8x1xf32>
    %105 = vector.broadcast %104 : vector<8x1xf32> to vector<8x288xf32>
    %106 = arith.mulf %101, %105 : vector<8x288xf32>
    %107 = arith.select %103, %101, %106 : vector<8x288xi1>, vector<8x288xf32>
    %108 = vector.extract_strided_slice %107 {offsets = [0, 0], sizes = [8, 16], strides = [1, 1]} : vector<8x288xf32> to vector<8x16xf32>
    %c0_42 = arith.constant 0 : index
    %c0_43 = arith.constant 0 : index
    %c0_44 = arith.constant 0 : index
    %c0_45 = arith.constant 0 : index
    %109 = vector.load %arg8[%c0_42, %c0_43, %c0_44, %c0_45] : memref<1x8x16x16xf32, #tpu.memory_space<vmem>>, vector<1x8x1x16xf32>
    %110 = vector.shape_cast %109 : vector<1x8x1x16xf32> to vector<8x16xf32>
    %111 = vector.shape_cast %108 : vector<8x16xf32> to vector<1x8x1x16xf32>
    tpu.vector_store %arg8[%c0_42, %c0_43, %c0_44, %c0_45], %111 {strides = array<i32>} : memref<1x8x16x16xf32, #tpu.memory_space<vmem>>, vector<1x8x1x16xf32>,
    %112 = vector.extract_strided_slice %107 {offsets = [0, 18], sizes = [8, 16], strides = [1, 1]} : vector<8x288xf32> to vector<8x16xf32>
    %c0_46 = arith.constant 0 : index
    %c0_47 = arith.constant 0 : index
    %c1_48 = arith.constant 1 : index
    %c0_49 = arith.constant 0 : index
    %113 = vector.load %arg8[%c0_46, %c0_47, %c1_48, %c0_49] : memref<1x8x16x16xf32, #tpu.memory_space<vmem>>, vector<1x8x1x16xf32>
    %114 = vector.shape_cast %113 : vector<1x8x1x16xf32> to vector<8x16xf32>
    %115 = vector.shape_cast %112 : vector<8x16xf32> to vector<1x8x1x16xf32>
    tpu.vector_store %arg8[%c0_46, %c0_47, %c1_48, %c0_49], %115 {strides = array<i32>} : memref<1x8x16x16xf32, #tpu.memory_space<vmem>>, vector<1x8x1x16xf32>,
    %116 = vector.extract_strided_slice %107 {offsets = [0, 36], sizes = [8, 16], strides = [1, 1]} : vector<8x288xf32> to vector<8x16xf32>
    %c0_50 = arith.constant 0 : index
    %c0_51 = arith.constant 0 : index
    %c2_52 = arith.constant 2 : index
    %c0_53 = arith.constant 0 : index
    %117 = vector.load %arg8[%c0_50, %c0_51, %c2_52, %c0_53] : memref<1x8x16x16xf32, #tpu.memory_space<vmem>>, vector<1x8x1x16xf32>
    %118 = vector.shape_cast %117 : vector<1x8x1x16xf32> to vector<8x16xf32>
    %119 = vector.shape_cast %116 : vector<8x16xf32> to vector<1x8x1x16xf32>
    tpu.vector_store %arg8[%c0_50, %c0_51, %c2_52, %c0_53], %119 {strides = array<i32>} : memref<1x8x16x16xf32, #tpu.memory_space<vmem>>, vector<1x8x1x16xf32>,
    %120 = vector.extract_strided_slice %107 {offsets = [0, 54], sizes = [8, 16], strides = [1, 1]} : vector<8x288xf32> to vector<8x16xf32>
    %c0_54 = arith.constant 0 : index
    %c0_55 = arith.constant 0 : index
    %c3_56 = arith.constant 3 : index
    %c0_57 = arith.constant 0 : index
    %121 = vector.load %arg8[%c0_54, %c0_55, %c3_56, %c0_57] : memref<1x8x16x16xf32, #tpu.memory_space<vmem>>, vector<1x8x1x16xf32>
    %122 = vector.shape_cast %121 : vector<1x8x1x16xf32> to vector<8x16xf32>
    %123 = vector.shape_cast %120 : vector<8x16xf32> to vector<1x8x1x16xf32>
    tpu.vector_store %arg8[%c0_54, %c0_55, %c3_56, %c0_57], %123 {strides = array<i32>} : memref<1x8x16x16xf32, #tpu.memory_space<vmem>>, vector<1x8x1x16xf32>,
    %124 = vector.extract_strided_slice %107 {offsets = [0, 72], sizes = [8, 16], strides = [1, 1]} : vector<8x288xf32> to vector<8x16xf32>
    %c0_58 = arith.constant 0 : index
    %c0_59 = arith.constant 0 : index
    %c4_60 = arith.constant 4 : index
    %c0_61 = arith.constant 0 : index
    %125 = vector.load %arg8[%c0_58, %c0_59, %c4_60, %c0_61] : memref<1x8x16x16xf32, #tpu.memory_space<vmem>>, vector<1x8x1x16xf32>
    %126 = vector.shape_cast %125 : vector<1x8x1x16xf32> to vector<8x16xf32>
    %127 = vector.shape_cast %124 : vector<8x16xf32> to vector<1x8x1x16xf32>
    tpu.vector_store %arg8[%c0_58, %c0_59, %c4_60, %c0_61], %127 {strides = array<i32>} : memref<1x8x16x16xf32, #tpu.memory_space<vmem>>, vector<1x8x1x16xf32>,
    %128 = vector.extract_strided_slice %107 {offsets = [0, 90], sizes = [8, 16], strides = [1, 1]} : vector<8x288xf32> to vector<8x16xf32>
    %c0_62 = arith.constant 0 : index
    %c0_63 = arith.constant 0 : index
    %c5_64 = arith.constant 5 : index
    %c0_65 = arith.constant 0 : index
    %129 = vector.load %arg8[%c0_62, %c0_63, %c5_64, %c0_65] : memref<1x8x16x16xf32, #tpu.memory_space<vmem>>, vector<1x8x1x16xf32>
    %130 = vector.shape_cast %129 : vector<1x8x1x16xf32> to vector<8x16xf32>
    %131 = vector.shape_cast %128 : vector<8x16xf32> to vector<1x8x1x16xf32>
    tpu.vector_store %arg8[%c0_62, %c0_63, %c5_64, %c0_65], %131 {strides = array<i32>} : memref<1x8x16x16xf32, #tpu.memory_space<vmem>>, vector<1x8x1x16xf32>,
    %132 = vector.extract_strided_slice %107 {offsets = [0, 108], sizes = [8, 16], strides = [1, 1]} : vector<8x288xf32> to vector<8x16xf32>
    %c0_66 = arith.constant 0 : index
    %c0_67 = arith.constant 0 : index
    %c6_68 = arith.constant 6 : index
    %c0_69 = arith.constant 0 : index
    %133 = vector.load %arg8[%c0_66, %c0_67, %c6_68, %c0_69] : memref<1x8x16x16xf32, #tpu.memory_space<vmem>>, vector<1x8x1x16xf32>
    %134 = vector.shape_cast %133 : vector<1x8x1x16xf32> to vector<8x16xf32>
    %135 = vector.shape_cast %132 : vector<8x16xf32> to vector<1x8x1x16xf32>
    tpu.vector_store %arg8[%c0_66, %c0_67, %c6_68, %c0_69], %135 {strides = array<i32>} : memref<1x8x16x16xf32, #tpu.memory_space<vmem>>, vector<1x8x1x16xf32>,
    %136 = vector.extract_strided_slice %107 {offsets = [0, 126], sizes = [8, 16], strides = [1, 1]} : vector<8x288xf32> to vector<8x16xf32>
    %c0_70 = arith.constant 0 : index
    %c0_71 = arith.constant 0 : index
    %c7_72 = arith.constant 7 : index
    %c0_73 = arith.constant 0 : index
    %137 = vector.load %arg8[%c0_70, %c0_71, %c7_72, %c0_73] : memref<1x8x16x16xf32, #tpu.memory_space<vmem>>, vector<1x8x1x16xf32>
    %138 = vector.shape_cast %137 : vector<1x8x1x16xf32> to vector<8x16xf32>
    %139 = vector.shape_cast %136 : vector<8x16xf32> to vector<1x8x1x16xf32>
    tpu.vector_store %arg8[%c0_70, %c0_71, %c7_72, %c0_73], %139 {strides = array<i32>} : memref<1x8x16x16xf32, #tpu.memory_space<vmem>>, vector<1x8x1x16xf32>,
    %140 = vector.extract_strided_slice %107 {offsets = [0, 144], sizes = [8, 16], strides = [1, 1]} : vector<8x288xf32> to vector<8x16xf32>
    %c0_74 = arith.constant 0 : index
    %c0_75 = arith.constant 0 : index
    %c8_76 = arith.constant 8 : index
    %c0_77 = arith.constant 0 : index
    %141 = vector.load %arg8[%c0_74, %c0_75, %c8_76, %c0_77] : memref<1x8x16x16xf32, #tpu.memory_space<vmem>>, vector<1x8x1x16xf32>
    %142 = vector.shape_cast %141 : vector<1x8x1x16xf32> to vector<8x16xf32>
    %143 = vector.shape_cast %140 : vector<8x16xf32> to vector<1x8x1x16xf32>
    tpu.vector_store %arg8[%c0_74, %c0_75, %c8_76, %c0_77], %143 {strides = array<i32>} : memref<1x8x16x16xf32, #tpu.memory_space<vmem>>, vector<1x8x1x16xf32>,
    %144 = vector.extract_strided_slice %107 {offsets = [0, 162], sizes = [8, 16], strides = [1, 1]} : vector<8x288xf32> to vector<8x16xf32>
    %c0_78 = arith.constant 0 : index
    %c0_79 = arith.constant 0 : index
    %c9 = arith.constant 9 : index
    %c0_80 = arith.constant 0 : index
    %145 = vector.load %arg8[%c0_78, %c0_79, %c9, %c0_80] : memref<1x8x16x16xf32, #tpu.memory_space<vmem>>, vector<1x8x1x16xf32>
    %146 = vector.shape_cast %145 : vector<1x8x1x16xf32> to vector<8x16xf32>
    %147 = vector.shape_cast %144 : vector<8x16xf32> to vector<1x8x1x16xf32>
    tpu.vector_store %arg8[%c0_78, %c0_79, %c9, %c0_80], %147 {strides = array<i32>} : memref<1x8x16x16xf32, #tpu.memory_space<vmem>>, vector<1x8x1x16xf32>,
    %148 = vector.extract_strided_slice %107 {offsets = [0, 180], sizes = [8, 16], strides = [1, 1]} : vector<8x288xf32> to vector<8x16xf32>
    %c0_81 = arith.constant 0 : index
    %c0_82 = arith.constant 0 : index
    %c10 = arith.constant 10 : index
    %c0_83 = arith.constant 0 : index
    %149 = vector.load %arg8[%c0_81, %c0_82, %c10, %c0_83] : memref<1x8x16x16xf32, #tpu.memory_space<vmem>>, vector<1x8x1x16xf32>
    %150 = vector.shape_cast %149 : vector<1x8x1x16xf32> to vector<8x16xf32>
    %151 = vector.shape_cast %148 : vector<8x16xf32> to vector<1x8x1x16xf32>
    tpu.vector_store %arg8[%c0_81, %c0_82, %c10, %c0_83], %151 {strides = array<i32>} : memref<1x8x16x16xf32, #tpu.memory_space<vmem>>, vector<1x8x1x16xf32>,
    %152 = vector.extract_strided_slice %107 {offsets = [0, 198], sizes = [8, 16], strides = [1, 1]} : vector<8x288xf32> to vector<8x16xf32>
    %c0_84 = arith.constant 0 : index
    %c0_85 = arith.constant 0 : index
    %c11 = arith.constant 11 : index
    %c0_86 = arith.constant 0 : index
    %153 = vector.load %arg8[%c0_84, %c0_85, %c11, %c0_86] : memref<1x8x16x16xf32, #tpu.memory_space<vmem>>, vector<1x8x1x16xf32>
    %154 = vector.shape_cast %153 : vector<1x8x1x16xf32> to vector<8x16xf32>
    %155 = vector.shape_cast %152 : vector<8x16xf32> to vector<1x8x1x16xf32>
    tpu.vector_store %arg8[%c0_84, %c0_85, %c11, %c0_86], %155 {strides = array<i32>} : memref<1x8x16x16xf32, #tpu.memory_space<vmem>>, vector<1x8x1x16xf32>,
    %156 = vector.extract_strided_slice %107 {offsets = [0, 216], sizes = [8, 16], strides = [1, 1]} : vector<8x288xf32> to vector<8x16xf32>
    %c0_87 = arith.constant 0 : index
    %c0_88 = arith.constant 0 : index
    %c12 = arith.constant 12 : index
    %c0_89 = arith.constant 0 : index
    %157 = vector.load %arg8[%c0_87, %c0_88, %c12, %c0_89] : memref<1x8x16x16xf32, #tpu.memory_space<vmem>>, vector<1x8x1x16xf32>
    %158 = vector.shape_cast %157 : vector<1x8x1x16xf32> to vector<8x16xf32>
    %159 = vector.shape_cast %156 : vector<8x16xf32> to vector<1x8x1x16xf32>
    tpu.vector_store %arg8[%c0_87, %c0_88, %c12, %c0_89], %159 {strides = array<i32>} : memref<1x8x16x16xf32, #tpu.memory_space<vmem>>, vector<1x8x1x16xf32>,
    %160 = vector.extract_strided_slice %107 {offsets = [0, 234], sizes = [8, 16], strides = [1, 1]} : vector<8x288xf32> to vector<8x16xf32>
    %c0_90 = arith.constant 0 : index
    %c0_91 = arith.constant 0 : index
    %c13 = arith.constant 13 : index
    %c0_92 = arith.constant 0 : index
    %161 = vector.load %arg8[%c0_90, %c0_91, %c13, %c0_92] : memref<1x8x16x16xf32, #tpu.memory_space<vmem>>, vector<1x8x1x16xf32>
    %162 = vector.shape_cast %161 : vector<1x8x1x16xf32> to vector<8x16xf32>
    %163 = vector.shape_cast %160 : vector<8x16xf32> to vector<1x8x1x16xf32>
    tpu.vector_store %arg8[%c0_90, %c0_91, %c13, %c0_92], %163 {strides = array<i32>} : memref<1x8x16x16xf32, #tpu.memory_space<vmem>>, vector<1x8x1x16xf32>,
    %164 = vector.extract_strided_slice %107 {offsets = [0, 252], sizes = [8, 16], strides = [1, 1]} : vector<8x288xf32> to vector<8x16xf32>
    %c0_93 = arith.constant 0 : index
    %c0_94 = arith.constant 0 : index
    %c14 = arith.constant 14 : index
    %c0_95 = arith.constant 0 : index
    %165 = vector.load %arg8[%c0_93, %c0_94, %c14, %c0_95] : memref<1x8x16x16xf32, #tpu.memory_space<vmem>>, vector<1x8x1x16xf32>
    %166 = vector.shape_cast %165 : vector<1x8x1x16xf32> to vector<8x16xf32>
    %167 = vector.shape_cast %164 : vector<8x16xf32> to vector<1x8x1x16xf32>
    tpu.vector_store %arg8[%c0_93, %c0_94, %c14, %c0_95], %167 {strides = array<i32>} : memref<1x8x16x16xf32, #tpu.memory_space<vmem>>, vector<1x8x1x16xf32>,
    %168 = vector.extract_strided_slice %107 {offsets = [0, 270], sizes = [8, 16], strides = [1, 1]} : vector<8x288xf32> to vector<8x16xf32>
    %c0_96 = arith.constant 0 : index
    %c0_97 = arith.constant 0 : index
    %c15 = arith.constant 15 : index
    %c0_98 = arith.constant 0 : index
    %169 = vector.load %arg8[%c0_96, %c0_97, %c15, %c0_98] : memref<1x8x16x16xf32, #tpu.memory_space<vmem>>, vector<1x8x1x16xf32>
    %170 = vector.shape_cast %169 : vector<1x8x1x16xf32> to vector<8x16xf32>
    %171 = vector.shape_cast %168 : vector<8x16xf32> to vector<1x8x1x16xf32>
    tpu.vector_store %arg8[%c0_96, %c0_97, %c15, %c0_98], %171 {strides = array<i32>} : memref<1x8x16x16xf32, #tpu.memory_space<vmem>>, vector<1x8x1x16xf32>,
    return
  }
  func.func @transform_0(%arg0: i32) -> (i32, i32, i32) {
    %c0_i32 = arith.constant 0 : i32
    %c0_i32_0 = arith.constant 0 : i32
    %c0_i32_1 = arith.constant 0 : i32
    return %arg0, %c0_i32, %c0_i32_0 : i32, i32, i32
  }
  func.func @transform_1(%arg0: i32) -> (i32, i32) {
    %c0_i32 = arith.constant 0 : i32
    %c0_i32_0 = arith.constant 0 : i32
    %c0_i32_1 = arith.constant 0 : i32
    return %c0_i32, %c0_i32_0 : i32, i32
  }
  func.func @transform_2(%arg0: i32) -> (i32, i32) {
    %c0_i32 = arith.constant 0 : i32
    %c0_i32_0 = arith.constant 0 : i32
    %c0_i32_1 = arith.constant 0 : i32
    return %c0_i32, %c0_i32_0 : i32, i32
  }
  func.func @transform_3(%arg0: i32) -> (i32, i32) {
    %c0_i32 = arith.constant 0 : i32
    %c0_i32_0 = arith.constant 0 : i32
    %c0_i32_1 = arith.constant 0 : i32
    return %c0_i32, %c0_i32_0 : i32, i32
  }
  func.func @transform_4(%arg0: i32) -> (i32, i32) {
    %c0_i32 = arith.constant 0 : i32
    %c0_i32_0 = arith.constant 0 : i32
    %c0_i32_1 = arith.constant 0 : i32
    return %c0_i32, %c0_i32_0 : i32, i32
  }
  func.func @transform_5(%arg0: i32) -> (i32, i32) {
    %c0_i32 = arith.constant 0 : i32
    %c0_i32_0 = arith.constant 0 : i32
    %c0_i32_1 = arith.constant 0 : i32
    return %c0_i32, %c0_i32_0 : i32, i32
  }
  func.func @transform_6(%arg0: i32) -> (i32, i32) {
    %c0_i32 = arith.constant 0 : i32
    %c0_i32_0 = arith.constant 0 : i32
    %c0_i32_1 = arith.constant 0 : i32
    return %c0_i32, %c0_i32_0 : i32, i32
  }
  func.func @transform_7(%arg0: i32) -> (i32, i32, i32, i32) {
    %c0_i32 = arith.constant 0 : i32
    %c0_i32_0 = arith.constant 0 : i32
    %c0_i32_1 = arith.constant 0 : i32
    %c0_i32_2 = arith.constant 0 : i32
    return %arg0, %c0_i32, %c0_i32_0, %c0_i32_1 : i32, i32, i32, i32
  }
}

</mosaic_0001>

<bundles_post_ra>
// kernel: squeeze.5
= control target key start
LH: loop header
LB: loop body
LE: loop exit
PB: predicated region body
PF: predicated region fallthrough
CT: control target
= control target key end

     0   :  { %vm16_vm0 = vcmask 64512   ;;  %s61_s0 = inlined_call_operand.vmem [shape: f32[8,3,3], index: 0, kind: input, shape index: {}]   ;;  %s62_s1 = inlined_call_operand.vmem [shape: f32[8,9], index: 1, kind: output, shape index: {}]  }
   0x1   :  { %v29_v0 = vld [vmem:[%s61_s0 + $0x8] sm:$0xf]  ;;  %v30_v1 = vld [vmem:[%s61_s0 + $0x4] sm:$0xf]  ;;  %v13_v2 = vld [vmem:[%s61_s0] sm:$0xf] }
   0x2   :  { %8 = vst [vmem:[#allocation0 + $0x10] sm:$0xf] %v29_v0  ;;  %12 = vst [vmem:[#allocation0 + $0x8] sm:$0xf] %v30_v1 }
   0x3   :  { %14 = vst [vmem:[#allocation0] sm:$0xf] %v13_v2 }
   0x9   :  { %v19_v4 = vld [vmem:[#allocation0 + $0x8] sm:$0x7]   ;;  %v24_v5 = vld [vmem:[#allocation0 + $0x10] sm:$0x7]  }
   0xa   :  { %v15_v3 = vld [vmem:[#allocation0] sm:$0x7]   ;;  %31 = vst.msk [vmem:[%s62_s1 + $0x3] sm:$0x7] %vm16_vm0, %v19_v4   ;;  %32 = vst.msk [vmem:[%s62_s1 + $0x6] sm:$0x7] %vm16_vm0, %v24_v5  }
   0xb   :  { %17 = vst.msk [vmem:[%s62_s1] sm:$0x7] %vm16_vm0, %v15_v3  }

// kernel: ecb_forward.1
= control target key start
LH: loop header
LB: loop body
LE: loop exit
PB: predicated region body
PF: predicated region fallthrough
CT: control target
= control target key end

     0   :  { %12 = vsyncpa [#allocation3], 0  ;;  %s6758_s0 = inlined_call_operand.vmem [shape: f32[2,4,384], index: 0, kind: input, shape index: {}]   ;;  %s6759_s1 = inlined_call_operand.vmem [shape: f32[40,4], index: 1, kind: input, shape index: {}]   ;;  %s6760_s2 = inlined_call_operand.vmem [shape: f32[40,1], index: 2, kind: input, shape index: {}]   ;;  %s6761_s3 = inlined_call_operand.vmem [shape: f32[8,180], index: 3, kind: input, shape index: {}]   ;;  %s6762_s4 = inlined_call_operand.vmem [shape: f32[24,9], index: 4, kind: input, shape index: {}]   ;;  %s6763_s5 = inlined_call_operand.vmem [shape: f32[8,1], index: 5, kind: input, shape index: {}]   ;;  %s6764_s6 = inlined_call_operand.vmem [shape: f32[8,1], index: 6, kind: input, shape index: {}]   ;;  %s6765_s7 = inlined_call_operand.hbm [shape: f32[2,8,16,16], index: 7, kind: output, shape index: {}]  }
   0x1   :  { %14 = vsyncpa [#allocation3 + $0x1], 0  ;;  %s4593_s24 = smov 0   ;;  %s4595_s25 = smov 0  }
   0x2   :  { %s4597_s26 = smov 0   ;;  %s4599_s27 = smov 0  }
   0x3 LB: > { %s4614_s28 = sadd.s32 4294967295, %s4508_s27   ;;  %s3931_s29 = sadd.s32 4294967294, %s4508_s27   ;;  %s4508_s27 = sphi %s4599_s27, %s6931_s27   ;;  %s4504_s26 = sphi %s4597_s26, %s6930_s26   ;;  %s4500_s25 = sphi %s4595_s25, %s6929_s25   ;;  %s4496_s24 = sphi %s4593_s24, %s6928_s24  }
   0x4   : > { %s4618_s30 = sadd.s32 1, %s4508_s27   ;;  %s179_s8 = sadd.s32 1, %s4504_s26 }
   0x5   : > { %s176_s9 = ssub.s32 %s4508_s27, %s4618_s30  ;;  %p189_p0 = scmp.ne.s32.totalorder %s4504_s26, %s4500_s25 }
   0x6   : > { %p177_p1 = scmp.eq.s32.totalorder %s176_s9, 0  ;;  %p190_p2 = scmp.eq.s32.totalorder %s4614_s28, 1 }
   0x7   : > { %p195_p3 = scmp.ne.s32.totalorder %s4500_s25, %s4496_s24  ;;  %p196_p4 = scmp.eq.s32.totalorder %s3931_s29, 1 }
   0x8   : > { %s4629_s10 = scalar_select %p177_p1, %s4504_s26, %s179_s8  }
   0x9   : > { %p4631_p5 = por %p190_p2, %p189_p0  ;;  %p4635_p6 = por %p196_p4, %p195_p3 }
   0xa   : > { %p3934_p7 = scmp.ge.s32.totalorder %s4508_s27, 1  ;;  %p240_p8 = scmp.lt.s32.totalorder %s4508_s27, 3 }
   0xc   : > { %p241_p9 = pnand %p3934_p7, %p240_p8 }
   0xe   : > { %244 = sbr.rel (%p241_p9) target bundleno = 1418 (0x58a), region = 48 }
  0x15   : > { %p272_p10 = scmp.lt.s32.totalorder %s4614_s28, 1  ;;  %v6770_v0 = vmov 0.0   ;;  %vm4511_vm0 = vmmov 0   ;;  %v6766_v1 = vmov 0   ;;  %v286_v2 = vld [vmem:[%s6760_s2 + $0x10] sm:$0xff]  ;;  %v287_v3 = vld [vmem:[%s6760_s2 + $0x18] sm:$0xff] }
  0x16   : > { %4043 = vmatprep.subr.mxu1 %v6770_v0  ;;  %4045 = vmatprep.mubr.msk.f32.mxu1 %vm4511_vm0, %v6770_v0  ;;  %v284_v4 = vld [vmem:[%s6760_s2] sm:$0xff]  ;;  %vm333_vm1 = vcmask 1043456   ;;  %vm317_vm2 = vcmask 31744   ;;  %v285_v6 = vld [vmem:[%s6760_s2 + $0x8] sm:$0xff]  ;;  %s4513_s18 = smov 108   ;;  %v281_v13 = vld [vmem:[%s6759_s1 + $0x10] sm:$0xff] }
  0x17   : > { %s273_s13 = scalar_select %p272_p10, %s4614_s28, 1  ;;  %404 = vmatprep.mubr.f32.mxu0 %v6770_v0  ;;  %4303 = vset.pattern.permute.xlu1 %v6766_v1  ;;  %v279_v5 = vld [vmem:[%s6759_s1] sm:$0xff]  ;;  %v280_v11 = vld [vmem:[%s6759_s1 + $0x8] sm:$0xff]  ;;  %v282_v14 = vld [vmem:[%s6759_s1 + $0x18] sm:$0xff]  ;;  %v4517_v15 = vmov 1   ;;  %v4522_v21 = vmov 2  }
  0x18   : > { %301 = vperm.xlu1 %4303, %v286_v2   ;;  %4302 = vset.pattern.permute.xlu0 %v6766_v1  ;;  %v4680_v10 = vld [vmem:[%s6761_s3] sm:$0xff]  ;;  %s4515_s9 = smov 88   ;;  %v1628_v16 = vld [vmem:[%s6761_s3 + $0x8] sm:$0xff]  ;;  %s4518_s19 = smov 48   ;;  %v4754_v20 = vld [vmem:[%s6762_s4 + $0x10] sm:$0xff]  ;;  %v4523_v22 = vmov 3  }
  0x19   : > { %s4220_s16 = smul.u32 12, %s273_s13  ;;  %291 = vperm.xlu0 %4302, %v284_v4   ;;  %v288_v12 = vld [vmem:[%s6760_s2 + $0x20] sm:$0xff]  ;;  %s4516_s13 = smov 28   ;;  %v4740_v18 = vld [vmem:[%s6762_s4 + $0x8] sm:$0xff]  ;;  %v4524_v23 = vmov 4   ;;  %v4525_v24 = vmov 5  }
  0x1a   : > { %v283_v17 = vld [vmem:[%s6759_s1 + $0x20] sm:$0xff]  ;;  %s6812_s20 = smov 8   ;;  %s4520_s21 = smov 96   ;;  %vm575_vm3 = vcmask 1039360   ;;  %vm588_vm4 = vcmask 162816   ;;  %vm907_vm5 = vcmask 1031168  }
  0x1b   : > { %s276_s23 = scalar_lea.vmem %s6758_s0, %s4220_s16  ;;  %s4521_s29 = smov 116   ;;  %v4747_v19 = vld [vmem:[%s6762_s4] sm:$0xff]  ;;  %vm1092_vm6 = vcmask 900096   ;;  %vm1277_vm7 = vcmask 891904   ;;  %vm1462_vm8 = vcmask 883712   ;;  %vm1635_vm9 = vcmask 64512  }
  0x1c   : > { %v4667_v7 = vld [vmem:[%s276_s23 + $0x8] sm:$0xf]  ;;  %v4669_v8 = vld [vmem:[%s276_s23] sm:$0xff]  ;;  %306 = vperm.xlu1 %4303, %v287_v3   ;;  %s4514_s23 = smov 68   ;;  %s4526_s15 = smov 126   ;;  %vm1655_vm10 = vcmask 752640  }
  0x1d   : > { %4044 = vmatpush3.msk.msra.mxu1 %vm333_vm1, %v4667_v7  ;;  %v4675_v9 = vcombine.high %v4669_v8, %v4669_v8  ;;  %296 = vperm.xlu0 %4302, %v285_v6   ;;  %s4527_s16 = smov 127   ;;  %s4528_s17 = smov 109   ;;  %vm1840_vm11 = vcmask 744448   ;;  %vm2025_vm12 = vcmask 736256  }
  0x1e   : > { %4046 = vmatmul.mubr.msk.f32.vlgmr.msra.gmra.mrb[0].mxu1 %vm317_vm2, %v279_v5  ;;  %s4531_s22 = smov 92   ;;  %s6814_s8 = smov 114  }
  0x1f   : > { %3937 = vmatprep.subr.msk.mxu0 %vm333_vm1, %v4675_v9  ;;  %4048 = vmatprep.mubr.msk.f32.mxu1 %vm4511_vm0, %v6770_v0  ;;  %s4541_s14 = smov 38  }
  0x20   : > { %3938 = vmatpush1.msk.msra.mxu0 %vm333_vm1, %v4669_v8  ;;  %552 = vrot.lane.b32.xlu1 %v4680_v10, %s4513_s18 }
  0x21   : > { %3939 = vmatmul.mubr.msk.f32.vlgmr.msra.gmra.mrb[0].mxu0 %vm317_vm2, %v279_v5  ;;  %311 = vperm.xlu0 %4302, %v288_v12  }
  0x22   : > { %4049 = vmatmul.mubr.msk.f32.gmra.mrb[2].mxu1 %vm317_vm2, %v280_v11  ;;  %410 = vmatprep.mubr.f32.mxu0 %v6770_v0 }
  0x23   : > { %4051 = vmatprep.mubr.msk.f32.mxu1 %vm4511_vm0, %v6770_v0 }
  0x24   : > { %1072 = vrot.lane.b32.xlu1 %v4680_v10, %s4514_s23  ;;  %s4532_s23 = smov 90  }
  0x25   : > { %3940 = vmatmul.mubr.msk.f32.gmra.mrb[2].mxu0 %vm317_vm2, %v280_v11  ;;  %887 = vrot.lane.b32.xlu0 %v4680_v10, %s4515_s9  ;;  %s4539_s9 = smov 74  }
  0x26   : > { %4052 = vmatmul.mubr.msk.f32.gmra.mrb[4].mxu1 %vm317_vm2, %v281_v13  ;;  %416 = vmatprep.mubr.f32.mxu0 %v6770_v0 }
  0x27   : > { %4054 = vmatprep.mubr.msk.f32.mxu1 %vm4511_vm0, %v6770_v0  ;;  %4305 = vset.pattern.permute.xlu0 %v4517_v15 }
  0x28   : > { %1442 = vrot.lane.b32.xlu1 %v4680_v10, %s4516_s13  ;;  %s6818_s13 = smov 56  }
  0x29   : > { %3941 = vmatmul.mubr.msk.f32.gmra.mrb[4].mxu0 %vm317_vm2, %v281_v13  ;;  %1257 = vrot.lane.b32.xlu0 %v4680_v10, %s4518_s19  ;;  %s4529_s19 = smov 110  }
  0x2a   : > { %4055 = vmatmul.mubr.msk.f32.gmra.mrb[6].mxu1 %vm317_vm2, %v282_v14  ;;  %422 = vmatprep.mubr.f32.mxu0 %v6770_v0 }
  0x2b   : > { %4057 = vmatprep.mubr.msk.f32.mxu1 %vm4511_vm0, %v6770_v0 }
  0x2c   : > { %1633 = vrot.lane.b32.xlu1 %v1628_v16, %s6812_s20 }
  0x2d   : > { %3942 = vmatmul.mubr.msk.f32.gmra.mrb[6].mxu0 %vm317_vm2, %v282_v14  ;;  %1631 = vrot.lane.b32.xlu0 %v4680_v10, %s6812_s20  ;;  %s4547_s20 = smov 58  }
  0x2e   : > { %4058 = vmatmul.mubr.msk.f32.gmra.mrb[8].mxu1 %vm317_vm2, %v283_v17  ;;  %428 = vmatprep.mubr.f32.mxu0 %v6770_v0 }
  0x2f   : > { %4066 = vmatprep.mubr.msk.f32.mxu1 %vm4511_vm0, %v6770_v0 }
  0x30   : > { %2005 = vrot.lane.b32.xlu1 %v1628_v16, %s4520_s21  ;;  %s4530_s21 = smov 91  }
  0x31   : > { %3943 = vmatmul.mubr.msk.f32.gmra.mrb[8].mxu0 %vm317_vm2, %v283_v17  ;;  %1820 = vrot.lane.b32.xlu0 %v1628_v16, %s4521_s29 }
  0x32   : > { %661 = vmatprep.mubr.f32.mxu0 %v6770_v0 }
  0x34   : > { %2200 = vperm.xlu1 %4303, %v4740_v18  }
  0x35   : > { %2231 = vperm.xlu0 %4305, %v4740_v18  }
  0x38   : > { %4304 = vset.pattern.permute.xlu1 %v4517_v15 }
  0x39   : > { %2227 = vperm.xlu1 %4304, %v4747_v19   ;;  %4306 = vset.pattern.permute.xlu0 %v4522_v21 }
  0x3a   : > { %2299 = vperm.xlu0 %4306, %v4747_v19  }
  0x3d   : > { %2235 = vperm.xlu1 %4304, %v4754_v20  }
  0x3e   : > { %4309 = vset.pattern.permute.xlu0 %v4523_v22 }
  0x3f   : > { %2375 = vperm.xlu0 %4309, %v4740_v18  }
  0x41   : > { %4307 = vset.pattern.permute.xlu1 %v4522_v21 }
  0x42   : > { %2303 = vperm.xlu1 %4307, %v4740_v18  }
  0x43   : > { %4310 = vset.pattern.permute.xlu0 %v4524_v23 }
  0x44   : > { %2443 = vperm.xlu0 %4310, %v4747_v19  }
  0x46   : > { %2307 = vperm.xlu1 %4307, %v4754_v20  }
  0x48   : > { %4313 = vset.pattern.permute.xlu0 %v4525_v24 }
  0x49   : > { %2519 = vperm.xlu0 %4313, %v4740_v18  }
  0x4a   : > { %4308 = vset.pattern.permute.xlu1 %v4523_v22 }
  0x4b   : > { %2371 = vperm.xlu1 %4308, %v4747_v19  }
  0x4f   : > { %2379 = vperm.xlu1 %4308, %v4754_v20  }
  0x53   : > { %4311 = vset.pattern.permute.xlu1 %v4524_v23 }
  0x54   : > { %2447 = vperm.xlu1 %4311, %v4740_v18  }
  0x58   : > { %2451 = vperm.xlu1 %4311, %v4754_v20  }
  0x5c   : > { %4312 = vset.pattern.permute.xlu1 %v4525_v24 }
  0x5d   : > { %2515 = vperm.xlu1 %4312, %v4747_v19  }
  0x61   : > { %2523 = vperm.xlu1 %4312, %v4754_v20  }
  0x97   : > { %v4769_v27 = vpop.permute.xlu1 %301 }
  0x98   : > { %v292_v25 = vpop.permute.xlu0 %291 }
  0x9b   : > { %v4771_v39 = vpop.permute.xlu1 %306 }
  0x9c   : > { %v297_v29 = vpop.permute.xlu0 %296 }
  0x9f   : > { %v4817_v61 = vpop.permute.xlu1 %552 }
  0xa0   : > { %v4871_v17 = vpop.permute.xlu0 %311 }
  0xa4   : > { %v4879_v22 = vpop.permute.xlu0 %887 }
  0xa8   : > { %v4891_v24 = vpop.permute.xlu0 %1257 }
  0xf1   : > { %v501_v26 = vpop.f32.mrb[0].mxu1 }
  0xf2   : > { %v4047_v28 = vpop.f32.mrb[1].mxu1  ;;  %v502_v31 = vadd.f32 %v501_v26, %v292_v25  ;;  %v4899_v26 = vpop.permute.xlu0 %1631 }
  0xf4   : > { %v406_v30 = vpop.f32.mrb[0].mxu0  ;;  %v534_v43 = vrot.slane %v502_v31, 4 }
  0xf5   : > { %v407_v32 = vadd.f32 %v406_v30, %v292_v25  ;;  %v408_v33 = vpop.f32.mrb[1].mxu0  ;;  %v506_v34 = vpop.f32.mrb[2].mxu1  ;;  %v4533_v30 = vmov 6  }
  0xf6   : > { %v409_v35 = vadd.f32 %v408_v33, %v292_v25  ;;  %v507_v36 = vadd.f32 %v506_v34, %v297_v29  ;;  %v4050_v37 = vpop.f32.mrb[3].mxu1  ;;  %v4797_v54 = vsel %vm333_vm1, %v4667_v7, %v534_v43  ;;  %4434 = vset.pattern.permute.xlu0 %v4533_v30  ;;  %4435 = vset.pattern.permute.xlu1 %v4533_v30 }
  0xf7   : > { %v532_v38 = vrot.slane %v407_v32, 4 }
  0xf8   : > { %v533_v40 = vrot.slane %v409_v35, 4  ;;  %v4773_v41 = vrot.slane %v507_v36, 4  ;;  %v412_v42 = vpop.f32.mrb[2].mxu0 }
  0xf9   : > { %v4777_v44 = vsel %vm333_vm1, %v4669_v8, %v532_v38  ;;  %v413_v45 = vadd.f32 %v412_v42, %v297_v29  ;;  %v414_v46 = vpop.f32.mrb[3].mxu0  ;;  %v4779_v47 = vpop.f32.mrb[4].mxu1 }
  0xfa   : > { %v4783_v48 = vsel %vm333_vm1, %v4675_v9, %v533_v40  ;;  %v415_v49 = vadd.f32 %v414_v46, %v297_v29  ;;  %905 = vrot.lane.b32.xlu0 %v4773_v41, %s4526_s15  ;;  %573 = vrot.lane.b32.xlu1 %v4773_v41, %s4527_s16  ;;  %v4053_v50 = vpop.f32.mrb[5].mxu1  ;;  %v4835_v5 = vsel %vm333_vm1, %v534_v43, %v4773_v41  ;;  %v4843_v8 = vpop.permute.xlu1 %1072 }
  0xfb   : > { %v4789_v51 = vrot.slane %v413_v45, 4  ;;  %v4314_v52 = vpack.i.bf16 %v4783_v48, %v4777_v44  ;;  %v4911_v29 = vpop.permute.xlu0 %1820  ;;  %v4935_v35 = vadd.f32 %v4779_v47, %v4769_v27 }
  0xfc   : > { %v4793_v53 = vpop.f32.mrb[4].mxu0  ;;  %v4807_v58 = vrot.slane %v415_v49, 4  ;;  %6828 = vst [vmem:[#allocation7_spill] sm:$0xff] %v4911_v29 }
  0xfd   : > { %v4799_v55 = vpop.f32.mrb[6].mxu1  ;;  %v4801_v56 = vpop.f32.mrb[5].mxu0  ;;  %v4805_v57 = vsel %vm333_vm1, %v532_v38, %v4789_v51  ;;  %6829 = vst [vmem:[#allocation8_spill] sm:$0xff] %v4935_v35 }
  0xfe   : > { %1275 = vrot.lane.b32.xlu0 %v4773_v41, %s4528_s17  ;;  %1090 = vrot.lane.b32.xlu1 %v4773_v41, %s4529_s19  ;;  %v4056_v59 = vpop.f32.mrb[7].mxu1  ;;  %v4815_v60 = vpack.i.bf16 %v4805_v57, %v4797_v54  ;;  %v4831_v3 = vsel %vm333_vm1, %v533_v40, %v4807_v58  ;;  %v4853_v11 = vpop.permute.xlu1 %1442  ;;  %v6768_v40 = vmov 0.0|0.0  }
  0xff   : > { %v4841_v7 = vpack.i.bf16 %v4835_v5, %v4831_v3  ;;  %v4919_v32 = vpop.permute.xlu0 %2231  ;;  %4145 = vmatprep.subr.bf16.mxu1 %v6768_v40  ;;  %v4977_v59 = vadd.f32 %v4793_v53, %v4769_v27 }
 0x100   : > { %v4819_v62 = vpop.f32.mrb[6].mxu0 }
 0x101   : > { %v4821_v63 = vpop.f32.mrb[8].mxu1  ;;  %v4823_v2 = vpop.f32.mrb[7].mxu0  ;;  %6830 = vst [vmem:[#allocation9_spill] sm:$0xff] %v4977_v59  ;;  %v5044_v1 = vadd.f32 %v4819_v62, %v4771_v39 }
 0x102   : > { %1838 = vrot.lane.b32.xlu0 %v4773_v41, %s4530_s21  ;;  %1460 = vrot.lane.b32.xlu1 %v4773_v41, %s4513_s18  ;;  %v4059_v4 = vpop.f32.mrb[9].mxu1  ;;  %v4857_v12 = vpop.permute.xlu1 %1633  ;;  %v5078_v40 = vadd.f32 %v4823_v2, %v4771_v39 }
 0x103   : > { %v2300_v34 = vpop.permute.xlu0 %2299  ;;  %v4989_v4 = vadd.f32 %v4801_v56, %v4769_v27  ;;  %v5005_v27 = vadd.f32 %v4799_v55, %v4771_v39  ;;  %6833 = vst [vmem:[#allocation12_spill] sm:$0xff] %v5044_v1 }
 0x104   : > { %v4837_v6 = vpop.f32.mrb[8].mxu0  ;;  %v2312_v38 = vmul.f32 %v2300_v34, %v4935_v35  ;;  %6835 = vst [vmem:[#allocation14_spill] sm:$0xff] %v5078_v40 }
 0x105   : > { %v4845_v9 = vpop.f32.mrb[9].mxu0  ;;  %6831 = vst [vmem:[#allocation10_spill] sm:$0xff] %v4989_v4  ;;  %6832 = vst [vmem:[#allocation11_spill] sm:$0xff] %v5005_v27 }
 0x106   : > { %1653 = vrot.lane.b32.xlu1 %v4773_v41, %s4531_s22  ;;  %4315 = vrot.lane.b32.xlu0 %v4314_v52, %s4527_s16  ;;  %v4869_v16 = vpop.permute.xlu1 %2005 }
 0x107   : > { %6826 = vst [vmem:[#allocation5_spill] sm:$0xff] %v4869_v16  ;;  %v4939_v37 = vpop.permute.xlu0 %2375 }
 0x10a   : > { %2023 = vrot.lane.b32.xlu1 %v4773_v41, %s4532_s23  ;;  %4325 = vrot.lane.b32.xlu0 %v4314_v52, %s4529_s19  ;;  %v4877_v21 = vpop.permute.xlu1 %2200 }
 0x10b   : > { %6827 = vst [vmem:[#allocation6_spill] sm:$0xff] %v4877_v21  ;;  %v2444_v43 = vpop.permute.xlu0 %2443 }
 0x10c   : > { %v2456_v45 = vmul.f32 %v2444_v43, %v4935_v35  ;;  %v2454_v53 = vmul.f32 %v2444_v43, %v4977_v59 }
 0x10e   : > { %4320 = vrot.lane.b32.xlu1 %v4314_v52, %s4526_s15  ;;  %4335 = vrot.lane.b32.xlu0 %v4314_v52, %s4513_s18  ;;  %v4889_v23 = vpop.permute.xlu1 %2227 }
 0x10f   : > { %v2240_v46 = vmul.f32 %v4889_v23, %v4935_v35  ;;  %v2238_v30 = vmul.f32 %v4889_v23, %v4977_v59 }
 0x112   : > { %4330 = vrot.lane.b32.xlu1 %v4314_v52, %s4528_s17  ;;  %4340 = vrot.lane.b32.xlu0 %v4314_v52, %s4531_s22  ;;  %v4897_v25 = vpop.permute.xlu1 %2235 }
 0x116   : > { %4345 = vrot.lane.b32.xlu1 %v4314_v52, %s4530_s21  ;;  %4350 = vrot.lane.b32.xlu0 %v4314_v52, %s4532_s23  ;;  %v4909_v28 = vpop.permute.xlu1 %2303 }
 0x117   : > { %v2314_v21 = vmul.f32 %v4909_v28, %v5078_v40 }
 0x11a   : > { %569 = vrot.lane.b32.xlu1 %v4789_v51, %s4527_s16  ;;  %901 = vrot.lane.b32.xlu0 %v4789_v51, %s4526_s15  ;;  %v4917_v31 = vpop.permute.xlu1 %2307 }
 0x11e   : > { %1086 = vrot.lane.b32.xlu1 %v4789_v51, %s4529_s19  ;;  %1271 = vrot.lane.b32.xlu0 %v4789_v51, %s4528_s17  ;;  %v2372_v33 = vpop.permute.xlu1 %2371 }
 0x11f   : > { %v2384_v49 = vmul.f32 %v2372_v33, %v4935_v35 }
 0x122   : > { %1456 = vrot.lane.b32.xlu1 %v4789_v51, %s4513_s18  ;;  %1834 = vrot.lane.b32.xlu0 %v4789_v51, %s4530_s21  ;;  %v4937_v36 = vpop.permute.xlu1 %2379 }
 0x126   : > { %1649 = vrot.lane.b32.xlu1 %v4789_v51, %s4531_s22  ;;  %571 = vrot.lane.b32.xlu0 %v4807_v58, %s4527_s16  ;;  %v4950_v42 = vpop.permute.xlu1 %2447 }
 0x12a   : > { %2019 = vrot.lane.b32.xlu1 %v4789_v51, %s4532_s23  ;;  %4360 = vrot.lane.b32.xlu0 %v4815_v60, %s4526_s15  ;;  %v4958_v47 = vpop.permute.xlu1 %2451 }
 0x12e   : > { %1088 = vrot.lane.b32.xlu0 %v4807_v58, %s4529_s19  ;;  %4355 = vrot.lane.b32.xlu1 %v4815_v60, %s4527_s16  ;;  %v2516_v50 = vpop.permute.xlu1 %2515 }
 0x12f   : > { %v2528_v52 = vmul.f32 %v2516_v50, %v4935_v35 }
 0x132   : > { %4370 = vrot.lane.b32.xlu0 %v4815_v60, %s4528_s17  ;;  %903 = vrot.lane.b32.xlu1 %v4807_v58, %s4526_s15 }
 0x136   : > { %1458 = vrot.lane.b32.xlu0 %v4807_v58, %s4513_s18  ;;  %4365 = vrot.lane.b32.xlu1 %v4815_v60, %s4529_s19 }
 0x13a   : > { %1651 = vrot.lane.b32.xlu0 %v4807_v58, %s4531_s22  ;;  %1273 = vrot.lane.b32.xlu1 %v4807_v58, %s4528_s17 }
 0x13e   : > { %4385 = vrot.lane.b32.xlu0 %v4815_v60, %s4530_s21  ;;  %4375 = vrot.lane.b32.xlu1 %v4815_v60, %s4513_s18 }
 0x142   : > { %2021 = vrot.lane.b32.xlu0 %v4807_v58, %s4532_s23  ;;  %4380 = vrot.lane.b32.xlu1 %v4815_v60, %s4531_s22 }
 0x146   : > { %2332 = vrot.lane.b32.xlu0 %v2312_v38, %s4526_s15  ;;  %1836 = vrot.lane.b32.xlu1 %v4807_v58, %s4530_s21  ;;  %v4996_v38 = vpop.permute.xlu1 %2523 }
 0x14a   : > { %2476 = vrot.lane.b32.xlu0 %v2456_v45, %s4528_s17  ;;  %4390 = vrot.lane.b32.xlu1 %v4815_v60, %s4532_s23  ;;  %v2310_v60 = vmul.f32 %v2300_v34, %v4977_v59  ;;  %v4998_v45 = vpop.permute.xlu0 %2519 }
 0x14e   : > { %4395 = vrot.lane.b32.xlu0 %v4841_v7, %s4527_s16  ;;  %2260 = vrot.lane.b32.xlu1 %v2240_v46, %s4527_s16  ;;  %v2382_v46 = vmul.f32 %v2372_v33, %v4977_v59 }
 0x152   : > { %4405 = vrot.lane.b32.xlu0 %v4841_v7, %s4529_s19  ;;  %2404 = vrot.lane.b32.xlu1 %v2384_v49, %s4529_s19 }
 0x156   : > { %4415 = vrot.lane.b32.xlu0 %v4841_v7, %s4513_s18  ;;  %2548 = vrot.lane.b32.xlu1 %v2528_v52, %s4513_s18  ;;  %v2243_v52 = vmul.f32 %v4919_v32, %v5005_v27 }
 0x15a   : > { %4420 = vrot.lane.b32.xlu0 %v4841_v7, %s4531_s22  ;;  %4400 = vrot.lane.b32.xlu1 %v4841_v7, %s4526_s15 }
 0x15e   : > { %4430 = vrot.lane.b32.xlu0 %v4841_v7, %s4532_s23  ;;  %4410 = vrot.lane.b32.xlu1 %v4841_v7, %s4528_s17 }
 0x162   : > { %2328 = vrot.lane.b32.xlu0 %v2310_v60, %s4526_s15  ;;  %4425 = vrot.lane.b32.xlu1 %v4841_v7, %s4530_s21  ;;  %v2239_v7 = vmul.f32 %v4889_v23, %v4989_v4  ;;  %v2526_v60 = vmul.f32 %v2516_v50, %v4977_v59 }
 0x166   : > { %2472 = vrot.lane.b32.xlu0 %v2454_v53, %s4528_s17  ;;  %2256 = vrot.lane.b32.xlu1 %v2238_v30, %s4527_s16  ;;  %v2383_v53 = vmul.f32 %v2372_v33, %v4989_v4  ;;  %v2311_v30 = vmul.f32 %v2300_v34, %v4989_v4  ;;  %v2455_v33 = vmul.f32 %v2444_v43, %v4989_v4 }
 0x167   : > { %v2241_v43 = vmul.f32 %v4919_v32, %v5044_v1 }
 0x16a   : > { %2258 = vrot.lane.b32.xlu0 %v2239_v7, %s4527_s16  ;;  %2400 = vrot.lane.b32.xlu1 %v2382_v46, %s4529_s19 }
 0x16c   : > { %v5009_v56 = vpop.permute.xlu0 %905  ;;  %v5011_v49 = vpop.permute.xlu1 %573 }
 0x16e   : > { %2266 = vrot.lane.b32.xlu0 %v2243_v52, %s4527_s16  ;;  %2544 = vrot.lane.b32.xlu1 %v2526_v60, %s4513_s18  ;;  %v2387_v52 = vmul.f32 %v4939_v37, %v5005_v27  ;;  %v2315_v60 = vmul.f32 %v4909_v28, %v5005_v27 }
 0x170   : > { %v5018_v23 = vpop.permute.xlu0 %1275  ;;  %v5020_v55 = vpop.permute.xlu1 %1090 }
 0x172   : > { %2402 = vrot.lane.b32.xlu0 %v2383_v53, %s4529_s19  ;;  %2330 = vrot.lane.b32.xlu1 %v2311_v30, %s4526_s15  ;;  %v2527_v30 = vmul.f32 %v2516_v50, %v4989_v4  ;;  %v5142_v4 = vadd.f32 %v4845_v9, %v4871_v17 }
 0x174   : > { %v5026_v7 = vpop.permute.xlu0 %1838  ;;  %v5028_v46 = vpop.permute.xlu1 %1460  ;;  %6841 = vst [vmem:[#allocation20_spill] sm:$0xff] %v5142_v4  ;;  %v2245_v9 = vmul.f32 %v4897_v25, %v5142_v4 }
 0x176   : > { %2410 = vrot.lane.b32.xlu0 %v2387_v52, %s4529_s19  ;;  %2338 = vrot.lane.b32.xlu1 %v2315_v60, %s4526_s15  ;;  %v2459_v60 = vmul.f32 %v4950_v42, %v5005_v27 }
 0x178   : > { %v5037_v34 = vpop.permute.xlu1 %1653  ;;  %v5039_v53 = vpop.permute.xlu0 %4315 }
 0x17a   : > { %2546 = vrot.lane.b32.xlu0 %v2527_v30, %s4513_s18  ;;  %2474 = vrot.lane.b32.xlu1 %v2455_v33, %s4528_s17  ;;  %v2385_v33 = vmul.f32 %v4939_v37, %v5044_v1  ;;  %v2313_v30 = vmul.f32 %v4909_v28, %v5044_v1  ;;  %v2386_v28 = vmul.f32 %v4939_v37, %v5078_v40 }
 0x17c   : > { %v5048_v15 = vpop.permute.xlu1 %2023  ;;  %v5050_v52 = vpop.permute.xlu0 %4325 }
 0x17d   : > { %6834 = vst [vmem:[#allocation13_spill] sm:$0xff] %v5048_v15  ;;  %v4535_v15 = vmov 7  }
 0x17e   : > { %2262 = vrot.lane.b32.xlu0 %v2241_v43, %s4527_s16  ;;  %2482 = vrot.lane.b32.xlu1 %v2459_v60, %s4528_s17  ;;  %v2529_v43 = vmul.f32 %v4998_v45, %v5044_v1  ;;  %v2457_v60 = vmul.f32 %v4950_v42, %v5044_v1  ;;  %v2242_v1 = vmul.f32 %v4919_v32, %v5078_v40 }
 0x17f   : > { %v2458_v32 = vmul.f32 %v4950_v42, %v5078_v40 }
 0x180   : > { %v5058_v62 = vpop.permute.xlu1 %4320  ;;  %v5060_v50 = vpop.permute.xlu0 %4335 }
 0x182   : > { %2406 = vrot.lane.b32.xlu0 %v2385_v33, %s4529_s19  ;;  %2334 = vrot.lane.b32.xlu1 %v2313_v30, %s4526_s15  ;;  %v5084_v33 = vadd.f32 %v4821_v63, %v4871_v17 }
 0x184   : > { %v5068_v14 = vpop.permute.xlu1 %4330  ;;  %v5070_v13 = vpop.permute.xlu0 %4340  ;;  %6836 = vst [vmem:[#allocation15_spill] sm:$0xff] %v5084_v33  ;;  %v2318_v63 = vmul.f32 %v4917_v31, %v5084_v33  ;;  %v2462_v37 = vmul.f32 %v4958_v47, %v5084_v33  ;;  %v2390_v35 = vmul.f32 %v4937_v36, %v5084_v33 }
 0x186   : > { %2550 = vrot.lane.b32.xlu0 %v2529_v43, %s4513_s18  ;;  %2478 = vrot.lane.b32.xlu1 %v2457_v60, %s4528_s17  ;;  %v2246_v43 = vmul.f32 %v4897_v25, %v5084_v33  ;;  %v5118_v60 = vadd.f32 %v4837_v6, %v4871_v17  ;;  %v2317_v17 = vmul.f32 %v4917_v31, %v5142_v4 }
 0x188   : > { %v5086_v30 = vpop.permute.xlu1 %4345  ;;  %v5088_v0 = vpop.permute.xlu0 %4350  ;;  %6838 = vst [vmem:[#allocation17_spill] sm:$0xff] %v5118_v60  ;;  %v2316_v6 = vmul.f32 %v4917_v31, %v5118_v60  ;;  %v2460_v59 = vmul.f32 %v4958_v47, %v5118_v60  ;;  %v2531_v31 = vmul.f32 %v4998_v45, %v5005_v27 }
 0x189   : > { %6837 = vst [vmem:[#allocation16_spill] sm:$0xff] %v5088_v0 }
 0x18a   : > { %2336 = vrot.lane.b32.xlu0 %v2314_v21, %s4526_s15  ;;  %2264 = vrot.lane.b32.xlu1 %v2242_v1, %s4527_s16 }
 0x18c   : > { %v5096_v39 = vpop.permute.xlu1 %569  ;;  %v5098_v2 = vpop.permute.xlu0 %901 }
 0x18e   : > { %2344 = vrot.lane.b32.xlu0 %v2318_v63, %s4526_s15  ;;  %2272 = vrot.lane.b32.xlu1 %v2246_v43, %s4527_s16 }
 0x190   : > { %v5108_v21 = vpop.permute.xlu1 %1086  ;;  %v5110_v1 = vpop.permute.xlu0 %1271 }
 0x192   : > { %2480 = vrot.lane.b32.xlu0 %v2458_v32, %s4528_s17  ;;  %2408 = vrot.lane.b32.xlu1 %v2386_v28, %s4529_s19  ;;  %v2244_v32 = vmul.f32 %v4897_v25, %v5118_v60  ;;  %v2530_v25 = vmul.f32 %v4998_v45, %v5078_v40  ;;  %v2534_v45 = vmul.f32 %v4996_v38, %v5084_v33 }
 0x194   : > { %v5120_v63 = vpop.permute.xlu1 %1456  ;;  %v5122_v43 = vpop.permute.xlu0 %1834 }
 0x195   : > { %6839 = vst [vmem:[#allocation18_spill] sm:$0xff] %v5122_v43  ;;  %v2388_v43 = vmul.f32 %v4937_v36, %v5118_v60 }
 0x196   : > { %2488 = vrot.lane.b32.xlu0 %v2462_v37, %s4528_s17  ;;  %2416 = vrot.lane.b32.xlu1 %v2390_v35, %s4529_s19 }
 0x198   : > { %v5130_v42 = vpop.permute.xlu1 %1649  ;;  %v5132_v28 = vpop.permute.xlu0 %571 }
 0x199   : > { %6840 = vst [vmem:[#allocation19_spill] sm:$0xff] %v5130_v42 }
 0x19a   : > { %2340 = vrot.lane.b32.xlu0 %v2316_v6, %s4526_s15  ;;  %2268 = vrot.lane.b32.xlu1 %v2244_v32, %s4527_s16 }
 0x19c   : > { %v5144_v37 = vpop.permute.xlu1 %2019  ;;  %v5146_v35 = vpop.permute.xlu0 %4360 }
 0x19d   : > { %6842 = vst [vmem:[#allocation21_spill] sm:$0xff] %v5144_v37 }
 0x19e   : > { %2484 = vrot.lane.b32.xlu0 %v2460_v59, %s4528_s17  ;;  %2412 = vrot.lane.b32.xlu1 %v2388_v43, %s4529_s19  ;;  %v2389_v59 = vmul.f32 %v4937_v36, %v5142_v4  ;;  %v2461_v43 = vmul.f32 %v4958_v47, %v5142_v4 }
 0x1a0   : > { %v5154_v6 = vpop.permute.xlu0 %1088  ;;  %v4356_v32 = vpop.permute.xlu1 %4355 }
 0x1a2   : > { %2270 = vrot.lane.b32.xlu0 %v2245_v9, %s4527_s16  ;;  %2342 = vrot.lane.b32.xlu1 %v2317_v17, %s4526_s15  ;;  %s4542_s15 = smov 20   ;;  %s4543_s16 = smov 112  }
 0x1a4   : > { %v5162_v37 = vpop.permute.xlu0 %4370  ;;  %v5164_v0 = vpop.permute.xlu1 %903 }
 0x1a6   : > { %2414 = vrot.lane.b32.xlu0 %v2389_v59, %s4529_s19  ;;  %2486 = vrot.lane.b32.xlu1 %v2461_v43, %s4528_s17  ;;  %v2533_v59 = vmul.f32 %v4996_v38, %v5142_v4  ;;  %v2532_v43 = vmul.f32 %v4996_v38, %v5118_v60  ;;  %v4357_v60 = vunpack.i.l.bf16 %v4356_v32  ;;  %s6816_s17 = smov 94  }
 0x1a8   : > { %v5176_v9 = vpop.permute.xlu0 %1458  ;;  %v5178_v17 = vpop.permute.xlu1 %4365 }
 0x1aa   : > { %2554 = vrot.lane.b32.xlu0 %v2531_v31, %s4513_s18  ;;  %2552 = vrot.lane.b32.xlu1 %v2530_v25, %s4513_s18 }
 0x1ac   : > { %v5182_v36 = vpop.permute.xlu0 %1651  ;;  %v5184_v47 = vpop.permute.xlu1 %1273 }
 0x1ad   : > { %6843 = vst [vmem:[#allocation22_spill] sm:$0xff] %v5182_v36 }
 0x1ae   : > { %2558 = vrot.lane.b32.xlu0 %v2533_v59, %s4513_s18  ;;  %2556 = vrot.lane.b32.xlu1 %v2532_v43, %s4513_s18 }
 0x1b0   : > { %v5194_v31 = vpop.permute.xlu0 %4385  ;;  %v5196_v25 = vpop.permute.xlu1 %4375 }
 0x1b2   : > { %2587 = vperm.xlu0 %4434, %v4747_v19   ;;  %2560 = vrot.lane.b32.xlu1 %v2534_v45, %s4513_s18  ;;  %v4318_v19 = vunpack.i.h.bf16 %v5039_v53  ;;  %v4317_v45 = vunpack.i.l.bf16 %v5039_v53 }
 0x1b4   : > { %v5200_v27 = vpop.permute.xlu0 %2021  ;;  %v5202_v4 = vpop.permute.xlu1 %4380  ;;  %v577_v42 = vsel %vm575_vm3, %v4318_v19, %v4357_v60 }
 0x1b5   : > { %6844 = vst [vmem:[#allocation23_spill] sm:$0xff] %v5200_v27 }
 0x1b6   : > { %2591 = vperm.xlu1 %4435, %v4740_v18   ;;  %v4358_v18 = vunpack.i.h.bf16 %v4356_v32  ;;  %4437 = vset.pattern.permute.xlu0 %v4535_v15 }
 0x1b8   : > { %v5205_v59 = vpop.permute.xlu0 %2332  ;;  %v5207_v43 = vpop.permute.xlu1 %1836 }
 0x1b9   : > { %6845 = vst [vmem:[#allocation24_spill] sm:$0xff] %v5205_v59  ;;  %6846 = vst [vmem:[#allocation25_spill] sm:$0xff] %v5207_v43 }
 0x1ba   : > { %2595 = vperm.xlu1 %4435, %v4754_v20   ;;  %v576_v20 = vsel %vm575_vm3, %v4317_v45, %v4318_v19  ;;  %v6853_v19 = vpack.c.bf16 %v4805_v57, %v4777_v44 }
 0x1bc   : > { %v5210_v38 = vpop.permute.xlu0 %2476  ;;  %v5212_v33 = vpop.permute.xlu1 %4390 }
 0x1bd   : > { %6847 = vst [vmem:[#allocation26_spill] sm:$0xff] %v5210_v38 }
 0x1be   : > { %4436 = vset.pattern.permute.xlu1 %v4535_v15  ;;  %v581_v15 = vsel %vm575_vm3, %v5132_v28, %v5011_v49 }
 0x1c0   : > { %v4396_v40 = vpop.permute.xlu0 %4395  ;;  %v5216_v27 = vpop.permute.xlu1 %2260 }
 0x1c1   : > { %6848 = vst [vmem:[#allocation27_spill] sm:$0xff] %v5216_v27  ;;  %v4398_v16 = vunpack.i.h.bf16 %v4396_v40  ;;  %v4397_v59 = vunpack.i.l.bf16 %v4396_v40  ;;  %v6849_v40 = vmov 0.0  }
 0x1c3   : > { %v578_v38 = vsel %vm575_vm3, %v4358_v18, %v4397_v59  ;;  %v4146_v43 = vpack.c.bf16 %v4398_v16, %v4357_v60  ;;  %v579_v53 = vsel %vm575_vm3, %v4397_v59, %v4398_v16  ;;  %v580_v16 = vsel %vm575_vm3, %v5096_v39, %v5132_v28 }
 0x1c4   : > { %v5222_v36 = vpop.permute.xlu0 %4405  ;;  %v5224_v29 = vpop.permute.xlu1 %2404  ;;  %v4141_v27 = vpack.c.bf16 %v579_v53, %v577_v42  ;;  %v4143_v32 = vpack.c.bf16 %v578_v38, %v576_v20  ;;  %v6851_v42 = vpack.c.bf16 %v4835_v5, %v4797_v54  ;;  %v4362_v39 = vunpack.i.l.bf16 %v5146_v35 }
 0x1c5   : > { %4147 = vmatpush3.bf16.msra.mxu1 %v4146_v43  ;;  %v4323_v54 = vunpack.i.h.bf16 %v5058_v62  ;;  %v4322_v5 = vunpack.i.l.bf16 %v5058_v62  ;;  %v4408_v62 = vunpack.i.h.bf16 %v5222_v36  ;;  %v4367_v53 = vunpack.i.l.bf16 %v5178_v17 }
 0x1c6   : > { %4142 = vmatprep.subr.bf16.mxu0 %v4141_v27  ;;  %4064 = vmatprep.subr.mxu1 %v6849_v40  ;;  %v6850_v27 = vmov 0.0|0.0  }
 0x1c7   : > { %4144 = vmatpush1.bf16.msra.mxu0 %v4143_v32  ;;  %v908_v18 = vsel %vm907_vm5, %v4322_v5, %v4323_v54 }
 0x1c8   : > { %v5230_v45 = vpop.permute.xlu0 %4415  ;;  %v5232_v60 = vpop.permute.xlu1 %2548  ;;  %3950 = vmatprep.subr.msk.mxu0 %vm333_vm1, %v581_v15  ;;  %v4328_v15 = vunpack.i.h.bf16 %v5050_v52 }
 0x1c9   : > { %4065 = vmatpush3.msk.msra.mxu1 %vm333_vm1, %v5011_v49  ;;  %v6852_v49 = vpack.c.bf16 %v4831_v3, %v4783_v48 }
 0x1ca   : > { %4067 = vmatmul.mubr.msk.f32.vlgmr.msra.gmra.mrb[10].mxu1 %vm588_vm4, %v4817_v61  ;;  %4152 = vmatprep.subr.bf16.mxu1 %v6850_v27 }
 0x1cb   : > { %3951 = vmatpush1.msk.msra.mxu0 %vm333_vm1, %v580_v16  ;;  %4154 = vmatpush3.bf16.msra.mxu1 %v6851_v42  ;;  %v913_v16 = vsel %vm907_vm5, %v5164_v0, %v5009_v56 }
 0x1cc   : > { %v5247_v59 = vpop.permute.xlu0 %4420  ;;  %v4401_v43 = vpop.permute.xlu1 %4400  ;;  %3952 = vmatmul.mubr.msk.f32.vlgmr.msra.gmra.mrb[10].mxu0 %vm588_vm4, %v4817_v61  ;;  %4149 = vmatprep.subr.bf16.mxu0 %v6852_v49  ;;  %v4363_v61 = vunpack.i.h.bf16 %v5146_v35  ;;  %v4407_v35 = vunpack.i.l.bf16 %v5222_v36  ;;  %v4368_v49 = vunpack.i.h.bf16 %v5178_v17 }
 0x1cd   : > { %v4403_v28 = vunpack.i.h.bf16 %v4401_v43  ;;  %v4402_v38 = vunpack.i.l.bf16 %v4401_v43  ;;  %4151 = vmatpush1.bf16.msra.mxu0 %v6853_v19  ;;  %4073 = vmatprep.subr.mxu1 %v6849_v40  ;;  %v4327_v43 = vunpack.i.l.bf16 %v5050_v52 }
 0x1ce   : > { %3955 = vmatprep.subr.msk.mxu0 %vm333_vm1, %v4807_v58  ;;  %4075 = vmatprep.mubr.msk.f32.mxu1 %vm4511_vm0, %v6849_v40  ;;  %v1096_v42 = vsel %vm1092_vm6, %v4407_v35, %v4408_v62  ;;  %v1095_v52 = vsel %vm1092_vm6, %v4368_v49, %v4407_v35  ;;  %v4418_v35 = vunpack.i.h.bf16 %v5230_v45 }
 0x1cf   : > { %v4160_v48 = vpack.c.bf16 %v4403_v28, %v4362_v39  ;;  %4074 = vmatpush3.msk.msra.mxu1 %vm333_vm1, %v4773_v41  ;;  %v910_v44 = vsel %vm907_vm5, %v4363_v61, %v4402_v38  ;;  %v911_v58 = vsel %vm907_vm5, %v4402_v38, %v4403_v28  ;;  %v909_v41 = vsel %vm907_vm5, %v4323_v54, %v4362_v39 }
 0x1d0   : > { %v5269_v57 = vpop.permute.xlu0 %4430  ;;  %v5271_v3 = vpop.permute.xlu1 %4410  ;;  %4076 = vmatmul.mubr.msk.f32.vlgmr.msra.gmra.mrb[12].mxu1 %vm588_vm4, %v4680_v10  ;;  %4159 = vmatprep.subr.bf16.mxu1 %v6850_v27  ;;  %v4155_v20 = vpack.c.bf16 %v911_v58, %v909_v41  ;;  %v4157_v32 = vpack.c.bf16 %v910_v44, %v908_v18  ;;  %v4167_v39 = vpack.c.bf16 %v4408_v62, %v4367_v53  ;;  %v4333_v44 = vunpack.i.h.bf16 %v5068_v14 }
 0x1d1   : > { %3956 = vmatpush1.msk.msra.mxu0 %vm333_vm1, %v4789_v51  ;;  %4161 = vmatpush3.bf16.msra.mxu1 %v4160_v48  ;;  %v4413_v19 = vunpack.i.h.bf16 %v5271_v3  ;;  %v4412_v54 = vunpack.i.l.bf16 %v5271_v3  ;;  %v1098_v58 = vsel %vm1092_vm6, %v5154_v6, %v5020_v55  ;;  %v4332_v41 = vunpack.i.l.bf16 %v5068_v14 }
 0x1d2   : > { %810 = vmatprep.mubr.f32.mxu0 %v6849_v40  ;;  %4082 = vmatprep.subr.mxu1 %v6849_v40  ;;  %v4373_v18 = vunpack.i.h.bf16 %v5162_v37 }
 0x1d3   : > { %4084 = vmatprep.mubr.msk.f32.mxu1 %vm4511_vm0, %v6849_v40  ;;  %4156 = vmatprep.subr.bf16.mxu0 %v4155_v20  ;;  %v1281_v62 = vsel %vm1277_vm7, %v4412_v54, %v4413_v19 }
 0x1d4   : > { %v5288_v36 = vpop.permute.xlu0 %2328  ;;  %v5290_v51 = vpop.permute.xlu1 %4425  ;;  %3957 = vmatmul.mubr.msk.f32.vlgmr.msra.gmra.mrb[10].mxu0 %vm588_vm4, %v4680_v10  ;;  %v1094_v10 = vsel %vm1092_vm6, %v4328_v15, %v4367_v53  ;;  %v1280_v14 = vsel %vm1277_vm7, %v4373_v18, %v4412_v54 }
 0x1d5   : > { %4158 = vmatpush1.bf16.msra.mxu0 %v4157_v32  ;;  %4083 = vmatpush3.msk.msra.mxu1 %vm333_vm1, %v5009_v56  ;;  %v912_v56 = vsel %vm907_vm5, %v5098_v2, %v5164_v0  ;;  %v4162_v38 = vpack.c.bf16 %v1096_v42, %v1094_v10  ;;  %v1093_v0 = vsel %vm1092_vm6, %v4327_v43, %v4328_v15  ;;  %v4372_v2 = vunpack.i.l.bf16 %v5162_v37 }
 0x1d6   : > { %3960 = vmatprep.subr.msk.mxu0 %vm333_vm1, %v913_v16  ;;  %4085 = vmatmul.mubr.msk.f32.vlgmr.msra.gmra.mrb[14].mxu1 %vm588_vm4, %v4879_v22  ;;  %v4164_v5 = vpack.c.bf16 %v1095_v52, %v1093_v0  ;;  %v4377_v15 = vunpack.i.l.bf16 %v5196_v25  ;;  %v1278_v37 = vsel %vm1277_vm7, %v4332_v41, %v4333_v44  ;;  %v4423_v43 = vunpack.i.h.bf16 %v5247_v59 }
 0x1d7   : > { %4166 = vmatprep.subr.bf16.mxu1 %v6850_v27  ;;  %992 = vmatprep.mubr.f32.mxu0 %v6849_v40  ;;  %v4174_v3 = vpack.c.bf16 %v4413_v19, %v4372_v2  ;;  %v4171_v49 = vpack.c.bf16 %v1280_v14, %v1278_v37  ;;  %v1283_v10 = vsel %vm1277_vm7, %v5184_v47, %v5018_v23  ;;  %v4337_v52 = vunpack.i.l.bf16 %v5060_v50 }
 0x1d8   : > { %4168 = vmatpush3.bf16.msra.mxu1 %v4167_v39  ;;  %v5313_v17 = vpop.permute.xlu0 %2472  ;;  %v5315_v28 = vpop.permute.xlu1 %2256  ;;  %4093 = vmatprep.mubr.msk.f32.mxu1 %vm4511_vm0, %v6849_v40  ;;  %v4382_v39 = vunpack.i.l.bf16 %v5202_v4  ;;  %v4342_v41 = vunpack.i.l.bf16 %v5070_v13 }
 0x1d9   : > { %3961 = vmatpush1.msk.msra.mxu0 %vm333_vm1, %v912_v56  ;;  %4091 = vmatprep.subr.mxu1 %v6849_v40 }
 0x1da   : > { %4163 = vmatprep.subr.bf16.mxu0 %v4162_v38  ;;  %v4188_v54 = vpack.c.bf16 %v4423_v43, %v4382_v39 }
 0x1dc   : > { %4092 = vmatpush3.msk.msra.mxu1 %vm333_vm1, %v5020_v55  ;;  %v5327_v61 = vpop.permute.xlu0 %2258  ;;  %v5329_v48 = vpop.permute.xlu1 %2400  ;;  %3962 = vmatmul.mubr.msk.f32.vlgmr.msra.gmra.mrb[10].mxu0 %vm588_vm4, %v4879_v22  ;;  %v1279_v22 = vsel %vm1277_vm7, %v4333_v44, %v4372_v2  ;;  %v1097_v55 = vsel %vm1092_vm6, %v5108_v21, %v5154_v6  ;;  %v4417_v21 = vunpack.i.l.bf16 %v5230_v45  ;;  %v4181_v6 = vpack.c.bf16 %v4418_v35, %v4377_v15 }
 0x1dd   : > { %4165 = vmatpush1.bf16.msra.mxu0 %v4164_v5  ;;  %4094 = vmatmul.mubr.msk.f32.vlgmr.msra.gmra.mrb[16].mxu1 %vm588_vm4, %v4843_v8  ;;  %v4169_v32 = vpack.c.bf16 %v1281_v62, %v1279_v22  ;;  %v4338_v45 = vunpack.i.h.bf16 %v5060_v50  ;;  %v1282_v50 = vsel %vm1277_vm7, %v5110_v1, %v5184_v47  ;;  %v4422_v2 = vunpack.i.l.bf16 %v5247_v59 }
 0x1de   : > { %4173 = vmatprep.subr.bf16.mxu1 %v6850_v27  ;;  %3965 = vmatprep.subr.msk.mxu0 %vm333_vm1, %v1098_v58  ;;  %v1466_v56 = vsel %vm1462_vm8, %v4417_v21, %v4418_v35  ;;  %v4428_v44 = vunpack.i.h.bf16 %v5290_v51  ;;  %v4387_v59 = vunpack.i.l.bf16 %v5194_v31  ;;  %v5417_v58 = vsel %vm1635_vm9, %v4899_v26, %v4857_v12 }
 0x1df   : > { %4175 = vmatpush3.bf16.msra.mxu1 %v4174_v3  ;;  %4102 = vmatprep.mubr.msk.f32.mxu1 %vm4511_vm0, %v6849_v40  ;;  %v1463_v5 = vsel %vm1462_vm8, %v4337_v52, %v4338_v45  ;;  %v4343_v62 = vunpack.i.h.bf16 %v5070_v13  ;;  %v1468_v35 = vsel %vm1462_vm8, %v5176_v9, %v5028_v46  ;;  %v1659_v22 = vsel %vm1655_vm10, %v4422_v2, %v4423_v43  ;;  %v6854_v43 = vld [vmem:[#allocation7_spill] sm:$0xff] }
 0x1e0   : > { %v5351_v20 = vpop.permute.xlu0 %2266  ;;  %v5353_v53 = vpop.permute.xlu1 %2544  ;;  %4100 = vmatprep.subr.mxu1 %v6849_v40  ;;  %1177 = vmatprep.mubr.f32.mxu0 %v6849_v40  ;;  %v1467_v13 = vsel %vm1462_vm8, %v5120_v63, %v5176_v9  ;;  %v4392_v9 = vunpack.i.l.bf16 %v5212_v33 }
 0x1e1   : > { %3966 = vmatpush1.msk.msra.mxu0 %vm333_vm1, %v1097_v55  ;;  %v4195_v55 = vpack.c.bf16 %v4428_v44, %v4387_v59  ;;  %v1656_v14 = vsel %vm1655_vm10, %v4342_v41, %v4343_v62 }
 0x1e2   : > { %4170 = vmatprep.subr.bf16.mxu0 %v4169_v32  ;;  %v4433_v32 = vunpack.i.h.bf16 %v5269_v57 }
 0x1e3   : > { %4101 = vmatpush3.msk.msra.mxu1 %vm333_vm1, %v5018_v23  ;;  %v1464_v23 = vsel %vm1462_vm8, %v4338_v45, %v4377_v15  ;;  %v4427_v15 = vunpack.i.l.bf16 %v5290_v51  ;;  %v4348_v51 = vunpack.i.h.bf16 %v5086_v30 }
 0x1e4   : > { %4103 = vmatmul.mubr.msk.f32.vlgmr.msra.gmra.mrb[18].mxu1 %vm588_vm4, %v4891_v24  ;;  %4180 = vmatprep.subr.bf16.mxu1 %v6850_v27  ;;  %v5367_v16 = vpop.permute.xlu0 %2402  ;;  %v5369_v42 = vpop.permute.xlu1 %2330  ;;  %v4176_v0 = vpack.c.bf16 %v1466_v56, %v1464_v23  ;;  %v4202_v37 = vpack.c.bf16 %v4433_v32, %v4392_v9  ;;  %v4388_v56 = vunpack.i.h.bf16 %v5194_v31 }
 0x1e5   : > { %4182 = vmatpush3.bf16.msra.mxu1 %v4181_v6  ;;  %3967 = vmatmul.mubr.msk.f32.vlgmr.msra.gmra.mrb[10].mxu0 %vm588_vm4, %v4843_v8  ;;  %v4378_v8 = vunpack.i.h.bf16 %v5196_v25 }
 0x1e6   : > { %4109 = vmatprep.subr.mxu1 %v6849_v40  ;;  %4172 = vmatpush1.bf16.msra.mxu0 %v4171_v49  ;;  %v6855_v49 = vld [vmem:[#allocation22_spill] sm:$0xff]  ;;  %v1843_v31 = vsel %vm1840_vm11, %v4388_v56, %v4427_v15 }
 0x1e7   : > { %4111 = vmatprep.mubr.msk.f32.mxu1 %vm4511_vm0, %v6849_v40  ;;  %3970 = vmatprep.subr.msk.mxu0 %vm333_vm1, %v1283_v10  ;;  %v1465_v25 = vsel %vm1462_vm8, %v4378_v8, %v4417_v21  ;;  %v1661_v45 = vsel %vm1655_vm10, %v6855_v49, %v5037_v34  ;;  %v4347_v10 = vunpack.i.l.bf16 %v5086_v30  ;;  %v1842_v8 = vsel %vm1840_vm11, %v4348_v51, %v4387_v59 }
 0x1e8   : > { %v5386_v38 = vpop.permute.xlu0 %2410  ;;  %v5388_v19 = vpop.permute.xlu1 %2338  ;;  %1362 = vmatprep.mubr.f32.mxu0 %v6849_v40  ;;  %v4178_v3 = vpack.c.bf16 %v1465_v25, %v1463_v5  ;;  %v6858_v5 = vld [vmem:[#allocation5_spill] sm:$0xff] }
 0x1e9   : > { %4110 = vmatpush3.msk.msra.mxu1 %vm333_vm1, %v5028_v46  ;;  %v1657_v46 = vsel %vm1655_vm10, %v4343_v62, %v4382_v39  ;;  %v1844_v39 = vsel %vm1840_vm11, %v4427_v15, %v4428_v44  ;;  %v1841_v23 = vsel %vm1840_vm11, %v4347_v10, %v4348_v51  ;;  %v6862_v15 = vld [vmem:[#allocation23_spill] sm:$0xff]  ;;  %v6864_v51 = vld [vmem:[#allocation21_spill] sm:$0xff] }
 0x1ea   : > { %4112 = vmatmul.mubr.msk.f32.vlgmr.msra.gmra.mrb[20].mxu1 %vm588_vm4, %v4853_v11  ;;  %4187 = vmatprep.subr.bf16.mxu1 %v6850_v27  ;;  %v4183_v18 = vpack.c.bf16 %v1659_v22, %v1657_v46  ;;  %v4393_v22 = vunpack.i.h.bf16 %v5212_v33 }
 0x1eb   : > { %3971 = vmatpush1.msk.msra.mxu0 %vm333_vm1, %v1282_v50  ;;  %4189 = vmatpush3.bf16.msra.mxu1 %v4188_v54  ;;  %v4432_v54 = vunpack.i.l.bf16 %v5269_v57  ;;  %v6859_v57 = vld [vmem:[#allocation16_spill] sm:$0xff] }
 0x1ec   : > { %4177 = vmatprep.subr.bf16.mxu0 %v4176_v0  ;;  %v5405_v1 = vpop.permute.xlu0 %2546  ;;  %v5407_v47 = vpop.permute.xlu1 %2474  ;;  %4118 = vmatprep.subr.mxu1 %v6849_v40  ;;  %v6857_v0 = vld [vmem:[#allocation13_spill] sm:$0xff]  ;;  %v4353_v44 = vunpack.i.h.bf16 %v6859_v57 }
 0x1ed   : > { %4120 = vmatprep.mubr.msk.f32.mxu1 %vm4511_vm0, %v6849_v40  ;;  %3972 = vmatmul.mubr.msk.f32.vlgmr.msra.gmra.mrb[10].mxu0 %vm588_vm4, %v4891_v24  ;;  %v4383_v24 = vunpack.i.h.bf16 %v5202_v4  ;;  %v2029_v62 = vsel %vm2025_vm12, %v4432_v54, %v4433_v32  ;;  %v2028_v46 = vsel %vm2025_vm12, %v4393_v22, %v4432_v54  ;;  %v6875_v22 = vld [vmem:[#allocation14_spill] sm:$0xff] }
 0x1ee   : > { %4179 = vmatpush1.bf16.msra.mxu0 %v4178_v3  ;;  %1547 = vmatprep.mubr.f32.mxu0 %v6849_v40  ;;  %v6860_v3 = vld [vmem:[#allocation25_spill] sm:$0xff] }
 0x1ef   : > { %4119 = vmatpush3.msk.msra.mxu1 %vm333_vm1, %v5037_v34  ;;  %3975 = vmatprep.subr.msk.mxu0 %vm333_vm1, %v1468_v35  ;;  %v1658_v4 = vsel %vm1655_vm10, %v4383_v24, %v4422_v2  ;;  %v6856_v34 = vld [vmem:[#allocation19_spill] sm:$0xff]  ;;  %v4192_v2 = vpack.c.bf16 %v1843_v31, %v1841_v23  ;;  %v1846_v59 = vsel %vm1840_vm11, %v6860_v3, %v5026_v7  ;;  %v4352_v35 = vunpack.i.l.bf16 %v6859_v57 }
 0x1f0   : > { %4121 = vmatmul.mubr.msk.f32.vlgmr.msra.gmra.mrb[22].mxu1 %vm588_vm4, %v5417_v58  ;;  %v5431_v12 = vpop.permute.xlu0 %2262  ;;  %v5433_v26 = vpop.permute.xlu1 %2482  ;;  %4194 = vmatprep.subr.bf16.mxu1 %v6850_v27  ;;  %v4185_v6 = vpack.c.bf16 %v1658_v4, %v1656_v14  ;;  %v1660_v30 = vsel %vm1655_vm10, %v6856_v34, %v6855_v49  ;;  %v2027_v24 = vsel %vm2025_vm12, %v4353_v44, %v4392_v9 }
 0x1f1   : > { %4196 = vmatpush3.bf16.msra.mxu1 %v4195_v55  ;;  %4129 = vmatprep.mubr.msk.f32.mxu1 %vm4511_vm0, %v6849_v40  ;;  %v6861_v55 = vld [vmem:[#allocation18_spill] sm:$0xff]  ;;  %v2026_v4 = vsel %vm2025_vm12, %v4352_v35, %v4353_v44  ;;  %v2031_v14 = vsel %vm2025_vm12, %v6862_v15, %v6857_v0 }
 0x1f2   : > { %3976 = vmatpush1.msk.msra.mxu0 %vm333_vm1, %v1467_v13  ;;  %4127 = vmatprep.subr.mxu1 %v6849_v40  ;;  %v4197_v13 = vpack.c.bf16 %v2029_v62, %v2027_v24  ;;  %v4199_v32 = vpack.c.bf16 %v2028_v46, %v2026_v4  ;;  %v6874_v62 = vld [vmem:[#allocation12_spill] sm:$0xff] }
 0x1f3   : > { %4184 = vmatprep.subr.bf16.mxu0 %v4183_v18 }
 0x1f4   : > { %v5449_v21 = vpop.permute.xlu0 %2406  ;;  %v5451_v63 = vpop.permute.xlu1 %2334 }
 0x1f5   : > { %4128 = vmatpush3.msk.msra.mxu1 %vm333_vm1, %v5026_v7  ;;  %3977 = vmatmul.mubr.msk.f32.vlgmr.msra.gmra.mrb[10].mxu0 %vm588_vm4, %v4853_v11  ;;  %v1845_v7 = vsel %vm1840_vm11, %v6861_v55, %v6860_v3  ;;  %v6873_v3 = vld [vmem:[#allocation8_spill] sm:$0xff]  ;;  %v6876_v55 = vld [vmem:[#allocation11_spill] sm:$0xff] }
 0x1f6   : > { %4186 = vmatpush1.bf16.msra.mxu0 %v4185_v6  ;;  %4130 = vmatmul.mubr.msk.f32.vlgmr.msra.gmra.mrb[24].mxu1 %vm588_vm4, %v6854_v43 }
 0x1f7   : > { %4201 = vmatprep.subr.bf16.mxu1 %v6850_v27  ;;  %3980 = vmatprep.subr.msk.mxu0 %vm333_vm1, %v1661_v45  ;;  %v4190_v27 = vpack.c.bf16 %v1844_v39, %v1842_v8 }
 0x1f8   : > { %v5469_v11 = vpop.permute.xlu0 %2550  ;;  %v5471_v52 = vpop.permute.xlu1 %2478  ;;  %4203 = vmatpush3.bf16.msra.mxu1 %v4202_v37  ;;  %4138 = vmatprep.mubr.msk.f32.mxu1 %vm4511_vm0, %v6849_v40  ;;  %v2030_v37 = vsel %vm2025_vm12, %v6864_v51, %v6862_v15  ;;  %vm2893_vm0 = vcmask 122880  }
 0x1f9   : > { %4136 = vmatprep.subr.mxu1 %v6849_v40  ;;  %1740 = vmatprep.mubr.f32.mxu0 %v6849_v40 }
 0x1fa   : > { %3981 = vmatpush1.msk.msra.mxu0 %vm333_vm1, %v1660_v30 }
 0x1fb   : > { %4191 = vmatprep.subr.bf16.mxu0 %v4190_v27 }
 0x1fc   : > { %v5485_v50 = vpop.permute.xlu0 %2336  ;;  %v5487_v25 = vpop.permute.xlu1 %2264  ;;  %4137 = vmatpush3.msk.msra.mxu1 %vm333_vm1, %v6857_v0  ;;  %v6871_v0 = vld [vmem:[#allocation9_spill] sm:$0xff] }
 0x1fd   : > { %4139 = vmatmul.mubr.msk.f32.vlgmr.msra.gmra.mrb[26].mxu1 %vm588_vm4, %v6858_v5  ;;  %3982 = vmatmul.mubr.msk.f32.vlgmr.msra.gmra.mrb[10].mxu0 %vm588_vm4, %v5417_v58 }
 0x1fe   : > { %4193 = vmatpush1.bf16.msra.mxu0 %v4192_v2  ;;  %1925 = vmatprep.mubr.f32.mxu0 %v6849_v40 }
 0x1ff   : > { %3985 = vmatprep.subr.msk.mxu0 %vm333_vm1, %v1846_v59 }
 0x200   : > { %v5504_v41 = vpop.permute.xlu0 %2344  ;;  %v5506_v58 = vpop.permute.xlu1 %2272 }
 0x202   : > { %3986 = vmatpush1.msk.msra.mxu0 %vm333_vm1, %v1845_v7 }
 0x203   : > { %4198 = vmatprep.subr.bf16.mxu0 %v4197_v13  ;;  %v6877_v13 = vld [vmem:[#allocation17_spill] sm:$0xff] }
 0x204   : > { %v5515_v33 = vpop.permute.xlu0 %2480  ;;  %v5517_v18 = vpop.permute.xlu1 %2408 }
 0x205   : > { %3987 = vmatmul.mubr.msk.f32.vlgmr.msra.gmra.mrb[10].mxu0 %vm588_vm4, %v6854_v43 }
 0x206   : > { %4200 = vmatpush1.bf16.msra.mxu0 %v4199_v32  ;;  %2110 = vmatprep.mubr.f32.mxu0 %v6849_v40  ;;  %v6878_v32 = vld [vmem:[#allocation20_spill] sm:$0xff] }
 0x207   : > { %3990 = vmatprep.subr.msk.mxu0 %vm333_vm1, %v2031_v14  ;;  %v6879_v14 = vld [vmem:[#allocation15_spill] sm:$0xff] }
 0x208   : > { %v5526_v9 = vpop.permute.xlu1 %2416  ;;  %v5528_v6 = vpop.permute.xlu0 %2488 }
 0x209   : > { %6863 = vst [vmem:[#allocation7_spill] sm:$0xff] %v5528_v6 }
 0x20a   : > { %3991 = vmatpush1.msk.msra.mxu0 %vm333_vm1, %v2030_v37  ;;  %v5582_v37 = vld [vmem:[%s6762_s4] sm:$0xff]  ;;  %vm3273_vm1 = vcmask 15360  }
 0x20c   : > { %v5534_v43 = vpop.permute.xlu1 %2268  ;;  %v5538_v49 = vpop.permute.xlu0 %2340 }
 0x20d   : > { %3992 = vmatmul.mubr.msk.f32.vlgmr.msra.gmra.mrb[10].mxu0 %vm588_vm4, %v6858_v5  ;;  %v6872_v5 = vld [vmem:[#allocation10_spill] sm:$0xff] }
 0x210   : > { %v5540_v40 = vpop.permute.xlu1 %2412  ;;  %v5542_v45 = vpop.permute.xlu0 %2484 }
 0x211   : > { %6865 = vst [vmem:[#allocation22_spill] sm:$0xff] %v5542_v45 }
 0x214   : > { %v5544_v39 = vpop.permute.xlu1 %2342  ;;  %v5546_v10 = vpop.permute.xlu0 %2270 }
 0x218   : > { %v5548_v56 = vpop.permute.xlu1 %2486  ;;  %v5550_v8 = vpop.permute.xlu0 %2414 }
 0x219   : > { %6866 = vst [vmem:[#allocation19_spill] sm:$0xff] %v5548_v56 }
 0x21c   : > { %v5552_v34 = vpop.permute.xlu1 %2552  ;;  %v5554_v30 = vpop.permute.xlu0 %2554 }
 0x21d   : > { %6867 = vst [vmem:[#allocation13_spill] sm:$0xff] %v5554_v30 }
 0x220   : > { %v5556_v31 = vpop.permute.xlu1 %2556  ;;  %v5558_v27 = vpop.permute.xlu0 %2558 }
 0x221   : > { %6868 = vst [vmem:[#allocation5_spill] sm:$0xff] %v5556_v31  ;;  %6869 = vst [vmem:[#allocation16_spill] sm:$0xff] %v5558_v27 }
 0x224   : > { %v5560_v54 = vpop.permute.xlu1 %2560 }
 0x225   : > { %6870 = vst [vmem:[#allocation25_spill] sm:$0xff] %v5560_v54 }
 0x231   : > { %v2588_v23 = vpop.permute.xlu0 %2587 }
 0x232   : > { %v2598_v2 = vmul.f32 %v2588_v23, %v6871_v0  ;;  %v2599_v57 = vmul.f32 %v2588_v23, %v6872_v5  ;;  %v2600_v59 = vmul.f32 %v2588_v23, %v6873_v3  ;;  %v5589_v23 = vld [vmem:[%s6762_s4 + $0x10] sm:$0xff] }
 0x234   : > { %2616 = vrot.lane.b32.xlu0 %v2598_v2, %s4531_s22  ;;  %2618 = vrot.lane.b32.xlu1 %v2599_v57, %s4531_s22  ;;  %v4445_v2 = vld [vmem:[%s6762_s4 + $0x8] sm:$0xff]  ;;  %v4536_v57 = vmov 8  }
 0x235   : > { %v2592_v44 = vpop.permute.xlu1 %2591 }
 0x236   : > { %v2601_v35 = vmul.f32 %v2592_v44, %v6874_v62  ;;  %v2602_v24 = vmul.f32 %v2592_v44, %v6875_v22  ;;  %v2603_v7 = vmul.f32 %v2592_v44, %v6876_v55 }
 0x238   : > { %2620 = vrot.lane.b32.xlu0 %v2600_v59, %s4531_s22  ;;  %2622 = vrot.lane.b32.xlu1 %v2601_v35, %s4531_s22 }
 0x239   : > { %v2596_v46 = vpop.permute.xlu1 %2595 }
 0x23a   : > { %v2604_v4 = vmul.f32 %v2596_v46, %v6877_v13  ;;  %v2605_v15 = vmul.f32 %v2596_v46, %v6878_v32  ;;  %v2606_v51 = vmul.f32 %v2596_v46, %v6879_v14 }
 0x23c   : > { %2624 = vrot.lane.b32.xlu0 %v2602_v24, %s4531_s22  ;;  %2626 = vrot.lane.b32.xlu1 %v2603_v7, %s4531_s22 }
 0x240   : > { %2630 = vrot.lane.b32.xlu1 %v2605_v15, %s4531_s22  ;;  %2628 = vrot.lane.b32.xlu0 %v2604_v4, %s4531_s22 }
 0x244   : > { %2659 = vperm.xlu1 %4436, %v5582_v37   ;;  %2632 = vrot.lane.b32.xlu0 %v2606_v51, %s4531_s22 }
 0x248   : > { %2667 = vperm.xlu1 %4436, %v5589_v23   ;;  %2663 = vperm.xlu0 %4437, %v4445_v2  }
 0x24c   : > { %4438 = vset.pattern.permute.xlu0 %v4536_v57  ;;  %4440 = vset.pattern.permute.xlu1 %v4536_v57 }
 0x29d   : > { %v734_v44 = vpop.f32.mrb[10].mxu1 }
 0x29e   : > { %v4068_v59 = vpop.f32.mrb[11].mxu1 }
 0x2a3   : > { %v883_v35 = vpop.f32.mrb[12].mxu1 }
 0x2a4   : > { %v884_v24 = vadd.f32 %v883_v35, %v734_v44  ;;  %v4077_v7 = vpop.f32.mrb[13].mxu1 }
 0x2a6   : > { %v5595_v4 = vpop.permute.xlu0 %2616  ;;  %v5597_v54 = vpop.permute.xlu1 %2618 }
 0x2a7   : > { %6880 = vst [vmem:[#allocation18_spill] sm:$0xff] %v5595_v4  ;;  %6881 = vst [vmem:[#allocation23_spill] sm:$0xff] %v5597_v54 }
 0x2a9   : > { %v1065_v46 = vpop.f32.mrb[14].mxu1 }
 0x2aa   : > { %v1071_v15 = vadd.f32 %v1065_v46, %v884_v24  ;;  %v4086_v51 = vpop.f32.mrb[15].mxu1  ;;  %v5599_v31 = vpop.permute.xlu0 %2620 }
 0x2ab   : > { %6882 = vst [vmem:[#allocation21_spill] sm:$0xff] %v5599_v31  ;;  %v5601_v45 = vpop.permute.xlu1 %2622 }
 0x2ac   : > { %6883 = vst [vmem:[#allocation9_spill] sm:$0xff] %v5601_v45 }
 0x2ae   : > { %v5603_v57 = vpop.permute.xlu0 %2624 }
 0x2af   : > { %v5605_v35 = vpop.permute.xlu1 %2626 }
 0x2b0   : > { %v1250_v27 = vpop.f32.mrb[16].mxu1 }
 0x2b1   : > { %v1256_v30 = vadd.f32 %v1250_v27, %v1071_v15  ;;  %v4095_v6 = vpop.f32.mrb[17].mxu1 }
 0x2b2   : > { %v5607_v7 = vpop.permute.xlu0 %2628 }
 0x2b3   : > { %6884 = vst [vmem:[#allocation10_spill] sm:$0xff] %v5607_v7  ;;  %v5609_v4 = vpop.permute.xlu1 %2630 }
 0x2b6   : > { %v5611_v31 = vpop.permute.xlu0 %2632 }
 0x2b7   : > { %v1435_v59 = vpop.f32.mrb[18].mxu1  ;;  %6885 = vst [vmem:[#allocation8_spill] sm:$0xff] %v5611_v31 }
 0x2b8   : > { %v1441_v56 = vadd.f32 %v1435_v59, %v1256_v30  ;;  %v4104_v44 = vpop.f32.mrb[19].mxu1 }
 0x2bd   : > { %v1620_v24 = vpop.f32.mrb[20].mxu1 }
 0x2be   : > { %v1626_v46 = vadd.f32 %v1620_v24, %v1441_v56  ;;  %v4113_v51 = vpop.f32.mrb[21].mxu1 }
 0x2c3   : > { %v1813_v27 = vpop.f32.mrb[22].mxu1  ;;  %v2660_v6 = vpop.permute.xlu1 %2659 }
 0x2c4   : > { %v1819_v15 = vadd.f32 %v1813_v27, %v1626_v46  ;;  %v4122_v54 = vpop.f32.mrb[23].mxu1  ;;  %v2670_v45 = vmul.f32 %v2660_v6, %v6871_v0  ;;  %v2671_v30 = vmul.f32 %v2660_v6, %v6872_v5  ;;  %v2672_v56 = vmul.f32 %v2660_v6, %v6873_v3 }
 0x2c6   : > { %2690 = vrot.lane.b32.xlu0 %v2671_v30, %s4530_s21  ;;  %2688 = vrot.lane.b32.xlu1 %v2670_v45, %s4530_s21 }
 0x2c7   : > { %v2664_v59 = vpop.permute.xlu0 %2663  ;;  %v2668_v31 = vpop.permute.xlu1 %2667 }
 0x2c8   : > { %v2673_v44 = vmul.f32 %v2664_v59, %v6874_v62  ;;  %v2674_v51 = vmul.f32 %v2664_v59, %v6875_v22  ;;  %v2675_v27 = vmul.f32 %v2664_v59, %v6876_v55  ;;  %v2676_v45 = vmul.f32 %v2668_v31, %v6877_v13 }
 0x2c9   : > { %v1998_v24 = vpop.f32.mrb[24].mxu1  ;;  %v2677_v6 = vmul.f32 %v2668_v31, %v6878_v32  ;;  %v6887_v59 = vmov 0  }
 0x2ca   : > { %2694 = vrot.lane.b32.xlu0 %v2673_v44, %s4530_s21  ;;  %2692 = vrot.lane.b32.xlu1 %v2672_v56, %s4530_s21  ;;  %v2004_v46 = vadd.f32 %v1998_v24, %v1819_v15  ;;  %v4131_v54 = vpop.f32.mrb[25].mxu1  ;;  %v2678_v15 = vmul.f32 %v2668_v31, %v6879_v14 }
 0x2ce   : > { %2698 = vrot.lane.b32.xlu0 %v2675_v27, %s4530_s21  ;;  %2696 = vrot.lane.b32.xlu1 %v2674_v51, %s4530_s21 }
 0x2d0   : > { %v2183_v30 = vpop.f32.mrb[26].mxu1 }
 0x2d1   : > { %v5627_v7 = vadd.f32 %v2183_v30, %v2004_v46  ;;  %v4140_v44 = vpop.f32.mrb[27].mxu1 }
 0x2d2   : > { %2702 = vrot.lane.b32.xlu0 %v2677_v6, %s4530_s21  ;;  %2700 = vrot.lane.b32.xlu1 %v2676_v45, %s4530_s21 }
 0x2d3   : > { %6886 = vst [vmem:[#allocation12_spill] sm:$0xff] %v5627_v7 }
 0x2d6   : > { %2731 = vperm.xlu0 %4438, %v5582_v37   ;;  %2704 = vrot.lane.b32.xlu1 %v2678_v15, %s4530_s21  ;;  %s6820_s21 = smov 76  }
 0x2da   : > { %4439 = vset.pattern.permute.xlu0 %v6887_v59  ;;  %2735 = vperm.xlu1 %4440, %v4445_v2  }
 0x2db   : > { %2195 = vperm.xlu0 %4439, %v5582_v37  }
 0x2de   : > { %2739 = vperm.xlu1 %4440, %v5589_v23  }
 0x2df   : > { %2205 = vperm.xlu0 %4439, %v5589_v23  }
 0x2e0   : > { %v5638_v56 = vpop.f32.mrb[10].mxu0 }
 0x2e1   : > { %6888 = vst [vmem:[#allocation14_spill] sm:$0xff] %v5638_v56  ;;  %v5640_v24 = vpop.f32.mrb[11].mxu0 }
 0x2e2   : > { %6889 = vst [vmem:[#allocation11_spill] sm:$0xff] %v5640_v24  ;;  %4441 = vset.pattern.permute.xlu1 %v6887_v59 }
 0x338   : > { %v5643_v31 = vpop.permute.xlu1 %2688  ;;  %v5645_v46 = vpop.permute.xlu0 %2690 }
 0x33c   : > { %v5647_v54 = vpop.permute.xlu1 %2692  ;;  %v5649_v51 = vpop.permute.xlu0 %2694 }
 0x33d   : > { %6890 = vst [vmem:[#allocation17_spill] sm:$0xff] %v5647_v54 }
 0x340   : > { %v5651_v2 = vpop.permute.xlu1 %2696  ;;  %v5653_v37 = vpop.permute.xlu0 %2698 }
 0x344   : > { %v5655_v27 = vpop.permute.xlu1 %2700  ;;  %v5657_v23 = vpop.permute.xlu0 %2702 }
 0x345   : > { %6891 = vst [vmem:[#allocation20_spill] sm:$0xff] %v5655_v27  ;;  %6892 = vst [vmem:[#allocation15_spill] sm:$0xff] %v5657_v23  ;;  %v6895_v23 = vld [vmem:[#allocation27_spill] sm:$0xff] }
 0x348   : > { %v5659_v45 = vpop.permute.xlu1 %2704 }
 0x349   : > { %6893 = vst [vmem:[#allocation28_spill] sm:$0xff] %v5659_v45 }
 0x355   : > { %v2732_v6 = vpop.permute.xlu0 %2731 }
 0x356   : > { %v2742_v30 = vmul.f32 %v2732_v6, %v6871_v0  ;;  %v2743_v44 = vmul.f32 %v2732_v6, %v6872_v5  ;;  %v2744_v59 = vmul.f32 %v2732_v6, %v6873_v3 }
 0x358   : > { %2760 = vrot.lane.b32.xlu0 %v2742_v30, %s4532_s23  ;;  %2762 = vrot.lane.b32.xlu1 %v2743_v44, %s4532_s23 }
 0x359   : > { %v2736_v15 = vpop.permute.xlu1 %2735 }
 0x35a   : > { %v2745_v24 = vmul.f32 %v2736_v15, %v6874_v62  ;;  %v2746_v7 = vmul.f32 %v2736_v15, %v6875_v22  ;;  %v2747_v56 = vmul.f32 %v2736_v15, %v6876_v55 }
 0x35c   : > { %2764 = vrot.lane.b32.xlu0 %v2744_v59, %s4532_s23  ;;  %2766 = vrot.lane.b32.xlu1 %v2745_v24, %s4532_s23  ;;  %v2811_v24 = vld [vmem:[%s6763_s5] sm:$0xff] }
 0x35d   : > { %v2740_v45 = vpop.permute.xlu1 %2739 }
 0x35e   : > { %v2748_v30 = vmul.f32 %v2740_v45, %v6877_v13  ;;  %v2749_v44 = vmul.f32 %v2740_v45, %v6878_v32  ;;  %v2750_v6 = vmul.f32 %v2740_v45, %v6879_v14  ;;  %v2274_v45 = vsel %vm575_vm3, %v5315_v28, %v5327_v61 }
 0x360   : > { %2768 = vrot.lane.b32.xlu0 %v2746_v7, %s4532_s23  ;;  %2770 = vrot.lane.b32.xlu1 %v2747_v56, %s4532_s23  ;;  %v2823_v7 = vld [vmem:[%s6764_s6] sm:$0xff]  ;;  %v2196_v56 = vpop.permute.xlu0 %2195 }
 0x361   : > { %v2208_v15 = vmul.f32 %v2196_v56, %v6871_v0  ;;  %v2210_v59 = vmul.f32 %v2196_v56, %v6873_v3 }
 0x363   : > { %v2289_v0 = vadd.f32 %v2274_v45, %v2208_v15  ;;  %v2291_v3 = vadd.f32 %v6895_v23, %v2210_v59 }
 0x364   : > { %2774 = vrot.lane.b32.xlu1 %v2749_v44, %s4532_s23  ;;  %2772 = vrot.lane.b32.xlu0 %v2748_v30, %s4532_s23  ;;  %v2209_v30 = vmul.f32 %v2196_v56, %v6872_v5  ;;  %v2206_v44 = vpop.permute.xlu0 %2205  ;;  %v2275_v5 = vsel %vm575_vm3, %v5327_v61, %v6895_v23  ;;  %v2418_v61 = vsel %vm1092_vm6, %v5329_v48, %v5367_v16  ;;  %v6896_v23 = vld [vmem:[#allocation24_spill] sm:$0xff] }
 0x365   : > { %v2214_v56 = vmul.f32 %v2206_v44, %v6877_v13  ;;  %v2215_v28 = vmul.f32 %v2206_v44, %v6878_v32  ;;  %v2346_v13 = vsel %vm907_vm5, %v5288_v36, %v5369_v42  ;;  %v2363_v48 = vadd.f32 %v6896_v23, %v2291_v3 }
 0x366   : > { %v2290_v54 = vadd.f32 %v2275_v5, %v2209_v30 }
 0x368   : > { %2814 = vperm.xlu1 %4441, %v2811_v24   ;;  %2776 = vrot.lane.b32.xlu0 %v2750_v6, %s4532_s23  ;;  %v6894_v24 = vld [vmem:[#allocation6_spill] sm:$0xff]  ;;  %s6813_s23 = sand.u32 1, %s4500_s25  }
 0x369   : > { %v2213_v6 = vmul.f32 %v6894_v24, %v6876_v55  ;;  %v2211_v27 = vmul.f32 %v6894_v24, %v6874_v62  ;;  %v2212_v55 = vmul.f32 %v6894_v24, %v6875_v22  ;;  %v2277_v62 = vsel %vm575_vm3, %v5487_v25, %v5351_v20  ;;  %s3935_s18 = sshll.u32 %s6813_s23, 7  ;;  %s4548_s23 = smov 40  }
 0x36a   : > { %v2347_v22 = vsel %vm907_vm5, %v5369_v42, %v6896_v23  ;;  %v2348_v42 = vsel %vm907_vm5, %v5451_v63, %v5485_v50  ;;  %v2421_v63 = vsel %vm1092_vm6, %v5517_v18, %v5386_v38  ;;  %s5887_s29 = scalar_lea.vmem [#allocation2], %s3935_s18  ;;  %s4546_s18 = smov 2  }
 0x36b   : > { %v2294_v15 = vadd.f32 %v5351_v20, %v2213_v6  ;;  %v2279_v20 = vsel %vm575_vm3, %v5546_v10, %v5506_v58  ;;  %v2293_v59 = vadd.f32 %v2277_v62, %v2212_v55  ;;  %v2420_v6 = vsel %vm1092_vm6, %v5449_v21, %v5517_v18 }
 0x36c   : > { %2826 = vperm.xlu0 %4439, %v2823_v7   ;;  %v2276_v7 = vsel %vm575_vm3, %v5431_v12, %v5487_v25  ;;  %v2216_v12 = vmul.f32 %v2206_v44, %v6879_v14  ;;  %v2278_v25 = vsel %vm575_vm3, %v5534_v43, %v5546_v10  ;;  %v2361_v14 = vadd.f32 %v2346_v13, %v2289_v0 }
 0x36d   : > { %v2292_v32 = vadd.f32 %v2276_v7, %v2211_v27  ;;  %v2295_v30 = vadd.f32 %v2278_v25, %v2214_v56  ;;  %v2296_v44 = vadd.f32 %v2279_v20, %v2215_v28  ;;  %v2366_v36 = vadd.f32 %v5388_v19, %v2294_v15 }
 0x36e   : > { %v2362_v27 = vadd.f32 %v2347_v22, %v2290_v54  ;;  %v2297_v45 = vadd.f32 %v5506_v58, %v2216_v12  ;;  %v2419_v43 = vsel %vm1092_vm6, %v5367_v16, %v5224_v29  ;;  %v2349_v10 = vsel %vm907_vm5, %v5485_v50, %v5388_v19  ;;  %v6897_v12 = vld [vmem:[#allocation26_spill] sm:$0xff] }
 0x36f   : > { %v2364_v24 = vadd.f32 %v2348_v42, %v2292_v32  ;;  %v2350_v58 = vsel %vm907_vm5, %v5538_v49, %v5544_v39  ;;  %v2351_v16 = vsel %vm907_vm5, %v5544_v39, %v5504_v41  ;;  %v2433_v19 = vadd.f32 %v2418_v61, %v2361_v14 }
 0x370   : > { %v2365_v54 = vadd.f32 %v2349_v10, %v2293_v59  ;;  %v2435_v21 = vadd.f32 %v5224_v29, %v2363_v48  ;;  %v2367_v0 = vadd.f32 %v2350_v58, %v2295_v30  ;;  %v2368_v5 = vadd.f32 %v2351_v16, %v2296_v44  ;;  %v6898_v59 = vld [vmem:[#allocation19_spill] sm:$0xff]  ;;  %v6899_v48 = vld [vmem:[#allocation22_spill] sm:$0xff]  ;;  %v6903_v58 = vld [vmem:[#allocation16_spill] sm:$0xff] }
 0x371   : > { %v2438_v3 = vadd.f32 %v5386_v38, %v2366_v36  ;;  %v2434_v56 = vadd.f32 %v2419_v43, %v2362_v27  ;;  %v2369_v18 = vadd.f32 %v5504_v41, %v2297_v45  ;;  %v2562_v49 = vsel %vm1462_vm8, %v5353_v53, %v5405_v1  ;;  %v6900_v30 = vld [vmem:[#allocation7_spill] sm:$0xff]  ;;  %v6902_v43 = vld [vmem:[#allocation9_spill] sm:$0xff] }
 0x372   : > { %v2490_v39 = vsel %vm1277_vm7, %v5313_v17, %v5407_v47  ;;  %v2436_v28 = vadd.f32 %v2420_v6, %v2364_v24  ;;  %v2437_v55 = vadd.f32 %v2421_v63, %v2365_v54  ;;  %v2563_v29 = vsel %vm1462_vm8, %v5405_v1, %v5232_v60  ;;  %v6904_v16 = vld [vmem:[#allocation5_spill] sm:$0xff]  ;;  %v6906_v54 = vld [vmem:[#allocation18_spill] sm:$0xff] }
 0x373   : > { %v2422_v38 = vsel %vm1092_vm6, %v5540_v40, %v5550_v8  ;;  %v2423_v53 = vsel %vm1092_vm6, %v5550_v8, %v5526_v9  ;;  %v2505_v41 = vadd.f32 %v2490_v39, %v2433_v19  ;;  %v2491_v17 = vsel %vm1277_vm7, %v5407_v47, %v6897_v12  ;;  %v6905_v19 = vld [vmem:[#allocation23_spill] sm:$0xff] }
 0x374   : > { %v2439_v15 = vadd.f32 %v2422_v38, %v2367_v0  ;;  %v2440_v61 = vadd.f32 %v2423_v53, %v2368_v5  ;;  %v2507_v13 = vadd.f32 %v6897_v12, %v2435_v21  ;;  %v2492_v1 = vsel %vm1277_vm7, %v5471_v52, %v5515_v33  ;;  %v6907_v0 = vld [vmem:[#allocation25_spill] sm:$0xff] }
 0x375   : > { %v2493_v40 = vsel %vm1277_vm7, %v5515_v33, %v5433_v26  ;;  %v2441_v32 = vadd.f32 %v5526_v9, %v2369_v18  ;;  %v2506_v8 = vadd.f32 %v2491_v17, %v2434_v56  ;;  %v2510_v22 = vadd.f32 %v5433_v26, %v2438_v3  ;;  %v6901_v9 = vld [vmem:[#allocation13_spill] sm:$0xff] }
 0x376   : > { %v2508_v25 = vadd.f32 %v2492_v1, %v2436_v28  ;;  %v2509_v47 = vadd.f32 %v2493_v40, %v2437_v55  ;;  %v2564_v20 = vsel %vm1462_vm8, %v5469_v11, %v5552_v34  ;;  %v2494_v52 = vsel %vm1277_vm7, %v6899_v48, %v6898_v59  ;;  %v6908_v3 = vld [vmem:[#allocation21_spill] sm:$0xff] }
 0x377   : > { %v2495_v33 = vsel %vm1277_vm7, %v6898_v59, %v6900_v30  ;;  %v2565_v44 = vsel %vm1462_vm8, %v5552_v34, %v6901_v9  ;;  %v2577_v26 = vadd.f32 %v2562_v49, %v2505_v41  ;;  %v2582_v36 = vadd.f32 %v6901_v9, %v2510_v22 }
 0x378   : > { %v2579_v42 = vadd.f32 %v5232_v60, %v2507_v13  ;;  %v2511_v27 = vadd.f32 %v2494_v52, %v2439_v15  ;;  %v2512_v11 = vadd.f32 %v2495_v33, %v2440_v61  ;;  %v2580_v45 = vadd.f32 %v2564_v20, %v2508_v25  ;;  %v6910_v61 = vld [vmem:[#allocation8_spill] sm:$0xff] }
 0x379   : > { %v2636_v10 = vsel %vm1655_vm10, %v6902_v43, %v5603_v57  ;;  %v2578_v24 = vadd.f32 %v2563_v29, %v2506_v8  ;;  %v2513_v6 = vadd.f32 %v6900_v30, %v2441_v32  ;;  %v2581_v63 = vadd.f32 %v2565_v44, %v2509_v47  ;;  %v6911_v32 = vld [vmem:[#allocation17_spill] sm:$0xff]  ;;  %v6912_v44 = vld [vmem:[#allocation15_spill] sm:$0xff] }
 0x37a   : > { %v2566_v34 = vsel %vm1462_vm8, %v6904_v16, %v6903_v58  ;;  %v2634_v21 = vsel %vm1655_vm10, %v6906_v54, %v6905_v19  ;;  %v2637_v60 = vsel %vm1655_vm10, %v5603_v57, %v5605_v35  ;;  %v2567_v5 = vsel %vm1462_vm8, %v6903_v58, %v6907_v0  ;;  %v6909_v57 = vld [vmem:[#allocation10_spill] sm:$0xff]  ;;  %v6916_v58 = vld [vmem:[#allocation12_spill] sm:$0xff] }
 0x37b   : > { %v2635_v56 = vsel %vm1655_vm10, %v6905_v19, %v6908_v3  ;;  %v2654_v18 = vadd.f32 %v5605_v35, %v2582_v36  ;;  %v2649_v49 = vadd.f32 %v2634_v21, %v2577_v26  ;;  %v2652_v55 = vadd.f32 %v2636_v10, %v2580_v45  ;;  %v6913_v26 = vld [vmem:[#allocation20_spill] sm:$0xff]  ;;  %v6917_v21 = vld [vmem:[#allocation11_spill] sm:$0xff] }
 0x37c   : > { %v2651_v29 = vadd.f32 %v6908_v3, %v2579_v42  ;;  %v2583_v38 = vadd.f32 %v2566_v34, %v2511_v27  ;;  %v2584_v53 = vadd.f32 %v2567_v5, %v2512_v11  ;;  %v2653_v41 = vadd.f32 %v2637_v60, %v2581_v63  ;;  %v6914_v36 = vld [vmem:[#allocation28_spill] sm:$0xff] }
 0x37d   : > { %v2638_v12 = vsel %vm1655_vm10, %v6909_v57, %v5609_v4  ;;  %v2650_v17 = vadd.f32 %v2635_v56, %v2578_v24  ;;  %v2585_v15 = vadd.f32 %v6907_v0, %v2513_v6  ;;  %v2639_v35 = vsel %vm1655_vm10, %v5609_v4, %v6910_v61  ;;  %v6915_v6 = vld [vmem:[#allocation14_spill] sm:$0xff] }
 0x37e   : > { %v2706_v13 = vsel %vm1840_vm11, %v5643_v31, %v5645_v46  ;;  %v2708_v1 = vsel %vm1840_vm11, %v5649_v51, %v5651_v2  ;;  %v2709_v40 = vsel %vm1840_vm11, %v5651_v2, %v5653_v37  ;;  %v2707_v8 = vsel %vm1840_vm11, %v5645_v46, %v6911_v32 }
 0x37f   : > { %v2726_v22 = vadd.f32 %v5653_v37, %v2654_v18  ;;  %v2721_v25 = vadd.f32 %v2706_v13, %v2649_v49  ;;  %v2723_v31 = vadd.f32 %v6911_v32, %v2651_v29  ;;  %v2655_v47 = vadd.f32 %v2638_v12, %v2583_v38 }
 0x380   : > { %v2656_v20 = vadd.f32 %v2639_v35, %v2584_v53  ;;  %v2724_v2 = vadd.f32 %v2708_v1, %v2652_v55  ;;  %v2725_v59 = vadd.f32 %v2709_v40, %v2653_v41  ;;  %v2722_v48 = vadd.f32 %v2707_v8, %v2650_v17 }
 0x381   : > { %v2657_v46 = vadd.f32 %v6910_v61, %v2585_v15  ;;  %v2711_v42 = vsel %vm1840_vm11, %v6912_v44, %v6914_v36  ;;  %v4537_v34 = vmov 1966171168   ;;  %v2840_v54 = vlaneseq }
 0x382   : > { %v2728_v43 = vadd.f32 %v2711_v42, %v2656_v20  ;;  %v2838_v19 = vunpack.c.l.s4 %v4537_v34 }
 0x384   : > { %v2839_v53 = vunpack.c.0.s8 %v2838_v19 }
 0x3ca   : > { %v5741_v7 = vpop.permute.xlu0 %2760  ;;  %v5752_v50 = vpop.permute.xlu1 %2762 }
 0x3cb   : > { %v2778_v4 = vsel %vm2025_vm12, %v5741_v7, %v5752_v50 }
 0x3cc   : > { %v2793_v30 = vadd.f32 %v2778_v4, %v2721_v25 }
 0x3ce   : > { %v5763_v62 = vpop.permute.xlu0 %2764  ;;  %v2767_v23 = vpop.permute.xlu1 %2766  ;;  %v2802_v63 = vadd.f32 %v2793_v30, %v6915_v6 }
 0x3cf   : > { %v2779_v51 = vsel %vm2025_vm12, %v5752_v50, %v5763_v62  ;;  %v2795_v33 = vadd.f32 %v5763_v62, %v2723_v31  ;;  %v2710_v50 = vsel %vm1840_vm11, %v6913_v26, %v6912_v44 }
 0x3d0   : > { %v2794_v27 = vadd.f32 %v2779_v51, %v2722_v48  ;;  %v2727_v11 = vadd.f32 %v2710_v50, %v2655_v47 }
 0x3d1   : > { %v2804_v16 = vadd.f32 %v2795_v33, %v6916_v58 }
 0x3d2   : > { %v2769_v14 = vpop.permute.xlu0 %2768  ;;  %v2771_v39 = vpop.permute.xlu1 %2770  ;;  %v2803_v60 = vadd.f32 %v2794_v27, %v6917_v21 }
 0x3d3   : > { %v2780_v7 = vsel %vm2025_vm12, %v2767_v23, %v2769_v14  ;;  %v2781_v9 = vsel %vm2025_vm12, %v2769_v14, %v2771_v39  ;;  %v2798_v23 = vadd.f32 %v2771_v39, %v2726_v22  ;;  %v2729_v14 = vadd.f32 %v6914_v36, %v2657_v46 }
 0x3d4   : > { %v2796_v62 = vadd.f32 %v2780_v7, %v2724_v2  ;;  %v2797_v24 = vadd.f32 %v2781_v9, %v2725_v59 }
 0x3d5   : > { %v2807_v49 = vadd.f32 %v2804_v16, %v2798_v23 }
 0x3d6   : > { %v2773_v28 = vpop.permute.xlu0 %2772  ;;  %v2775_v52 = vpop.permute.xlu1 %2774  ;;  %v2805_v56 = vadd.f32 %v2802_v63, %v2796_v62  ;;  %v2806_v18 = vadd.f32 %v2803_v60, %v2797_v24 }
 0x3d7   : > { %v2782_v45 = vsel %vm2025_vm12, %v2773_v28, %v2775_v52  ;;  %v5864_v28 = vshrl.u32 %v2840_v54, 7 }
 0x3d8   : > { %v2799_v0 = vadd.f32 %v2782_v45, %v2727_v11 }
 0x3d9   : > { %v5868_v17 = vsub.s32 %v2839_v53, %v5864_v28  ;;  %v5874_v31 = vsub.s32 0, %v5864_v28  ;;  %v5916_v63 = vsub.s32 1, %v5864_v28 }
 0x3da   : > { %v2777_v37 = vpop.permute.xlu0 %2776  ;;  %v2808_v39 = vadd.f32 %v2805_v56, %v2799_v0 }
 0x3db   : > { %v2783_v10 = vsel %vm2025_vm12, %v2775_v52, %v2777_v37  ;;  %v2801_v3 = vadd.f32 %v2777_v37, %v2729_v14 }
 0x3dc   : > { %v2800_v5 = vadd.f32 %v2783_v10, %v2728_v43 }
 0x3dd   : > { %v2810_v29 = vadd.f32 %v2807_v49, %v2801_v3 }
 0x3de   : > { %v2809_v55 = vadd.f32 %v2806_v18, %v2800_v5 }
 0x3e7   : > { %v2815_v38 = vpop.permute.xlu1 %2814 }
 0x3e8   : > { %v2817_v41 = vadd.f32 %v2815_v38, %v2808_v39  ;;  %v2818_v57 = vadd.f32 %v2815_v38, %v2809_v55  ;;  %v2819_v12 = vadd.f32 %v2815_v38, %v2810_v29 }
 0x3ea   : > { %vm2820_vm13 = vcmp.ge.f32.partialorder %v2817_v41, 0.0  ;;  %vm2821_vm14 = vcmp.ge.f32.partialorder %v2818_v57, 0.0  ;;  %vm2822_vm15 = vcmp.ge.f32.partialorder %v2819_v12, 0.0 }
 0x3eb   : > { %v2827_v15 = vpop.permute.xlu0 %2826 }
 0x3ec   : > { %v2829_v61 = vmul.f32 %v2827_v15, %v2817_v41  ;;  %v2830_v35 = vmul.f32 %v2827_v15, %v2818_v57  ;;  %v2831_v13 = vmul.f32 %v2827_v15, %v2819_v12 }
 0x3ee   : > { %v2832_v1 = vsel %vm2820_vm13, %v2817_v41, %v2829_v61  ;;  %v2833_v40 = vsel %vm2821_vm14, %v2818_v57, %v2830_v35  ;;  %v2834_v32 = vsel %vm2822_vm15, %v2819_v12, %v2831_v13 }
 0x3ef   : > { %v2836_v8 = vcombine.high %v2832_v1, %v2832_v1  ;;  %v2843_v22 = vrot.slane %v2832_v1, %v5868_v17  ;;  %v3127_v25 = vcombine.low %v2832_v1, %v2833_v40  ;;  %v3128_v4 = vcombine.high %v2832_v1, %v2833_v40 }
 0x3f0   : > { %v3298_v51 = vcombine.high %v2833_v40, %v2833_v40  ;;  %v3572_v47 = vcombine.low %v2833_v40, %v2834_v32  ;;  %v3573_v20 = vcombine.high %v2833_v40, %v2834_v32  ;;  %v3749_v52 = vrot.slane %v2834_v32, %v5868_v17 }
 0x3f1   : > { %v2850_v2 = vrot.slane %v2836_v8, %v5868_v17  ;;  %v2851_v59 = vcombine.high %v2843_v22, %v2843_v22  ;;  %v2859_v48 = vrot.slane %v2843_v22, %v5868_v17  ;;  %v3305_v46 = vrot.slane %v2833_v40, %v5868_v17 }
 0x3f2   : > { %v5881_v37 = vrot.slane %v3298_v51, %v5868_v17  ;;  %v3742_v30 = vcombine.high %v2834_v32, %v2834_v32  ;;  %v3765_v44 = vrot.slane %v3749_v52, %v5868_v17  ;;  %v3757_v26 = vcombine.high %v3749_v52, %v3749_v52 }
 0x3f3   : > { %v2852_v33 = vcombine.high %v2850_v2, %v2850_v2  ;;  %v5884_v7 = vrot.slane %v2850_v2, %v5868_v17  ;;  %v2873_v9 = vrot.slane %v2851_v59, %v5868_v17  ;;  %2894 = vst.msk [vmem:[%s5887_s29] sm:$0x1] %vm2893_vm0, %v2859_v48  ;;  %v3313_v11 = vcombine.high %v3305_v46, %v3305_v46 }
 0x3f4   : > { %v3756_v50 = vrot.slane %v3742_v30, %v5868_v17  ;;  %v3794_v42 = vrot.slane %v3765_v44, %v5874_v31  ;;  %v3787_v27 = vcombine.high %v3765_v44, %v3765_v44  ;;  %v3779_v45 = vrot.slane %v3757_v26, %v5868_v17 }
 0x3f5   : > { %v5894_v36 = vrot.slane %v2852_v33, %v5868_v17  ;;  %2895 = vst.msk [vmem:[%s5887_s29 + $0x10] sm:$0x1] %vm2893_vm0, %v2873_v9  ;;  %2898 = vst.msk [vmem:[%s5887_s29 + $0x40] sm:$0x1] %vm2893_vm0, %v5884_v7  ;;  %v3135_v10 = vrot.slane %v3127_v25, %v5868_v17  ;;  %v3142_v24 = vrot.slane %v3128_v4, %v5868_v17 }
 0x3f6   : > { %v5904_v43 = vrot.slane %v3756_v50, %v5868_v17  ;;  %3823 = vrot.lane.b32.xlu0 %v3794_v42, %s6814_s8  ;;  %v3758_v62 = vcombine.high %v3756_v50, %v3756_v50  ;;  %v5912_v23 = vcombine.high %v2859_v48, %v2859_v48  ;;  %v3798_v14 = vrot.slane %v3779_v45, %v5874_v31 }
 0x3f7   : > { %2899 = vst.msk [vmem:[%s5887_s29 + $0x50] sm:$0x1] %vm2893_vm0, %v5894_v36  ;;  %v3789_v6 = vcombine.high %v3779_v45, %v3779_v45  ;;  %v3802_v58 = vrot.slane %v3787_v27, %v5874_v31  ;;  %v5920_v16 = vrot.slane %v3305_v46, %v5868_v17  ;;  %v5923_v34 = vrot.slane %v3135_v10, %v5868_v17 }
 0x3f8   : > { %v5926_v19 = vrot.slane %v3142_v24, %v5868_v17  ;;  %2896 = vst.msk [vmem:[%s5887_s29 + $0x20] sm:$0x1] %vm2893_vm0, %v5912_v23  ;;  %3825 = vrot.lane.b32.xlu1 %v3798_v14, %s6814_s8  ;;  %v3810_v54 = vrot.slane %v5904_v43, %v5874_v31  ;;  %v5935_v21 = vrot.slane %v2859_v48, %v5874_v31 }
 0x3f9   : > { %v5938_v60 = vrot.slane %v3313_v11, %v5868_v17  ;;  %v3580_v0 = vrot.slane %v3572_v47, %v5868_v17  ;;  %v3806_v5 = vrot.slane %v3789_v6, %v5874_v31  ;;  %v5944_v3 = vrot.slane %v3758_v62, %v5868_v17 }
 0x3fa   : > { %3827 = vrot.lane.b32.xlu0 %v3802_v58, %s6814_s8  ;;  %v3587_v56 = vrot.slane %v3573_v20, %v5868_v17  ;;  %v2883_v18 = vcombine.high %v2873_v9, %v2873_v9  ;;  %v5952_v28 = vrot.slane %v5894_v36, %v5874_v31  ;;  %v3180_v39 = vrot.slane %v5923_v34, %v5874_v31 }
 0x3fb   : > { %v5948_v49 = vrot.slane %v3580_v0, %v5868_v17  ;;  %v3212_v55 = vrot.slane %v5926_v19, %v5874_v31  ;;  %v3343_v53 = vcombine.high %v5920_v16, %v5920_v16  ;;  %v3328_v41 = vrot.slane %v5881_v37, %v5868_v17 }
 0x3fc   : > { %v5959_v29 = vrot.slane %v3587_v56, %v5868_v17  ;;  %v5962_v38 = vrot.slane %v2883_v18, %v5874_v31  ;;  %2897 = vst.msk [vmem:[%s5887_s29 + $0x30] sm:$0x1] %vm2893_vm0, %v2883_v18  ;;  %3829 = vrot.lane.b32.xlu1 %v3806_v5, %s6814_s8  ;;  %v5972_v57 = vrot.slane %v2873_v9, %v5874_v31 }
 0x3fd   : > { %v3143_v12 = vcombine.high %v3135_v10, %v3135_v10  ;;  %v5976_v15 = vcombine.high %v5923_v34, %v5923_v34  ;;  %v3144_v61 = vcombine.high %v3142_v24, %v3142_v24  ;;  %v3814_v35 = vrot.slane %v5944_v3, %v5874_v31 }
 0x3fe   : > { %3831 = vrot.lane.b32.xlu0 %v3810_v54, %s6814_s8  ;;  %v5982_v13 = vrot.slane %v3343_v53, %v5874_v31  ;;  %v5985_v1 = vrot.slane %v3328_v41, %v5874_v31  ;;  %v5989_v40 = vcombine.high %v5926_v19, %v5926_v19  ;;  %v3345_v25 = vcombine.high %v5938_v60, %v5938_v60 }
 0x3ff   : > { %v5992_v32 = vrot.slane %v3143_v12, %v5868_v17  ;;  %v3200_v8 = vrot.slane %v5976_v15, %v5916_v63  ;;  %v5997_v22 = vrot.slane %v3144_v61, %v5868_v17  ;;  %v3314_v51 = vcombine.high %v5881_v37, %v5881_v37 }
 0x400   : > { %v3232_v4 = vrot.slane %v5989_v40, %v5916_v63  ;;  %v3625_v47 = vrot.slane %v5948_v49, %v5874_v31  ;;  %v3657_v20 = vrot.slane %v5959_v29, %v5874_v31  ;;  %3833 = vrot.lane.b32.xlu1 %v3814_v35, %s6814_s8  ;;  %v6015_v48 = vrot.slane %v3345_v25, %v5874_v31  ;;  %s6822_s8 = smov 22  }
 0x401   : > { %v3192_v2 = vrot.slane %v5992_v32, %v5916_v63  ;;  %v3224_v59 = vrot.slane %v5997_v22, %v5916_v63  ;;  %v2882_v52 = vcombine.high %v5884_v7, %v5884_v7  ;;  %v3342_v46 = vrot.slane %v3314_v51, %v5868_v17 }
 0x402   : > { %2966 = vrot.lane.b32.xlu0 %v5935_v21, %s4531_s22  ;;  %v3588_v37 = vcombine.high %v3580_v0, %v3580_v0  ;;  %v6024_v30 = vcombine.high %v5948_v49, %v5948_v49  ;;  %v3188_v33 = vrot.slane %v5992_v32, %v5874_v31  ;;  %v3589_v44 = vcombine.high %v3587_v56, %v3587_v56 }
 0x403   : > { %v6029_v9 = vrot.slane %v2882_v52, %v5874_v31  ;;  %2900 = vst.msk [vmem:[%s5887_s29 + $0x60] sm:$0x1] %vm2893_vm0, %v2882_v52  ;;  %v3196_v26 = vrot.slane %v5976_v15, %v5874_v31  ;;  %v6037_v50 = vcombine.high %v5959_v29, %v5959_v29  ;;  %v6040_v42 = vrot.slane %v3342_v46, %v5874_v31 }
 0x404   : > { %v6043_v27 = vrot.slane %v3588_v37, %v5868_v17  ;;  %v3645_v11 = vrot.slane %v6024_v30, %v5916_v63  ;;  %v3220_v45 = vrot.slane %v5997_v22, %v5874_v31  ;;  %2934 = vrot.lane.b32.xlu1 %v5935_v21, %s4529_s19  ;;  %v6052_v10 = vrot.slane %v3589_v44, %v5868_v17 }
 0x405   : > { %v3677_v62 = vrot.slane %v6037_v50, %v5916_v63  ;;  %v3228_v24 = vrot.slane %v5989_v40, %v5874_v31  ;;  %v3344_v14 = vcombine.high %v3328_v41, %v3328_v41  ;;  %v2884_v58 = vcombine.high %v5894_v36, %v5894_v36 }
 0x406   : > { %2998 = vrot.lane.b32.xlu0 %v5935_v21, %s4539_s9  ;;  %v3637_v6 = vrot.slane %v6043_v27, %v5916_v63  ;;  %v3633_v17 = vrot.slane %v6043_v27, %v5874_v31  ;;  %v3641_v54 = vrot.slane %v6024_v30, %v5874_v31  ;;  %v3669_v0 = vrot.slane %v6052_v10, %v5916_v63 }
 0x407   : > { %v6071_v5 = vrot.slane %v3344_v14, %v5874_v31  ;;  %v6075_v56 = vcombine.high %v5992_v32, %v5992_v32  ;;  %v3665_v18 = vrot.slane %v6052_v10, %v5874_v31  ;;  %v6080_v36 = vrot.slane %v2884_v58, %v5874_v31  ;;  %2901 = vst.msk [vmem:[%s5887_s29 + $0x70] sm:$0x1] %vm2893_vm0, %v2884_v58 }
 0x408   : > { %v6086_v53 = vcombine.high %v5997_v22, %v5997_v22  ;;  %v3346_v12 = vcombine.high %v3342_v46, %v3342_v46  ;;  %2936 = vrot.lane.b32.xlu1 %v5972_v57, %s4529_s19  ;;  %v6098_v25 = vcombine.high %v6043_v27, %v6043_v27  ;;  %v6102_v51 = vcombine.high %v6052_v10, %v6052_v10 }
 0x409   : > { %v3208_v61 = vrot.slane %v6075_v56, %v5916_v63  ;;  %v3788_v44 = vcombine.high %v5904_v43, %v5904_v43  ;;  %v3790_v37 = vcombine.high %v5944_v3, %v5944_v3  ;;  %v3350_v3 = vrot.slane %v5920_v16, %v5874_v31 }
 0x40a   : > { %3030 = vrot.lane.b32.xlu0 %v5935_v21, %s6818_s13  ;;  %v3240_v52 = vrot.slane %v6086_v53, %v5916_v63  ;;  %v6109_v46 = vrot.slane %v3346_v12, %v5874_v31  ;;  %v3649_v14 = vrot.slane %v6098_v25, %v5874_v31  ;;  %v3681_v58 = vrot.slane %v6102_v51, %v5874_v31 }
 0x40b   : > { %v3653_v35 = vrot.slane %v6098_v25, %v5916_v63  ;;  %v3685_v41 = vrot.slane %v6102_v51, %v5916_v63  ;;  %v6124_v12 = vrot.slane %v3788_v44, %v5874_v31  ;;  %v6133_v43 = vrot.slane %v3790_v37, %v5874_v31 }
 0x40c   : > { %2968 = vrot.lane.b32.xlu1 %v5972_v57, %s4531_s22  ;;  %v3184_v16 = vrot.slane %v5923_v34, %v5916_v63  ;;  %v2913_v37 = vrot.slane %v5912_v23, %v5874_v31  ;;  %v2921_v44 = vrot.slane %v5884_v7, %v5874_v31  ;;  %v3629_v23 = vrot.slane %v5948_v49, %v5916_v63 }
 0x40d   : > { %v3661_v7 = vrot.slane %v5959_v29, %v5916_v63 }
 0x40e   : > { %3062 = vrot.lane.b32.xlu0 %v5935_v21, %s4541_s14 }
 0x410   : > { %3000 = vrot.lane.b32.xlu1 %v5972_v57, %s4539_s9 }
 0x412   : > { %3094 = vrot.lane.b32.xlu0 %v5935_v21, %s4542_s15  ;;  %v3216_v21 = vrot.slane %v5926_v19, %v5916_v63 }
 0x414   : > { %3032 = vrot.lane.b32.xlu1 %v5972_v57, %s6818_s13 }
 0x416   : > { %3379 = vrot.lane.b32.xlu0 %v3350_v3, %s4543_s16 }
 0x418   : > { %3064 = vrot.lane.b32.xlu1 %v5972_v57, %s4541_s14 }
 0x41a   : > { %3411 = vrot.lane.b32.xlu0 %v3350_v3, %s6816_s17 }
 0x41c   : > { %3096 = vrot.lane.b32.xlu1 %v5972_v57, %s4542_s15  ;;  %v3354_v57 = vrot.slane %v5938_v60, %v5874_v31 }
 0x41e   : > { %3443 = vrot.lane.b32.xlu0 %v3350_v3, %s6820_s21 }
 0x420   : > { %3243 = vrot.lane.b32.xlu1 %v3184_v16, %s4546_s18 }
 0x422   : > { %3475 = vrot.lane.b32.xlu0 %v3350_v3, %s4547_s20 }
 0x424   : > { %3259 = vrot.lane.b32.xlu1 %v3216_v21, %s4546_s18 }
 0x426   : > { %3507 = vrot.lane.b32.xlu0 %v3350_v3, %s4548_s23 }
 0x428   : > { %3381 = vrot.lane.b32.xlu1 %v3354_v57, %s4543_s16 }
 0x42a   : > { %3539 = vrot.lane.b32.xlu0 %v3350_v3, %s6822_s8 }
 0x42c   : > { %3413 = vrot.lane.b32.xlu1 %v3354_v57, %s6816_s17  ;;  %s4550_s17 = smov 4  }
 0x42e   : > { %2938 = vrot.lane.b32.xlu0 %v2913_v37, %s4529_s19 }
 0x430   : > { %3445 = vrot.lane.b32.xlu1 %v3354_v57, %s6820_s21 }
 0x432   : > { %2942 = vrot.lane.b32.xlu0 %v2921_v44, %s4529_s19 }
 0x434   : > { %3477 = vrot.lane.b32.xlu1 %v3354_v57, %s4547_s20 }
 0x436   : > { %2970 = vrot.lane.b32.xlu0 %v2913_v37, %s4531_s22 }
 0x438   : > { %3509 = vrot.lane.b32.xlu1 %v3354_v57, %s4548_s23 }
 0x43a   : > { %2974 = vrot.lane.b32.xlu0 %v2921_v44, %s4531_s22 }
 0x43c   : > { %3541 = vrot.lane.b32.xlu1 %v3354_v57, %s6822_s8 }
 0x43e   : > { %3002 = vrot.lane.b32.xlu0 %v2913_v37, %s4539_s9 }
 0x440   : > { %3688 = vrot.lane.b32.xlu1 %v3629_v23, %s4550_s17 }
 0x442   : > { %3006 = vrot.lane.b32.xlu0 %v2921_v44, %s4539_s9 }
 0x444   : > { %3704 = vrot.lane.b32.xlu1 %v3661_v7, %s4550_s17 }
 0x446   : > { %3034 = vrot.lane.b32.xlu0 %v2913_v37, %s6818_s13 }
 0x448   : > { %2940 = vrot.lane.b32.xlu1 %v5962_v38, %s4529_s19 }
 0x44a   : > { %3038 = vrot.lane.b32.xlu0 %v2921_v44, %s6818_s13 }
 0x44c   : > { %2944 = vrot.lane.b32.xlu1 %v5952_v28, %s4529_s19 }
 0x44e   : > { %3066 = vrot.lane.b32.xlu0 %v2913_v37, %s4541_s14 }
 0x450   : > { %2972 = vrot.lane.b32.xlu1 %v5962_v38, %s4531_s22 }
 0x452   : > { %3070 = vrot.lane.b32.xlu0 %v2921_v44, %s4541_s14 }
 0x454   : > { %2976 = vrot.lane.b32.xlu1 %v5952_v28, %s4531_s22 }
 0x456   : > { %3098 = vrot.lane.b32.xlu0 %v2913_v37, %s4542_s15 }
 0x458   : > { %3004 = vrot.lane.b32.xlu1 %v5962_v38, %s4539_s9 }
 0x45a   : > { %3102 = vrot.lane.b32.xlu0 %v2921_v44, %s4542_s15 }
 0x45c   : > { %3008 = vrot.lane.b32.xlu1 %v5952_v28, %s4539_s9 }
 0x45e   : > { %3241 = vrot.lane.b32.xlu0 %v3180_v39, %s4546_s18 }
 0x460   : > { %3036 = vrot.lane.b32.xlu1 %v5962_v38, %s6818_s13 }
 0x462   : > { %3257 = vrot.lane.b32.xlu0 %v3212_v55, %s4546_s18 }
 0x464   : > { %3040 = vrot.lane.b32.xlu1 %v5952_v28, %s6818_s13  ;;  %s6918_s13 = smov 94  }
 0x466   : > { %3383 = vrot.lane.b32.xlu0 %v5982_v13, %s4543_s16 }
 0x468   : > { %v3824_v60 = vpop.permute.xlu0 %3823  ;;  %3068 = vrot.lane.b32.xlu1 %v5962_v38, %s4541_s14 }
 0x469   : > { %3847 = vst.msk [vmem:[%s5887_s29 + $0xf] sm:$0x1] %vm2893_vm0, %v3824_v60 }
 0x46a   : > { %3387 = vrot.lane.b32.xlu0 %v5985_v1, %s4543_s16  ;;  %v3826_v34 = vpop.permute.xlu1 %3825 }
 0x46b   : > { %3848 = vst.msk [vmem:[%s5887_s29 + $0x1f] sm:$0x1] %vm2893_vm0, %v3826_v34 }
 0x46c   : > { %v3828_v19 = vpop.permute.xlu0 %3827  ;;  %3072 = vrot.lane.b32.xlu1 %v5952_v28, %s4541_s14 }
 0x46d   : > { %3849 = vst.msk [vmem:[%s5887_s29 + $0x2f] sm:$0x1] %vm2893_vm0, %v3828_v19 }
 0x46e   : > { %3415 = vrot.lane.b32.xlu0 %v5982_v13, %s6918_s13  ;;  %v3830_v39 = vpop.permute.xlu1 %3829 }
 0x46f   : > { %3850 = vst.msk [vmem:[%s5887_s29 + $0x3f] sm:$0x1] %vm2893_vm0, %v3830_v39 }
 0x470   : > { %v3832_v55 = vpop.permute.xlu0 %3831  ;;  %3100 = vrot.lane.b32.xlu1 %v5962_v38, %s4542_s15 }
 0x471   : > { %3851 = vst.msk [vmem:[%s5887_s29 + $0x4f] sm:$0x1] %vm2893_vm0, %v3832_v55 }
 0x472   : > { %3419 = vrot.lane.b32.xlu0 %v5985_v1, %s6918_s13  ;;  %v3834_v3 = vpop.permute.xlu1 %3833 }
 0x473   : > { %3852 = vst.msk [vmem:[%s5887_s29 + $0x5f] sm:$0x1] %vm2893_vm0, %v3834_v3 }
 0x474   : > { %v2967_v16 = vpop.permute.xlu0 %2966  ;;  %3104 = vrot.lane.b32.xlu1 %v5952_v28, %s4542_s15 }
 0x475   : > { %2990 = vst.msk [vmem:[%s5887_s29 + $0x2] sm:$0x1] %vm2893_vm0, %v2967_v16 }
 0x476   : > { %3447 = vrot.lane.b32.xlu0 %v5982_v13, %s6820_s21  ;;  %v2935_v21 = vpop.permute.xlu1 %2934 }
 0x477   : > { %2958 = vst.msk [vmem:[%s5887_s29 + $0x1] sm:$0x1] %vm2893_vm0, %v2935_v21 }
 0x478   : > { %v2999_v38 = vpop.permute.xlu0 %2998  ;;  %3247 = vrot.lane.b32.xlu1 %v3192_v2, %s4546_s18 }
 0x479   : > { %3022 = vst.msk [vmem:[%s5887_s29 + $0x3] sm:$0x1] %vm2893_vm0, %v2999_v38 }
 0x47a   : > { %3451 = vrot.lane.b32.xlu0 %v5985_v1, %s6820_s21  ;;  %v2937_v28 = vpop.permute.xlu1 %2936 }
 0x47b   : > { %2959 = vst.msk [vmem:[%s5887_s29 + $0x11] sm:$0x1] %vm2893_vm0, %v2937_v28 }
 0x47c   : > { %v3031_v57 = vpop.permute.xlu0 %3030  ;;  %3251 = vrot.lane.b32.xlu1 %v3200_v8, %s4546_s18 }
 0x47d   : > { %3054 = vst.msk [vmem:[%s5887_s29 + $0x4] sm:$0x1] %vm2893_vm0, %v3031_v57 }
 0x47e   : > { %3479 = vrot.lane.b32.xlu0 %v5982_v13, %s4547_s20  ;;  %v2969_v2 = vpop.permute.xlu1 %2968 }
 0x47f   : > { %2991 = vst.msk [vmem:[%s5887_s29 + $0x12] sm:$0x1] %vm2893_vm0, %v2969_v2 }
 0x480   : > { %v3063_v37 = vpop.permute.xlu0 %3062  ;;  %3263 = vrot.lane.b32.xlu1 %v3224_v59, %s4546_s18 }
 0x481   : > { %3086 = vst.msk [vmem:[%s5887_s29 + $0x5] sm:$0x1] %vm2893_vm0, %v3063_v37 }
 0x482   : > { %3483 = vrot.lane.b32.xlu0 %v5985_v1, %s4547_s20  ;;  %v3001_v8 = vpop.permute.xlu1 %3000 }
 0x483   : > { %3023 = vst.msk [vmem:[%s5887_s29 + $0x13] sm:$0x1] %vm2893_vm0, %v3001_v8 }
 0x484   : > { %v3095_v44 = vpop.permute.xlu0 %3094  ;;  %3267 = vrot.lane.b32.xlu1 %v3232_v4, %s4546_s18 }
 0x485   : > { %3118 = vst.msk [vmem:[%s5887_s29 + $0x6] sm:$0x1] %vm2893_vm0, %v3095_v44 }
 0x486   : > { %3511 = vrot.lane.b32.xlu0 %v5982_v13, %s4548_s23  ;;  %v3033_v59 = vpop.permute.xlu1 %3032 }
 0x487   : > { %3055 = vst.msk [vmem:[%s5887_s29 + $0x14] sm:$0x1] %vm2893_vm0, %v3033_v59 }
 0x488   : > { %v3380_v23 = vpop.permute.xlu0 %3379  ;;  %3385 = vrot.lane.b32.xlu1 %v6015_v48, %s4543_s16 }
 0x489   : > { %3403 = vst.msk [vmem:[%s5887_s29 + $0x8] sm:$0x1] %vm2893_vm0, %v3380_v23 }
 0x48a   : > { %3515 = vrot.lane.b32.xlu0 %v5985_v1, %s4548_s23  ;;  %v3065_v7 = vpop.permute.xlu1 %3064 }
 0x48b   : > { %3087 = vst.msk [vmem:[%s5887_s29 + $0x15] sm:$0x1] %vm2893_vm0, %v3065_v7 }
 0x48c   : > { %v3412_v4 = vpop.permute.xlu0 %3411  ;;  %3389 = vrot.lane.b32.xlu1 %v6040_v42, %s4543_s16 }
 0x48d   : > { %3435 = vst.msk [vmem:[%s5887_s29 + $0x9] sm:$0x1] %vm2893_vm0, %v3412_v4 }
 0x48e   : > { %3686 = vrot.lane.b32.xlu0 %v3625_v47, %s4550_s17  ;;  %v3097_v60 = vpop.permute.xlu1 %3096 }
 0x48f   : > { %3119 = vst.msk [vmem:[%s5887_s29 + $0x16] sm:$0x1] %vm2893_vm0, %v3097_v60 }
 0x490   : > { %v3444_v34 = vpop.permute.xlu0 %3443  ;;  %3417 = vrot.lane.b32.xlu1 %v6015_v48, %s6918_s13 }
 0x491   : > { %3467 = vst.msk [vmem:[%s5887_s29 + $0xa] sm:$0x1] %vm2893_vm0, %v3444_v34 }
 0x492   : > { %3702 = vrot.lane.b32.xlu0 %v3657_v20, %s4550_s17  ;;  %v6313_v19 = vpop.permute.xlu1 %3243 }
 0x494   : > { %v3476_v49 = vpop.permute.xlu0 %3475  ;;  %3421 = vrot.lane.b32.xlu1 %v6040_v42, %s6918_s13 }
 0x495   : > { %3499 = vst.msk [vmem:[%s5887_s29 + $0xb] sm:$0x1] %vm2893_vm0, %v3476_v49 }
 0x496   : > { %3543 = vrot.lane.b32.xlu0 %v5982_v13, %s6822_s8  ;;  %v6321_v47 = vpop.permute.xlu1 %3259 }
 0x498   : > { %v3508_v39 = vpop.permute.xlu0 %3507  ;;  %3449 = vrot.lane.b32.xlu1 %v6015_v48, %s6820_s21 }
 0x499   : > { %3531 = vst.msk [vmem:[%s5887_s29 + $0xc] sm:$0x1] %vm2893_vm0, %v3508_v39 }
 0x49a   : > { %3547 = vrot.lane.b32.xlu0 %v5985_v1, %s6822_s8  ;;  %v3382_v29 = vpop.permute.xlu1 %3381 }
 0x49b   : > { %3404 = vst.msk [vmem:[%s5887_s29 + $0x18] sm:$0x1] %vm2893_vm0, %v3382_v29 }
 0x49c   : > { %v3540_v20 = vpop.permute.xlu0 %3539  ;;  %3453 = vrot.lane.b32.xlu1 %v6040_v42, %s6820_s21  ;;  %s6919_s21 = smov 56  }
 0x49d   : > { %3563 = vst.msk [vmem:[%s5887_s29 + $0xd] sm:$0x1] %vm2893_vm0, %v3540_v20 }
 0x49e   : > { %2946 = vrot.lane.b32.xlu0 %v6029_v9, %s4529_s19  ;;  %v3414_v13 = vpop.permute.xlu1 %3413 }
 0x49f   : > { %3436 = vst.msk [vmem:[%s5887_s29 + $0x19] sm:$0x1] %vm2893_vm0, %v3414_v13 }
 0x4a0   : > { %v2939_v55 = vpop.permute.xlu0 %2938  ;;  %3481 = vrot.lane.b32.xlu1 %v6015_v48, %s4547_s20 }
 0x4a1   : > { %2960 = vst.msk [vmem:[%s5887_s29 + $0x21] sm:$0x1] %vm2893_vm0, %v2939_v55 }
 0x4a2   : > { %2978 = vrot.lane.b32.xlu0 %v6029_v9, %s4531_s22  ;;  %v3446_v1 = vpop.permute.xlu1 %3445 }
 0x4a3   : > { %3468 = vst.msk [vmem:[%s5887_s29 + $0x1a] sm:$0x1] %vm2893_vm0, %v3446_v1 }
 0x4a4   : > { %v2943_v3 = vpop.permute.xlu0 %2942  ;;  %3485 = vrot.lane.b32.xlu1 %v6040_v42, %s4547_s20 }
 0x4a5   : > { %2962 = vst.msk [vmem:[%s5887_s29 + $0x41] sm:$0x1] %vm2893_vm0, %v2943_v3 }
 0x4a6   : > { %3010 = vrot.lane.b32.xlu0 %v6029_v9, %s4539_s9  ;;  %v3478_v16 = vpop.permute.xlu1 %3477 }
 0x4a7   : > { %3500 = vst.msk [vmem:[%s5887_s29 + $0x1b] sm:$0x1] %vm2893_vm0, %v3478_v16 }
 0x4a8   : > { %v2971_v21 = vpop.permute.xlu0 %2970  ;;  %3513 = vrot.lane.b32.xlu1 %v6015_v48, %s4548_s23 }
 0x4a9   : > { %2992 = vst.msk [vmem:[%s5887_s29 + $0x22] sm:$0x1] %vm2893_vm0, %v2971_v21 }
 0x4aa   : > { %3042 = vrot.lane.b32.xlu0 %v6029_v9, %s6919_s21  ;;  %v3510_v38 = vpop.permute.xlu1 %3509 }
 0x4ab   : > { %3532 = vst.msk [vmem:[%s5887_s29 + $0x1c] sm:$0x1] %vm2893_vm0, %v3510_v38 }
 0x4ac   : > { %v2975_v28 = vpop.permute.xlu0 %2974  ;;  %3517 = vrot.lane.b32.xlu1 %v6040_v42, %s4548_s23 }
 0x4ad   : > { %2994 = vst.msk [vmem:[%s5887_s29 + $0x42] sm:$0x1] %vm2893_vm0, %v2975_v28 }
 0x4ae   : > { %3074 = vrot.lane.b32.xlu0 %v6029_v9, %s4541_s14  ;;  %v3542_v57 = vpop.permute.xlu1 %3541 }
 0x4af   : > { %3564 = vst.msk [vmem:[%s5887_s29 + $0x1d] sm:$0x1] %vm2893_vm0, %v3542_v57 }
 0x4b0   : > { %v3003_v2 = vpop.permute.xlu0 %3002  ;;  %3692 = vrot.lane.b32.xlu1 %v3637_v6, %s4550_s17 }
 0x4b1   : > { %3024 = vst.msk [vmem:[%s5887_s29 + $0x23] sm:$0x1] %vm2893_vm0, %v3003_v2 }
 0x4b2   : > { %3106 = vrot.lane.b32.xlu0 %v6029_v9, %s4542_s15  ;;  %v6379_v37 = vpop.permute.xlu1 %3688 }
 0x4b4   : > { %v3007_v8 = vpop.permute.xlu0 %3006  ;;  %3696 = vrot.lane.b32.xlu1 %v3645_v11, %s4550_s17 }
 0x4b5   : > { %3026 = vst.msk [vmem:[%s5887_s29 + $0x43] sm:$0x1] %vm2893_vm0, %v3007_v8 }
 0x4b6   : > { %3245 = vrot.lane.b32.xlu0 %v3188_v33, %s4546_s18  ;;  %v6391_v6 = vpop.permute.xlu1 %3704 }
 0x4b8   : > { %v3035_v9 = vpop.permute.xlu0 %3034  ;;  %3708 = vrot.lane.b32.xlu1 %v3669_v0, %s4550_s17 }
 0x4b9   : > { %3056 = vst.msk [vmem:[%s5887_s29 + $0x24] sm:$0x1] %vm2893_vm0, %v3035_v9 }
 0x4ba   : > { %3249 = vrot.lane.b32.xlu0 %v3196_v26, %s4546_s18  ;;  %v2941_v32 = vpop.permute.xlu1 %2940 }
 0x4bb   : > { %2961 = vst.msk [vmem:[%s5887_s29 + $0x31] sm:$0x1] %vm2893_vm0, %v2941_v32 }
 0x4bc   : > { %v3039_v33 = vpop.permute.xlu0 %3038  ;;  %3712 = vrot.lane.b32.xlu1 %v3677_v62, %s4550_s17 }
 0x4bd   : > { %3058 = vst.msk [vmem:[%s5887_s29 + $0x44] sm:$0x1] %vm2893_vm0, %v3039_v33 }
 0x4be   : > { %3261 = vrot.lane.b32.xlu0 %v3220_v45, %s4546_s18  ;;  %v2945_v15 = vpop.permute.xlu1 %2944 }
 0x4bf   : > { %2963 = vst.msk [vmem:[%s5887_s29 + $0x51] sm:$0x1] %vm2893_vm0, %v2945_v15 }
 0x4c0   : > { %v3067_v26 = vpop.permute.xlu0 %3066  ;;  %3545 = vrot.lane.b32.xlu1 %v6015_v48, %s6822_s8 }
 0x4c1   : > { %3088 = vst.msk [vmem:[%s5887_s29 + $0x25] sm:$0x1] %vm2893_vm0, %v3067_v26 }
 0x4c2   : > { %3265 = vrot.lane.b32.xlu0 %v3228_v24, %s4546_s18  ;;  %v2973_v11 = vpop.permute.xlu1 %2972 }
 0x4c3   : > { %2993 = vst.msk [vmem:[%s5887_s29 + $0x32] sm:$0x1] %vm2893_vm0, %v2973_v11 }
 0x4c4   : > { %v3071_v22 = vpop.permute.xlu0 %3070  ;;  %3549 = vrot.lane.b32.xlu1 %v6040_v42, %s6822_s8  ;;  %s6920_s8 = smov 76  }
 0x4c5   : > { %3090 = vst.msk [vmem:[%s5887_s29 + $0x45] sm:$0x1] %vm2893_vm0, %v3071_v22 }
 0x4c6   : > { %3391 = vrot.lane.b32.xlu0 %v6071_v5, %s4543_s16  ;;  %v2977_v48 = vpop.permute.xlu1 %2976 }
 0x4c7   : > { %2995 = vst.msk [vmem:[%s5887_s29 + $0x52] sm:$0x1] %vm2893_vm0, %v2977_v48 }
 0x4c8   : > { %v3099_v45 = vpop.permute.xlu0 %3098  ;;  %2948 = vrot.lane.b32.xlu1 %v6080_v36, %s4529_s19  ;;  %s6922_s19 = smov 22  }
 0x4c9   : > { %3120 = vst.msk [vmem:[%s5887_s29 + $0x26] sm:$0x1] %vm2893_vm0, %v3099_v45 }
 0x4ca   : > { %3423 = vrot.lane.b32.xlu0 %v6071_v5, %s6918_s13  ;;  %v3005_v40 = vpop.permute.xlu1 %3004 }
 0x4cb   : > { %3025 = vst.msk [vmem:[%s5887_s29 + $0x33] sm:$0x1] %vm2893_vm0, %v3005_v40 }
 0x4cc   : > { %v3103_v42 = vpop.permute.xlu0 %3102  ;;  %2980 = vrot.lane.b32.xlu1 %v6080_v36, %s4531_s22  ;;  %s4000_s22 = sshll.u32 %s4614_s28, 11 }
 0x4cd   : > { %3122 = vst.msk [vmem:[%s5887_s29 + $0x46] sm:$0x1] %vm2893_vm0, %v3103_v42 }
 0x4ce   : > { %3455 = vrot.lane.b32.xlu0 %v6071_v5, %s6920_s8  ;;  %v3009_v62 = vpop.permute.xlu1 %3008 }
 0x4cf   : > { %3027 = vst.msk [vmem:[%s5887_s29 + $0x53] sm:$0x1] %vm2893_vm0, %v3009_v62 }
 0x4d0   : > { %v3242_v24 = vpop.permute.xlu0 %3241  ;;  %3012 = vrot.lane.b32.xlu1 %v6080_v36, %s4539_s9 }
 0x4d1   : > { %v3274_v0 = vsel %vm3273_vm1, %v3242_v24, %v6313_v19 }
 0x4d2   : > { %3290 = vst.msk [vmem:[%s5887_s29 + $0x7] sm:$0x1] %vm2893_vm0, %v3274_v0  ;;  %3487 = vrot.lane.b32.xlu0 %v6071_v5, %s4547_s20  ;;  %v3037_v44 = vpop.permute.xlu1 %3036 }
 0x4d3   : > { %3057 = vst.msk [vmem:[%s5887_s29 + $0x34] sm:$0x1] %vm2893_vm0, %v3037_v44 }
 0x4d4   : > { %v3258_v59 = vpop.permute.xlu0 %3257  ;;  %3044 = vrot.lane.b32.xlu1 %v6080_v36, %s6919_s21 }
 0x4d5   : > { %v3278_v23 = vsel %vm3273_vm1, %v3258_v59, %v6321_v47 }
 0x4d6   : > { %3294 = vst.msk [vmem:[%s5887_s29 + $0x47] sm:$0x1] %vm2893_vm0, %v3278_v23  ;;  %3519 = vrot.lane.b32.xlu0 %v6071_v5, %s4548_s23  ;;  %v3041_v7 = vpop.permute.xlu1 %3040 }
 0x4d7   : > { %3059 = vst.msk [vmem:[%s5887_s29 + $0x54] sm:$0x1] %vm2893_vm0, %v3041_v7 }
 0x4d8   : > { %v3384_v4 = vpop.permute.xlu0 %3383  ;;  %3076 = vrot.lane.b32.xlu1 %v6080_v36, %s4541_s14  ;;  %s6926_s14 = sand.u32 1, %s4500_s25  }
 0x4d9   : > { %3405 = vst.msk [vmem:[%s5887_s29 + $0x28] sm:$0x1] %vm2893_vm0, %v3384_v4 }
 0x4da   : > { %3690 = vrot.lane.b32.xlu0 %v3633_v17, %s4550_s17  ;;  %v3069_v60 = vpop.permute.xlu1 %3068 }
 0x4db   : > { %3089 = vst.msk [vmem:[%s5887_s29 + $0x35] sm:$0x1] %vm2893_vm0, %v3069_v60 }
 0x4dc   : > { %v3388_v34 = vpop.permute.xlu0 %3387  ;;  %3108 = vrot.lane.b32.xlu1 %v6080_v36, %s4542_s15  ;;  %s6716_s15 = scalar_lea.sflag [#allocation3], %s6926_s14 }
 0x4dd   : > { %3407 = vst.msk [vmem:[%s5887_s29 + $0x48] sm:$0x1] %vm2893_vm0, %v3388_v34 }
 0x4de   : > { %3694 = vrot.lane.b32.xlu0 %v3641_v54, %s4550_s17  ;;  %v3073_v19 = vpop.permute.xlu1 %3072  ;;  %v6921_v54 = vrot.slane %v6037_v50, %v5874_v31  ;;  %v6923_v50 = vrot.slane %v6075_v56, %v5874_v31 }
 0x4df   : > { %3091 = vst.msk [vmem:[%s5887_s29 + $0x55] sm:$0x1] %vm2893_vm0, %v3073_v19 }
 0x4e0   : > { %v3416_v27 = vpop.permute.xlu0 %3415  ;;  %3255 = vrot.lane.b32.xlu1 %v3208_v61, %s4546_s18 }
 0x4e1   : > { %3437 = vst.msk [vmem:[%s5887_s29 + $0x29] sm:$0x1] %vm2893_vm0, %v3416_v27 }
 0x4e2   : > { %3706 = vrot.lane.b32.xlu0 %v3665_v18, %s4550_s17  ;;  %v3101_v30 = vpop.permute.xlu1 %3100 }
 0x4e3   : > { %3121 = vst.msk [vmem:[%s5887_s29 + $0x36] sm:$0x1] %vm2893_vm0, %v3101_v30 }
 0x4e4   : > { %v3420_v17 = vpop.permute.xlu0 %3419  ;;  %3271 = vrot.lane.b32.xlu1 %v3240_v52, %s4546_s18 }
 0x4e5   : > { %3439 = vst.msk [vmem:[%s5887_s29 + $0x49] sm:$0x1] %vm2893_vm0, %v3420_v17 }
 0x4e6   : > { %3710 = vrot.lane.b32.xlu0 %v6921_v54, %s4550_s17  ;;  %v3105_v10 = vpop.permute.xlu1 %3104 }
 0x4e7   : > { %3123 = vst.msk [vmem:[%s5887_s29 + $0x56] sm:$0x1] %vm2893_vm0, %v3105_v10 }
 0x4e8   : > { %v3448_v18 = vpop.permute.xlu0 %3447  ;;  %3393 = vrot.lane.b32.xlu1 %v6109_v46, %s4543_s16  ;;  %s4551_s16 = smov [#allocation2]  }
 0x4e9   : > { %3469 = vst.msk [vmem:[%s5887_s29 + $0x2a] sm:$0x1] %vm2893_vm0, %v3448_v18 }
 0x4ea   : > { %3551 = vrot.lane.b32.xlu0 %v6071_v5, %s6922_s19  ;;  %v6521_v36 = vpop.permute.xlu1 %3247  ;;  %v6924_v5 = vrot.slane %v6086_v53, %v5874_v31 }
 0x4ec   : > { %v3452_v61 = vpop.permute.xlu0 %3451  ;;  %3425 = vrot.lane.b32.xlu1 %v6109_v46, %s6918_s13  ;;  %s6708_s13 = scalar_lea.hbm %s6765_s7, %s4000_s22 }
 0x4ed   : > { %3471 = vst.msk [vmem:[%s5887_s29 + $0x4a] sm:$0x1] %vm2893_vm0, %v3452_v61 }
 0x4ee   : > { %3253 = vrot.lane.b32.xlu0 %v6923_v50, %s4546_s18  ;;  %v6531_v52 = vpop.permute.xlu1 %3251 }
 0x4f0   : > { %v3480_v49 = vpop.permute.xlu0 %3479  ;;  %3457 = vrot.lane.b32.xlu1 %v6109_v46, %s6920_s8 }
 0x4f1   : > { %3501 = vst.msk [vmem:[%s5887_s29 + $0x2b] sm:$0x1] %vm2893_vm0, %v3480_v49 }
 0x4f2   : > { %3269 = vrot.lane.b32.xlu0 %v6924_v5, %s4546_s18  ;;  %v6541_v47 = vpop.permute.xlu1 %3263 }
 0x4f4   : > { %v3484_v39 = vpop.permute.xlu0 %3483  ;;  %3489 = vrot.lane.b32.xlu1 %v6109_v46, %s4547_s20  ;;  %s6925_s20 = smov 114  }
 0x4f5   : > { %3503 = vst.msk [vmem:[%s5887_s29 + $0x4b] sm:$0x1] %vm2893_vm0, %v3484_v39 }
 0x4f6   : > { %3698 = vrot.lane.b32.xlu0 %v3649_v14, %s4550_s17  ;;  %v6551_v56 = vpop.permute.xlu1 %3267 }
 0x4f8   : > { %v3512_v29 = vpop.permute.xlu0 %3511  ;;  %3521 = vrot.lane.b32.xlu1 %v6109_v46, %s4548_s23  ;;  %s3869_s23 = sshll.u32 %s5887_s29, 4  ;;  %s6710_s23 = int_to_ptr.vmem [resolvable:$true] %s3869_s23 }
 0x4f9   : > { %3533 = vst.msk [vmem:[%s5887_s29 + $0x2c] sm:$0x1] %vm2893_vm0, %v3512_v29  ;;  %s4446_s28 = scalar_lea.vmem %s6710_s23, 2048 }
 0x4fa   : > { %3714 = vrot.lane.b32.xlu0 %v3681_v58, %s4550_s17  ;;  %v3386_v53 = vpop.permute.xlu1 %3385  ;;  %p4447_p11 = scmp.ne.s32.totalorder %s6710_s23, %s4446_s28 }
 0x4fb   : > { %3406 = vst.msk [vmem:[%s5887_s29 + $0x38] sm:$0x1] %vm2893_vm0, %v3386_v53 }
 0x4fc   : > { %v3516_v14 = vpop.permute.xlu0 %3515  ;;  %3700 = vrot.lane.b32.xlu1 %v3653_v35, %s4550_s17  ;;  %p4448_p12 = pnand %p4447_p11, %p4631_p5 }
 0x4fd   : > { %3535 = vst.msk [vmem:[%s5887_s29 + $0x4c] sm:$0x1] %vm2893_vm0, %v3516_v14 }
 0x4fe   : > { %3835 = vrot.lane.b32.xlu0 %v6124_v12, %s6925_s20  ;;  %v3390_v20 = vpop.permute.xlu1 %3389  ;;  %p4449_p13 = pneg %p4448_p12 }
 0x4ff   : > { %3408 = vst.msk [vmem:[%s5887_s29 + $0x58] sm:$0x1] %vm2893_vm0, %v3390_v20 }
 0x500   : > { %v3687_v31 = vpop.permute.xlu0 %3686  ;;  %3716 = vrot.lane.b32.xlu1 %v3685_v41, %s4550_s17  ;;  %s4450_s17 = sshll.u32 %s4551_s16, 4  ;;  %s4451_s17 = int_to_ptr.vmem [resolvable:$false] %s4450_s17 }
 0x501   : > { %v3718_v58 = vsel %vm317_vm2, %v3687_v31, %v6379_v37  ;;  %s4452_s21 = scalar_lea.vmem %s4451_s17, 4096  ;;  %p4453_p0 = scmp.lt.s32.totalorder %s6710_s23, %s4451_s17 }
 0x502   : > { %3734 = vst.msk [vmem:[%s5887_s29 + $0xe] sm:$0x1] %vm2893_vm0, %v3718_v58  ;;  %v3418_v35 = vpop.permute.xlu1 %3417  ;;  %p4454_p1 = scmp.lt.s32.totalorder %s4452_s21, %s4446_s28 }
 0x503   : > { %3438 = vst.msk [vmem:[%s5887_s29 + $0x39] sm:$0x1] %vm2893_vm0, %v3418_v35 }
 0x504   : > { %v3703_v25 = vpop.permute.xlu0 %3702  ;;  %3553 = vrot.lane.b32.xlu1 %v6109_v46, %s6922_s19  ;;  %p4455_p2 = por %p4454_p1, %p4453_p0 }
 0x505   : > { %v3722_v12 = vsel %vm317_vm2, %v3703_v25, %v6391_v6 }
 0x506   : > { %3738 = vst.msk [vmem:[%s5887_s29 + $0x4e] sm:$0x1] %vm2893_vm0, %v3722_v12  ;;  %v3422_v63 = vpop.permute.xlu1 %3421  ;;  %p4456_p3 = pnand %p4455_p2, %p4449_p13 }
 0x507   : > { %3440 = vst.msk [vmem:[%s5887_s29 + $0x59] sm:$0x1] %vm2893_vm0, %v3422_v63 }
 0x508   : > { %v3544_v41 = vpop.permute.xlu0 %3543  ;;  %3837 = vrot.lane.b32.xlu1 %v6133_v43, %s6925_s20 }
 0x509   : > { %3565 = vst.msk [vmem:[%s5887_s29 + $0x2d] sm:$0x1] %vm2893_vm0, %v3544_v41 }
 0x50a   : > { %v3450_v51 = vpop.permute.xlu1 %3449 }
 0x50b   : > { %3470 = vst.msk [vmem:[%s5887_s29 + $0x3a] sm:$0x1] %vm2893_vm0, %v3450_v51 }
 0x50c   : > { %v3548_v46 = vpop.permute.xlu0 %3547 }
 0x50d   : > { %3567 = vst.msk [vmem:[%s5887_s29 + $0x4d] sm:$0x1] %vm2893_vm0, %v3548_v46 }
 0x50e   : > { %v3454_v13 = vpop.permute.xlu1 %3453 }
 0x50f   : > { %3472 = vst.msk [vmem:[%s5887_s29 + $0x5a] sm:$0x1] %vm2893_vm0, %v3454_v13 }
 0x510   : > { %v2947_v55 = vpop.permute.xlu0 %2946 }
 0x511   : > { %2964 = vst.msk [vmem:[%s5887_s29 + $0x61] sm:$0x1] %vm2893_vm0, %v2947_v55 }
 0x512   : > { %v3482_v1 = vpop.permute.xlu1 %3481 }
 0x513   : > { %3502 = vst.msk [vmem:[%s5887_s29 + $0x3b] sm:$0x1] %vm2893_vm0, %v3482_v1 }
 0x514   : > { %v2979_v43 = vpop.permute.xlu0 %2978 }
 0x515   : > { %2996 = vst.msk [vmem:[%s5887_s29 + $0x62] sm:$0x1] %vm2893_vm0, %v2979_v43 }
 0x516   : > { %v3486_v3 = vpop.permute.xlu1 %3485 }
 0x517   : > { %3504 = vst.msk [vmem:[%s5887_s29 + $0x5b] sm:$0x1] %vm2893_vm0, %v3486_v3 }
 0x518   : > { %v3011_v16 = vpop.permute.xlu0 %3010 }
 0x519   : > { %3028 = vst.msk [vmem:[%s5887_s29 + $0x63] sm:$0x1] %vm2893_vm0, %v3011_v16 }
 0x51a   : > { %v3514_v21 = vpop.permute.xlu1 %3513 }
 0x51b   : > { %3534 = vst.msk [vmem:[%s5887_s29 + $0x3c] sm:$0x1] %vm2893_vm0, %v3514_v21 }
 0x51c   : > { %v3043_v38 = vpop.permute.xlu0 %3042 }
 0x51d   : > { %3060 = vst.msk [vmem:[%s5887_s29 + $0x64] sm:$0x1] %vm2893_vm0, %v3043_v38 }
 0x51e   : > { %v3518_v28 = vpop.permute.xlu1 %3517 }
 0x51f   : > { %3536 = vst.msk [vmem:[%s5887_s29 + $0x5c] sm:$0x1] %vm2893_vm0, %v3518_v28 }
 0x520   : > { %v3075_v57 = vpop.permute.xlu0 %3074 }
 0x521   : > { %3092 = vst.msk [vmem:[%s5887_s29 + $0x65] sm:$0x1] %vm2893_vm0, %v3075_v57 }
 0x522   : > { %v3693_v2 = vpop.permute.xlu1 %3692 }
 0x524   : > { %v3107_v37 = vpop.permute.xlu0 %3106 }
 0x525   : > { %3124 = vst.msk [vmem:[%s5887_s29 + $0x66] sm:$0x1] %vm2893_vm0, %v3107_v37 }
 0x526   : > { %v3697_v8 = vpop.permute.xlu1 %3696 }
 0x528   : > { %v3246_v6 = vpop.permute.xlu0 %3245 }
 0x529   : > { %v3275_v9 = vsel %vm3273_vm1, %v3246_v6, %v6521_v36 }
 0x52a   : > { %3291 = vst.msk [vmem:[%s5887_s29 + $0x17] sm:$0x1] %vm2893_vm0, %v3275_v9  ;;  %v3709_v32 = vpop.permute.xlu1 %3708 }
 0x52c   : > { %v3250_v33 = vpop.permute.xlu0 %3249 }
 0x52d   : > { %v3276_v15 = vsel %vm3273_vm1, %v3250_v33, %v6531_v52 }
 0x52e   : > { %3292 = vst.msk [vmem:[%s5887_s29 + $0x27] sm:$0x1] %vm2893_vm0, %v3276_v15  ;;  %v3713_v26 = vpop.permute.xlu1 %3712 }
 0x530   : > { %v3262_v11 = vpop.permute.xlu0 %3261 }
 0x531   : > { %v3279_v22 = vsel %vm3273_vm1, %v3262_v11, %v6541_v47 }
 0x532   : > { %3295 = vst.msk [vmem:[%s5887_s29 + $0x57] sm:$0x1] %vm2893_vm0, %v3279_v22  ;;  %v3546_v48 = vpop.permute.xlu1 %3545 }
 0x533   : > { %3566 = vst.msk [vmem:[%s5887_s29 + $0x3d] sm:$0x1] %vm2893_vm0, %v3546_v48 }
 0x534   : > { %v3266_v45 = vpop.permute.xlu0 %3265 }
 0x535   : > { %v3280_v40 = vsel %vm3273_vm1, %v3266_v45, %v6551_v56 }
 0x536   : > { %3296 = vst.msk [vmem:[%s5887_s29 + $0x67] sm:$0x1] %vm2893_vm0, %v3280_v40  ;;  %v3550_v42 = vpop.permute.xlu1 %3549 }
 0x537   : > { %3568 = vst.msk [vmem:[%s5887_s29 + $0x5d] sm:$0x1] %vm2893_vm0, %v3550_v42 }
 0x538   : > { %v3392_v62 = vpop.permute.xlu0 %3391 }
 0x539   : > { %3409 = vst.msk [vmem:[%s5887_s29 + $0x68] sm:$0x1] %vm2893_vm0, %v3392_v62 }
 0x53a   : > { %v2949_v24 = vpop.permute.xlu1 %2948 }
 0x53b   : > { %2965 = vst.msk [vmem:[%s5887_s29 + $0x71] sm:$0x1] %vm2893_vm0, %v2949_v24 }
 0x53c   : > { %v3424_v0 = vpop.permute.xlu0 %3423 }
 0x53d   : > { %3441 = vst.msk [vmem:[%s5887_s29 + $0x69] sm:$0x1] %vm2893_vm0, %v3424_v0 }
 0x53e   : > { %v2981_v44 = vpop.permute.xlu1 %2980 }
 0x53f   : > { %2997 = vst.msk [vmem:[%s5887_s29 + $0x72] sm:$0x1] %vm2893_vm0, %v2981_v44 }
 0x540   : > { %v3456_v59 = vpop.permute.xlu0 %3455 }
 0x541   : > { %3473 = vst.msk [vmem:[%s5887_s29 + $0x6a] sm:$0x1] %vm2893_vm0, %v3456_v59 }
 0x542   : > { %v3013_v23 = vpop.permute.xlu1 %3012 }
 0x543   : > { %3029 = vst.msk [vmem:[%s5887_s29 + $0x73] sm:$0x1] %vm2893_vm0, %v3013_v23 }
 0x544   : > { %v3488_v7 = vpop.permute.xlu0 %3487 }
 0x545   : > { %3505 = vst.msk [vmem:[%s5887_s29 + $0x6b] sm:$0x1] %vm2893_vm0, %v3488_v7 }
 0x546   : > { %v3045_v4 = vpop.permute.xlu1 %3044 }
 0x547   : > { %3061 = vst.msk [vmem:[%s5887_s29 + $0x74] sm:$0x1] %vm2893_vm0, %v3045_v4 }
 0x548   : > { %v3520_v60 = vpop.permute.xlu0 %3519 }
 0x549   : > { %3537 = vst.msk [vmem:[%s5887_s29 + $0x6c] sm:$0x1] %vm2893_vm0, %v3520_v60 }
 0x54a   : > { %v3077_v34 = vpop.permute.xlu1 %3076 }
 0x54b   : > { %3093 = vst.msk [vmem:[%s5887_s29 + $0x75] sm:$0x1] %vm2893_vm0, %v3077_v34 }
 0x54c   : > { %v3691_v19 = vpop.permute.xlu0 %3690 }
 0x54d   : > { %v3719_v27 = vsel %vm317_vm2, %v3691_v19, %v3693_v2 }
 0x54e   : > { %3735 = vst.msk [vmem:[%s5887_s29 + $0x1e] sm:$0x1] %vm2893_vm0, %v3719_v27  ;;  %v3109_v30 = vpop.permute.xlu1 %3108 }
 0x54f   : > { %3125 = vst.msk [vmem:[%s5887_s29 + $0x76] sm:$0x1] %vm2893_vm0, %v3109_v30 }
 0x550   : > { %v3695_v17 = vpop.permute.xlu0 %3694 }
 0x551   : > { %v3720_v54 = vsel %vm317_vm2, %v3695_v17, %v3697_v8 }
 0x552   : > { %3736 = vst.msk [vmem:[%s5887_s29 + $0x2e] sm:$0x1] %vm2893_vm0, %v3720_v54  ;;  %v3256_v10 = vpop.permute.xlu1 %3255 }
 0x554   : > { %v3707_v18 = vpop.permute.xlu0 %3706 }
 0x555   : > { %v3723_v36 = vsel %vm317_vm2, %v3707_v18, %v3709_v32 }
 0x556   : > { %3739 = vst.msk [vmem:[%s5887_s29 + $0x5e] sm:$0x1] %vm2893_vm0, %v3723_v36  ;;  %v3272_v61 = vpop.permute.xlu1 %3271 }
 0x558   : > { %v3711_v50 = vpop.permute.xlu0 %3710 }
 0x559   : > { %v3724_v52 = vsel %vm317_vm2, %v3711_v50, %v3713_v26 }
 0x55a   : > { %3740 = vst.msk [vmem:[%s5887_s29 + $0x6e] sm:$0x1] %vm2893_vm0, %v3724_v52  ;;  %v3394_v49 = vpop.permute.xlu1 %3393 }
 0x55b   : > { %3410 = vst.msk [vmem:[%s5887_s29 + $0x78] sm:$0x1] %vm2893_vm0, %v3394_v49 }
 0x55c   : > { %v3552_v5 = vpop.permute.xlu0 %3551 }
 0x55d   : > { %3569 = vst.msk [vmem:[%s5887_s29 + $0x6d] sm:$0x1] %vm2893_vm0, %v3552_v5 }
 0x55e   : > { %v3426_v47 = vpop.permute.xlu1 %3425 }
 0x55f   : > { %3442 = vst.msk [vmem:[%s5887_s29 + $0x79] sm:$0x1] %vm2893_vm0, %v3426_v47 }
 0x560   : > { %v3254_v39 = vpop.permute.xlu0 %3253 }
 0x561   : > { %v3277_v56 = vsel %vm3273_vm1, %v3254_v39, %v3256_v10 }
 0x562   : > { %3293 = vst.msk [vmem:[%s5887_s29 + $0x37] sm:$0x1] %vm2893_vm0, %v3277_v56  ;;  %v3458_v29 = vpop.permute.xlu1 %3457 }
 0x563   : > { %3474 = vst.msk [vmem:[%s5887_s29 + $0x7a] sm:$0x1] %vm2893_vm0, %v3458_v29 }
 0x564   : > { %v3270_v53 = vpop.permute.xlu0 %3269 }
 0x565   : > { %v3281_v14 = vsel %vm3273_vm1, %v3270_v53, %v3272_v61 }
 0x566   : > { %3297 = vst.msk [vmem:[%s5887_s29 + $0x77] sm:$0x1] %vm2893_vm0, %v3281_v14  ;;  %v3490_v20 = vpop.permute.xlu1 %3489 }
 0x567   : > { %3506 = vst.msk [vmem:[%s5887_s29 + $0x7b] sm:$0x1] %vm2893_vm0, %v3490_v20 }
 0x568   : > { %v3699_v31 = vpop.permute.xlu0 %3698 }
 0x56a   : > { %v3522_v58 = vpop.permute.xlu1 %3521 }
 0x56b   : > { %3538 = vst.msk [vmem:[%s5887_s29 + $0x7c] sm:$0x1] %vm2893_vm0, %v3522_v58 }
 0x56c   : > { %v3715_v35 = vpop.permute.xlu0 %3714 }
 0x56e   : > { %v3701_v25 = vpop.permute.xlu1 %3700 }
 0x56f   : > { %v3721_v12 = vsel %vm317_vm2, %v3699_v31, %v3701_v25 }
 0x570   : > { %v3836_v63 = vpop.permute.xlu0 %3835  ;;  %3737 = vst.msk [vmem:[%s5887_s29 + $0x3e] sm:$0x1] %vm2893_vm0, %v3721_v12 }
 0x571   : > { %3853 = vst.msk [vmem:[%s5887_s29 + $0x6f] sm:$0x1] %vm2893_vm0, %v3836_v63 }
 0x572   : > { %v3717_v41 = vpop.permute.xlu1 %3716 }
 0x573   : > { %v3725_v51 = vsel %vm317_vm2, %v3715_v35, %v3717_v41 }
 0x574   : > { %3741 = vst.msk [vmem:[%s5887_s29 + $0x7e] sm:$0x1] %vm2893_vm0, %v3725_v51 }
 0x576   : > { %v3554_v46 = vpop.permute.xlu1 %3553 }
 0x577   : > { %3570 = vst.msk [vmem:[%s5887_s29 + $0x7d] sm:$0x1] %vm2893_vm0, %v3554_v46 }
 0x57a   : > { %v3838_v13 = vpop.permute.xlu1 %3837 }
 0x57b   : > { %3854 = vst.msk [vmem:[%s5887_s29 + $0x7f] sm:$0x1] %vm2893_vm0, %v3838_v13 }
 0x57c   : > { %4459 = shalt.err (!%p4456_p3)
}
 0x57d   : > { %s4460_s29 = scalar_lea.hbm %s6708_s13, 2048  ;;  %s4464_s20 = scalar_lea.hbm %s6765_s7, 4096 }
 0x57e   : > { %p4461_p4 = scmp.ne.s32.totalorder %s6708_s13, %s4460_s29  ;;  %p4465_p9 = scmp.lt.u32.totalorder %s6708_s13, %s6765_s7 }
 0x57f   : > { %p4466_p10 = scmp.lt.u32.totalorder %s4464_s20, %s4460_s29  ;;  %p4468_p12 = scmp.lt.u32.totalorder %s4460_s29, %s6708_s13 }
 0x580   : > { %p4462_p7 = pnand %p4461_p4, %p4631_p5 }
 0x581   : > { %p4467_p11 = por %p4466_p10, %p4465_p9 }
 0x582   : > { %p4463_p8 = pneg %p4462_p7 }
 0x583   : > { %p4469_p13 = por %p4468_p12, %p4467_p11 }
 0x585   : > { %p4470_p0 = pnand %p4469_p13, %p4463_p8 }
 0x587   : > { %4473 = shalt.err (!%p4470_p0)
}
 0x588   : > { %s4552_s9 = smov 128   ;;  %s6927_s14 = smov 8  }
 0x589   : > { %4221 = dma.vmem_to_hbm [thread:$0]  (%p4631_p5), %s6710_s23, 2048, %s6708_s13, %s6716_s15, %s4552_s9, %s4552_s9, %s6927_s14  }
 0x58a PF: > { %p4227_p1 = scmp.ge.s32.totalorder %s4508_s27, 2  ;;  %s3884_s28 = sand.u32 1, %s4496_s24  }
 0x58b   : > { %s3885_s16 = scalar_lea.sflag [#allocation3], %s3884_s28 }
 0x58c   : > { %p4224_p2 = pnand %p4227_p1, %p4635_p6 }
 0x58e   : > { %4491 = dma.done.wait (!%p4224_p2), %s3885_s16, 2048  }
 0x58f   : > { %4493 = vsyncadd (!%p4224_p2), %s3885_s16, 4294965248  ;;  %p17_p3 = scmp.ge.s32.totalorder %s4618_s30, 4   ;;  %s6928_s24 = smov %s4500_s25 }
 0x590   : > { %s6929_s25 = smov %s4504_s26  ;;  %s6930_s26 = smov %s4629_s10 }
 0x591   : > { %s6931_s27 = smov %s4618_s30  ;;  %19 = sbr.rel (!%p17_p3) target bundleno = 3 (0x3), region = 83 }
 0x598   :  { %3890 = vsyncpa [#allocation3], 1 }
 0x599   :  { %3892 = vsyncpa [#allocation3 + $0x1], 1 }

</bundles_post_ra>
